<compile_context>
chip_gen: v6e
topology: v6e:2x2x1
jax: 0.10.0
libtpu: 0.0.40
codegen_flags: <defaults>
</compile_context>

<pallas_src>
import functools

import jax
import jax.numpy as jnp
from jax.experimental import pallas as pl
from jax.experimental.pallas import tpu as pltpu


_PARALLEL = pltpu.CompilerParams(dimension_semantics=("parallel",))


# ----------------------------- Pallas kernels ------------------------------

def _haar_kernel(x_ref, m_ref, o_ref):
    # Haar butterfly as one matmul against the constant [4C, 4C] sign matrix (f32).
    o_ref[...] = jnp.dot(x_ref[...], m_ref[...], preferred_element_type=jnp.float32)


def _im2col_3x3(x, H, W, not_left, not_right):
    """Build the K-packed im2col [HW, 9*Cin] (bf16) for a 3x3 conv with padding=1.

    x: [H*W, Cin] f32 value (row m = h*W + w holds pixel (h, w)).
    not_left / not_right: [HW, 1] bool masks for w != 0 / w != W-1 (horizontal pad).
    Vertical overflow is handled by zero pad rows; horizontal wrap-around by the masks.
    """
    HW = H * W
    Cin = x.shape[1]
    # Pad block size aligned to 16 sublanes (safe for both f32 and packed bf16 tiling).
    P = ((W + 1 + 15) // 16) * 16
    xb = x.astype(jnp.bfloat16)
    zpad = jnp.zeros((P, Cin), jnp.bfloat16)
    xp = jnp.concatenate([zpad, xb, zpad], axis=0)        # [P + HW + P, Cin]
    base = P - (W + 1)
    zero = jnp.zeros((), jnp.bfloat16)
    taps = []
    for dy in range(3):
        for dx in range(3):
            start = base + dy * W + dx
            t = xp[start:start + HW, :]                    # static sublane-shifted view
            if dx == 0:
                t = jnp.where(not_left, t, zero)
            elif dx == 2:
                t = jnp.where(not_right, t, zero)
            taps.append(t)
    return jnp.concatenate(taps, axis=1)                   # [HW, 9*Cin] bf16


def _invblock_kernel(x_ref, wf_ref, bf_ref, wh_ref, bh_ref, wg_ref, bg_ref, o_ref,
                     *, H, W, s1, s2, clamp):
    """Fused InvBlockExp forward (rev=False) for one image:
        y1 = x1 + F(x2)
        s  = clamp * tanh(H(y1) / 2)        (== clamp * (2*sigmoid(H(y1)) - 1), exact)
        y2 = x2 * exp(s) + G(y1)
        out = [y1 | y2]
    """
    HW = H * W
    x = x_ref[...]                                         # [HW, s1+s2] f32
    x1 = x[:, :s1]
    x2 = x[:, s1:]

    col = jax.lax.broadcasted_iota(jnp.int32, (HW, 1), 0) % W
    not_left = col != 0
    not_right = col != (W - 1)

    # ---- F(x2): im2col + single MXU matmul, fused bias + residual add ----
    cols_f = _im2col_3x3(x2, H, W, not_left, not_right)    # [HW, 9*s2] bf16
    y1 = x1 + jnp.dot(cols_f, wf_ref[...], preferred_element_type=jnp.float32) + bf_ref[...]

    # ---- H(y1), G(y1): one im2col shared by two matmuls, coupling epilogue ----
    cols_y = _im2col_3x3(y1, H, W, not_left, not_right)    # [HW, 9*s1] bf16
    h = jnp.dot(cols_y, wh_ref[...], preferred_element_type=jnp.float32) + bh_ref[...]
    g = jnp.dot(cols_y, wg_ref[...], preferred_element_type=jnp.float32) + bg_ref[...]
    s = clamp * jnp.tanh(0.5 * h)
    y2 = x2 * jnp.exp(s) + g

    o_ref[...] = jnp.concatenate([y1, y2], axis=1)         # lane-dense merged output


# ----------------------------- wrappers -------------------------------------

def haar_downsample(x):
    """NHWC Haar downsampling: [B, H, W, C] -> [B, H/2, W/2, 4C] (channel order k*C + c)."""
    B, H, W, C = x.shape
    assert H % 2 == 0 and W % 2 == 0, "HaarDownsampling requires even spatial dims"
    Hh, Wh = H // 2, W // 2
    rows = Hh * Wh
    R = B * rows
    # 2x2 pixel-unshuffle (one tiny XLA pass): lanes ordered (sub-pixel p, channel c) = p*C + c.
    xr = x.reshape(B, Hh, 2, Wh, 2, C).transpose(0, 1, 3, 2, 4, 5).reshape(R, 4 * C)
    xr = xr.astype(jnp.float32)
    # out[k*C + c] = 0.25 * sum_p sign[k][p] * in[p*C + c]   (matches IRN's reshape/transpose order)
    signs = jnp.array([[1.,  1.,  1.,  1.],
                       [1., -1.,  1., -1.],
                       [1.,  1., -1., -1.],
                       [1., -1., -1.,  1.]], jnp.float32)          # [k, p]
    M = 0.25 * jnp.kron(signs.T, jnp.eye(C, dtype=jnp.float32))    # [4C (p,c), 4C (k,c)]

    if rows % 8 == 0:
        grid, blk_rows = (B,), rows
    else:
        grid, blk_rows = (1,), R

    out = pl.pallas_call(
        _haar_kernel,
        out_shape=jax.ShapeDtypeStruct((R, 4 * C), jnp.float32),
        grid=grid,
        in_specs=[pl.BlockSpec((blk_rows, 4 * C), lambda b: (b, 0)),
                  pl.BlockSpec((4 * C, 4 * C), lambda b: (0, 0))],
        out_specs=pl.BlockSpec((blk_rows, 4 * C), lambda b: (b, 0)),
        compiler_params=_PARALLEL,
    )(xr, M)
    return out.reshape(B, Hh, Wh, 4 * C)


def inv_block_forward(x, params, split_len1, clamp=1.0):
    """One InvBlockExp (forward, rev=False). x: NHWC [B, H, W, C]."""
    B, H, W, C = x.shape
    s1 = split_len1
    s2 = C - s1
    HW = H * W
    assert HW % 8 == 0

    xf = x.reshape(B * HW, C).astype(jnp.float32)

    out = pl.pallas_call(
        functools.partial(_invblock_kernel, H=H, W=W, s1=s1, s2=s2, clamp=clamp),
        out_shape=jax.ShapeDtypeStruct((B * HW, C), jnp.float32),
        grid=(B,),
        in_specs=[
            pl.BlockSpec((HW, C), lambda b: (b, 0)),            # x (per image)
            pl.BlockSpec((9 * s2, s1), lambda b: (0, 0)),       # wf (K-packed)
            pl.BlockSpec((1, s1), lambda b: (0, 0)),            # bf
            pl.BlockSpec((9 * s1, s2), lambda b: (0, 0)),       # wh
            pl.BlockSpec((1, s2), lambda b: (0, 0)),            # bh
            pl.BlockSpec((9 * s1, s2), lambda b: (0, 0)),       # wg
            pl.BlockSpec((1, s2), lambda b: (0, 0)),            # bg
        ],
        out_specs=pl.BlockSpec((HW, C), lambda b: (b, 0)),
        compiler_params=_PARALLEL,
    )(xf, params['wf'], params['bf'], params['wh'], params['bh'],
      params['wg'], params['bg'])

    return out.reshape(B, H, W, C)


# ----------------------------- InvNN model ----------------------------------

def _pack_conv(w):
    """[Cout, Cin, 3, 3] -> K-packed [9*Cin, Cout] bf16; row index = (dy*3 + dx)*Cin + cin."""
    cout, cin = w.shape[0], w.shape[1]
    return jnp.transpose(w, (2, 3, 1, 0)).reshape(9 * cin, cout).astype(jnp.bfloat16)


def init_invnn_params(key, channel_in=3, channel_out=3, block_num=(1, 1), down_num=2):
    """Build the op list.  Each subnet (F/G/H) is a single 3x3 conv (pad=1) with deterministic
    random weights, pre-packed along the contraction dim as [9*Cin, Cout] bf16."""
    ops = []
    current = channel_in
    scale = 0.1
    for i in range(down_num):
        ops.append(('haar', None))
        current *= 4
        for _ in range(block_num[i]):
            s1 = channel_out            # split_len1
            s2 = current - channel_out  # split_len2
            key, k0, k1, k2, k3, k4, k5 = jax.random.split(key, 7)
            F_w = scale * jax.random.normal(k0, (s1, s2, 3, 3), jnp.float32)
            F_b = scale * jax.random.normal(k1, (s1,), jnp.float32)
            G_w = scale * jax.random.normal(k2, (s2, s1, 3, 3), jnp.float32)
            G_b = scale * jax.random.normal(k3, (s2,), jnp.float32)
            H_w = scale * jax.random.normal(k4, (s2, s1, 3, 3), jnp.float32)
            H_b = scale * jax.random.normal(k5, (s2,), jnp.float32)
            p = {
                'wf': _pack_conv(F_w), 'bf': F_b.reshape(1, s1),
                'wh': _pack_conv(H_w), 'bh': H_b.reshape(1, s2),
                'wg': _pack_conv(G_w), 'bg': G_b.reshape(1, s2),
            }
            ops.append(('block', (p, s1)))
    return ops


def invnn_forward(x_nchw, ops):
    # NCHW <-> NHWC boundary transposes kept only because the reference interface is NCHW;
    # internally everything runs lane-major NHWC.
    out = jnp.transpose(x_nchw, (0, 2, 3, 1))
    for kind, payload in ops:
        if kind == 'haar':
            out = haar_downsample(out)
        else:
            p, s1 = payload
            out = inv_block_forward(out, p, s1)
    return jnp.transpose(out, (0, 3, 1, 2))


# ----------------------------- main ------------------------------------------

if __name__ == "__main__":
    key = jax.random.PRNGKey(0)
    kx, kp = jax.random.split(key)
    # channel_in=3, channel_out=3, down_num=2, block_num=[1, 1]
    x = jax.random.normal(kx, (2, 3, 16, 16), jnp.float32)
    ops = init_invnn_params(kp, channel_in=3, channel_out=3,
                            block_num=(1, 1), down_num=2)
    fwd = jax.jit(functools.partial(invnn_forward, ops=ops))
    out = fwd(x)
    jax.block_until_ready(out)
    assert out.shape == (2, 48, 4, 4), out.shape
    print("KERNEL_OK")
</pallas_src>

<mosaic_0001>
module attributes {stable_mosaic.version = 11 : i64} {
  func.func @_haar_kernel(%arg0: i32, %arg1: memref<64x12xf32, #tpu.memory_space<vmem>>, %arg2: memref<12x12xf32, #tpu.memory_space<vmem>>, %arg3: memref<64x12xf32, #tpu.memory_space<vmem>>) attributes {dimension_semantics = [#tpu.dimension_semantics<parallel>], iteration_bounds = array<i64: 2>, scalar_prefetch = 0 : i64, scratch_operands = 0 : i64, tpu.core_type = #tpu.core_type<tc>, window_params = [{transform_indices = @transform_0, window_bounds = array<i64: 64, 12>}, {pipeline_mode = #tpu.pipeline_mode<synchronous>, transform_indices = @transform_1, window_bounds = array<i64: 12, 12>}, {transform_indices = @transform_2, window_bounds = array<i64: 64, 12>}]} {
    %c0 = arith.constant 0 : index
    %c0_0 = arith.constant 0 : index
    %0 = vector.load %arg1[%c0, %c0_0] : memref<64x12xf32, #tpu.memory_space<vmem>>, vector<64x12xf32>
    %c0_1 = arith.constant 0 : index
    %c0_2 = arith.constant 0 : index
    %1 = vector.load %arg2[%c0_1, %c0_2] : memref<12x12xf32, #tpu.memory_space<vmem>>, vector<12x12xf32>
    %cst = arith.constant dense<0.000000e+00> : vector<64x12xf32>
    %2 = tpu.matmul %0, %1, %cst {dimension_numbers = #tpu.dot_dimension_numbers<[1], [0], [0], [1], [0, 0, 1, 1], [], []>} : vector<64x12xf32>, vector<12x12xf32>, vector<64x12xf32> -> vector<64x12xf32>
    %c0_3 = arith.constant 0 : index
    %c0_4 = arith.constant 0 : index
    %3 = vector.load %arg3[%c0_3, %c0_4] : memref<64x12xf32, #tpu.memory_space<vmem>>, vector<64x12xf32>
    tpu.vector_store %arg3[%c0_3, %c0_4], %2 {strides = array<i32>} : memref<64x12xf32, #tpu.memory_space<vmem>>, vector<64x12xf32>,
    return
  }
  func.func @transform_0(%arg0: i32) -> (i32, i32) {
    %c0_i32 = arith.constant 0 : i32
    %c0_i32_0 = arith.constant 0 : i32
    return %arg0, %c0_i32 : i32, i32
  }
  func.func @transform_1(%arg0: i32) -> (i32, i32) {
    %c0_i32 = arith.constant 0 : i32
    %c0_i32_0 = arith.constant 0 : i32
    %c0_i32_1 = arith.constant 0 : i32
    return %c0_i32, %c0_i32_0 : i32, i32
  }
  func.func @transform_2(%arg0: i32) -> (i32, i32) {
    %c0_i32 = arith.constant 0 : i32
    %c0_i32_0 = arith.constant 0 : i32
    return %arg0, %c0_i32 : i32, i32
  }
}

module attributes {stable_mosaic.version = 11 : i64} {
  func.func @_invblock_kernel(%arg0: i32, %arg1: memref<64x12xf32, #tpu.memory_space<vmem>>, %arg2: memref<81x3xbf16, #tpu.memory_space<vmem>>, %arg3: memref<1x3xf32, #tpu.memory_space<vmem>>, %arg4: memref<27x9xbf16, #tpu.memory_space<vmem>>, %arg5: memref<1x9xf32, #tpu.memory_space<vmem>>, %arg6: memref<27x9xbf16, #tpu.memory_space<vmem>>, %arg7: memref<1x9xf32, #tpu.memory_space<vmem>>, %arg8: memref<64x12xf32, #tpu.memory_space<vmem>>) attributes {dimension_semantics = [#tpu.dimension_semantics<parallel>], iteration_bounds = array<i64: 2>, scalar_prefetch = 0 : i64, scratch_operands = 0 : i64, tpu.core_type = #tpu.core_type<tc>, window_params = [{transform_indices = @transform_0, window_bounds = array<i64: 64, 12>}, {pipeline_mode = #tpu.pipeline_mode<synchronous>, transform_indices = @transform_1, window_bounds = array<i64: 81, 3>}, {pipeline_mode = #tpu.pipeline_mode<synchronous>, transform_indices = @transform_2, window_bounds = array<i64: 1, 3>}, {pipeline_mode = #tpu.pipeline_mode<synchronous>, transform_indices = @transform_3, window_bounds = array<i64: 27, 9>}, {pipeline_mode = #tpu.pipeline_mode<synchronous>, transform_indices = @transform_4, window_bounds = array<i64: 1, 9>}, {pipeline_mode = #tpu.pipeline_mode<synchronous>, transform_indices = @transform_5, window_bounds = array<i64: 27, 9>}, {pipeline_mode = #tpu.pipeline_mode<synchronous>, transform_indices = @transform_6, window_bounds = array<i64: 1, 9>}, {transform_indices = @transform_7, window_bounds = array<i64: 64, 12>}]} {
    %c0 = arith.constant 0 : index
    %c0_0 = arith.constant 0 : index
    %0 = vector.load %arg1[%c0, %c0_0] : memref<64x12xf32, #tpu.memory_space<vmem>>, vector<64x12xf32>
    %1 = vector.extract_strided_slice %0 {offsets = [0, 0], sizes = [64, 3], strides = [1, 1]} : vector<64x12xf32> to vector<64x3xf32>
    %2 = vector.extract_strided_slice %0 {offsets = [0, 3], sizes = [64, 9], strides = [1, 1]} : vector<64x12xf32> to vector<64x9xf32>
    %3 = tpu.iota {dimensions = array<i32: 0>} : vector<64x1xi32>
    %c8_i32 = arith.constant 8 : i32
    %c0_i32 = arith.constant 0 : i32
    %4 = arith.cmpi eq, %c8_i32, %c0_i32 : i32
    %c1_i32 = arith.constant 1 : i32
    %5 = arith.select %4, %c1_i32, %c8_i32 : i32
    %6 = vector.broadcast %5 : i32 to vector<64x1xi32>
    %7 = arith.remsi %3, %6 : vector<64x1xi32>
    %c0_i32_1 = arith.constant 0 : i32
    %8 = vector.broadcast %c0_i32_1 : i32 to vector<64x1xi32>
    %9 = arith.cmpi ne, %7, %8 : vector<64x1xi32>
    %c0_i32_2 = arith.constant 0 : i32
    %10 = vector.broadcast %c0_i32_2 : i32 to vector<64x1xi32>
    %11 = arith.cmpi slt, %7, %10 : vector<64x1xi32>
    %c0_i32_3 = arith.constant 0 : i32
    %12 = arith.cmpi slt, %5, %c0_i32_3 : i32
    %13 = vector.broadcast %12 : i1 to vector<64x1xi1>
    %14 = vector.broadcast %13 : vector<64x1xi1> to vector<64x1xi1>
    %15 = arith.xori %11, %14 : vector<64x1xi1>
    %16 = arith.andi %15, %9 : vector<64x1xi1>
    %17 = vector.broadcast %5 : i32 to vector<64x1xi32>
    %18 = arith.addi %7, %17 : vector<64x1xi32>
    %19 = arith.select %16, %18, %7 : vector<64x1xi1>, vector<64x1xi32>
    %c0_i32_4 = arith.constant 0 : i32
    %20 = vector.broadcast %c0_i32_4 : i32 to vector<64x1xi32>
    %21 = arith.cmpi ne, %19, %20 : vector<64x1xi32>
    %c7_i32 = arith.constant 7 : i32
    %22 = vector.broadcast %c7_i32 : i32 to vector<64x1xi32>
    %23 = arith.cmpi ne, %19, %22 : vector<64x1xi32>
    %24 = arith.truncf %2 : vector<64x9xf32> to vector<64x9xbf16>
    %cst = arith.constant 0.000000e+00 : bf16
    %25 = vector.broadcast %cst : bf16 to vector<16x9xbf16>
    %26 = tpu.concatenate %25, %24, %25 in 0 : vector<16x9xbf16>, vector<64x9xbf16>, vector<16x9xbf16> -> vector<96x9xbf16>
    %27 = vector.extract_strided_slice %26 {offsets = [7, 0], sizes = [64, 9], strides = [1, 1]} : vector<96x9xbf16> to vector<64x9xbf16>
    %cst_5 = arith.constant 0.000000e+00 : bf16
    %28 = vector.shape_cast %21 : vector<64x1xi1> to vector<64x1xi1>
    %29 = vector.broadcast %28 : vector<64x1xi1> to vector<64x9xi1>
    %30 = vector.broadcast %cst_5 : bf16 to vector<64x9xbf16>
    %31 = arith.select %29, %27, %30 : vector<64x9xi1>, vector<64x9xbf16>
    %32 = vector.extract_strided_slice %26 {offsets = [8, 0], sizes = [64, 9], strides = [1, 1]} : vector<96x9xbf16> to vector<64x9xbf16>
    %33 = vector.extract_strided_slice %26 {offsets = [9, 0], sizes = [64, 9], strides = [1, 1]} : vector<96x9xbf16> to vector<64x9xbf16>
    %cst_6 = arith.constant 0.000000e+00 : bf16
    %34 = vector.shape_cast %23 : vector<64x1xi1> to vector<64x1xi1>
    %35 = vector.broadcast %34 : vector<64x1xi1> to vector<64x9xi1>
    %36 = vector.broadcast %cst_6 : bf16 to vector<64x9xbf16>
    %37 = arith.select %35, %33, %36 : vector<64x9xi1>, vector<64x9xbf16>
    %38 = vector.extract_strided_slice %26 {offsets = [15, 0], sizes = [64, 9], strides = [1, 1]} : vector<96x9xbf16> to vector<64x9xbf16>
    %cst_7 = arith.constant 0.000000e+00 : bf16
    %39 = vector.shape_cast %21 : vector<64x1xi1> to vector<64x1xi1>
    %40 = vector.broadcast %39 : vector<64x1xi1> to vector<64x9xi1>
    %41 = vector.broadcast %cst_7 : bf16 to vector<64x9xbf16>
    %42 = arith.select %40, %38, %41 : vector<64x9xi1>, vector<64x9xbf16>
    %43 = vector.extract_strided_slice %26 {offsets = [16, 0], sizes = [64, 9], strides = [1, 1]} : vector<96x9xbf16> to vector<64x9xbf16>
    %44 = vector.extract_strided_slice %26 {offsets = [17, 0], sizes = [64, 9], strides = [1, 1]} : vector<96x9xbf16> to vector<64x9xbf16>
    %cst_8 = arith.constant 0.000000e+00 : bf16
    %45 = vector.shape_cast %23 : vector<64x1xi1> to vector<64x1xi1>
    %46 = vector.broadcast %45 : vector<64x1xi1> to vector<64x9xi1>
    %47 = vector.broadcast %cst_8 : bf16 to vector<64x9xbf16>
    %48 = arith.select %46, %44, %47 : vector<64x9xi1>, vector<64x9xbf16>
    %49 = vector.extract_strided_slice %26 {offsets = [23, 0], sizes = [64, 9], strides = [1, 1]} : vector<96x9xbf16> to vector<64x9xbf16>
    %cst_9 = arith.constant 0.000000e+00 : bf16
    %50 = vector.shape_cast %21 : vector<64x1xi1> to vector<64x1xi1>
    %51 = vector.broadcast %50 : vector<64x1xi1> to vector<64x9xi1>
    %52 = vector.broadcast %cst_9 : bf16 to vector<64x9xbf16>
    %53 = arith.select %51, %49, %52 : vector<64x9xi1>, vector<64x9xbf16>
    %54 = vector.extract_strided_slice %26 {offsets = [24, 0], sizes = [64, 9], strides = [1, 1]} : vector<96x9xbf16> to vector<64x9xbf16>
    %55 = vector.extract_strided_slice %26 {offsets = [25, 0], sizes = [64, 9], strides = [1, 1]} : vector<96x9xbf16> to vector<64x9xbf16>
    %cst_10 = arith.constant 0.000000e+00 : bf16
    %56 = vector.shape_cast %23 : vector<64x1xi1> to vector<64x1xi1>
    %57 = vector.broadcast %56 : vector<64x1xi1> to vector<64x9xi1>
    %58 = vector.broadcast %cst_10 : bf16 to vector<64x9xbf16>
    %59 = arith.select %57, %55, %58 : vector<64x9xi1>, vector<64x9xbf16>
    %60 = tpu.concatenate %31, %32, %37, %42, %43, %48, %53, %54, %59 in 1 : vector<64x9xbf16>, vector<64x9xbf16>, vector<64x9xbf16>, vector<64x9xbf16>, vector<64x9xbf16>, vector<64x9xbf16>, vector<64x9xbf16>, vector<64x9xbf16>, vector<64x9xbf16> -> vector<64x81xbf16>
    %c0_11 = arith.constant 0 : index
    %c0_12 = arith.constant 0 : index
    %61 = vector.load %arg2[%c0_11, %c0_12] : memref<81x3xbf16, #tpu.memory_space<vmem>>, vector<81x3xbf16>
    %cst_13 = arith.constant dense<0.000000e+00> : vector<64x3xf32>
    %62 = tpu.matmul %60, %61, %cst_13 {dimension_numbers = #tpu.dot_dimension_numbers<[1], [0], [0], [1], [0, 0, 1, 1], [], []>} : vector<64x81xbf16>, vector<81x3xbf16>, vector<64x3xf32> -> vector<64x3xf32>
    %63 = arith.addf %1, %62 : vector<64x3xf32>
    %c0_14 = arith.constant 0 : index
    %c0_15 = arith.constant 0 : index
    %64 = vector.load %arg3[%c0_14, %c0_15] : memref<1x3xf32, #tpu.memory_space<vmem>>, vector<1x3xf32>
    %65 = vector.broadcast %64 : vector<1x3xf32> to vector<64x3xf32>
    %66 = arith.addf %63, %65 : vector<64x3xf32>
    %67 = arith.truncf %66 : vector<64x3xf32> to vector<64x3xbf16>
    %cst_16 = arith.constant 0.000000e+00 : bf16
    %68 = vector.broadcast %cst_16 : bf16 to vector<16x3xbf16>
    %69 = tpu.concatenate %68, %67, %68 in 0 : vector<16x3xbf16>, vector<64x3xbf16>, vector<16x3xbf16> -> vector<96x3xbf16>
    %70 = vector.extract_strided_slice %69 {offsets = [7, 0], sizes = [64, 3], strides = [1, 1]} : vector<96x3xbf16> to vector<64x3xbf16>
    %cst_17 = arith.constant 0.000000e+00 : bf16
    %71 = vector.shape_cast %21 : vector<64x1xi1> to vector<64x1xi1>
    %72 = vector.broadcast %71 : vector<64x1xi1> to vector<64x3xi1>
    %73 = vector.broadcast %cst_17 : bf16 to vector<64x3xbf16>
    %74 = arith.select %72, %70, %73 : vector<64x3xi1>, vector<64x3xbf16>
    %75 = vector.extract_strided_slice %69 {offsets = [8, 0], sizes = [64, 3], strides = [1, 1]} : vector<96x3xbf16> to vector<64x3xbf16>
    %76 = vector.extract_strided_slice %69 {offsets = [9, 0], sizes = [64, 3], strides = [1, 1]} : vector<96x3xbf16> to vector<64x3xbf16>
    %cst_18 = arith.constant 0.000000e+00 : bf16
    %77 = vector.shape_cast %23 : vector<64x1xi1> to vector<64x1xi1>
    %78 = vector.broadcast %77 : vector<64x1xi1> to vector<64x3xi1>
    %79 = vector.broadcast %cst_18 : bf16 to vector<64x3xbf16>
    %80 = arith.select %78, %76, %79 : vector<64x3xi1>, vector<64x3xbf16>
    %81 = vector.extract_strided_slice %69 {offsets = [15, 0], sizes = [64, 3], strides = [1, 1]} : vector<96x3xbf16> to vector<64x3xbf16>
    %cst_19 = arith.constant 0.000000e+00 : bf16
    %82 = vector.shape_cast %21 : vector<64x1xi1> to vector<64x1xi1>
    %83 = vector.broadcast %82 : vector<64x1xi1> to vector<64x3xi1>
    %84 = vector.broadcast %cst_19 : bf16 to vector<64x3xbf16>
    %85 = arith.select %83, %81, %84 : vector<64x3xi1>, vector<64x3xbf16>
    %86 = vector.extract_strided_slice %69 {offsets = [16, 0], sizes = [64, 3], strides = [1, 1]} : vector<96x3xbf16> to vector<64x3xbf16>
    %87 = vector.extract_strided_slice %69 {offsets = [17, 0], sizes = [64, 3], strides = [1, 1]} : vector<96x3xbf16> to vector<64x3xbf16>
    %cst_20 = arith.constant 0.000000e+00 : bf16
    %88 = vector.shape_cast %23 : vector<64x1xi1> to vector<64x1xi1>
    %89 = vector.broadcast %88 : vector<64x1xi1> to vector<64x3xi1>
    %90 = vector.broadcast %cst_20 : bf16 to vector<64x3xbf16>
    %91 = arith.select %89, %87, %90 : vector<64x3xi1>, vector<64x3xbf16>
    %92 = vector.extract_strided_slice %69 {offsets = [23, 0], sizes = [64, 3], strides = [1, 1]} : vector<96x3xbf16> to vector<64x3xbf16>
    %cst_21 = arith.constant 0.000000e+00 : bf16
    %93 = vector.shape_cast %21 : vector<64x1xi1> to vector<64x1xi1>
    %94 = vector.broadcast %93 : vector<64x1xi1> to vector<64x3xi1>
    %95 = vector.broadcast %cst_21 : bf16 to vector<64x3xbf16>
    %96 = arith.select %94, %92, %95 : vector<64x3xi1>, vector<64x3xbf16>
    %97 = vector.extract_strided_slice %69 {offsets = [24, 0], sizes = [64, 3], strides = [1, 1]} : vector<96x3xbf16> to vector<64x3xbf16>
    %98 = vector.extract_strided_slice %69 {offsets = [25, 0], sizes = [64, 3], strides = [1, 1]} : vector<96x3xbf16> to vector<64x3xbf16>
    %cst_22 = arith.constant 0.000000e+00 : bf16
    %99 = vector.shape_cast %23 : vector<64x1xi1> to vector<64x1xi1>
    %100 = vector.broadcast %99 : vector<64x1xi1> to vector<64x3xi1>
    %101 = vector.broadcast %cst_22 : bf16 to vector<64x3xbf16>
    %102 = arith.select %100, %98, %101 : vector<64x3xi1>, vector<64x3xbf16>
    %103 = tpu.concatenate %74, %75, %80, %85, %86, %91, %96, %97, %102 in 1 : vector<64x3xbf16>, vector<64x3xbf16>, vector<64x3xbf16>, vector<64x3xbf16>, vector<64x3xbf16>, vector<64x3xbf16>, vector<64x3xbf16>, vector<64x3xbf16>, vector<64x3xbf16> -> vector<64x27xbf16>
    %c0_23 = arith.constant 0 : index
    %c0_24 = arith.constant 0 : index
    %104 = vector.load %arg4[%c0_23, %c0_24] : memref<27x9xbf16, #tpu.memory_space<vmem>>, vector<27x9xbf16>
    %cst_25 = arith.constant dense<0.000000e+00> : vector<64x9xf32>
    %105 = tpu.matmul %103, %104, %cst_25 {dimension_numbers = #tpu.dot_dimension_numbers<[1], [0], [0], [1], [0, 0, 1, 1], [], []>} : vector<64x27xbf16>, vector<27x9xbf16>, vector<64x9xf32> -> vector<64x9xf32>
    %c0_26 = arith.constant 0 : index
    %c0_27 = arith.constant 0 : index
    %106 = vector.load %arg5[%c0_26, %c0_27] : memref<1x9xf32, #tpu.memory_space<vmem>>, vector<1x9xf32>
    %107 = vector.broadcast %106 : vector<1x9xf32> to vector<64x9xf32>
    %108 = arith.addf %105, %107 : vector<64x9xf32>
    %c0_28 = arith.constant 0 : index
    %c0_29 = arith.constant 0 : index
    %109 = vector.load %arg6[%c0_28, %c0_29] : memref<27x9xbf16, #tpu.memory_space<vmem>>, vector<27x9xbf16>
    %cst_30 = arith.constant dense<0.000000e+00> : vector<64x9xf32>
    %110 = tpu.matmul %103, %109, %cst_30 {dimension_numbers = #tpu.dot_dimension_numbers<[1], [0], [0], [1], [0, 0, 1, 1], [], []>} : vector<64x27xbf16>, vector<27x9xbf16>, vector<64x9xf32> -> vector<64x9xf32>
    %c0_31 = arith.constant 0 : index
    %c0_32 = arith.constant 0 : index
    %111 = vector.load %arg7[%c0_31, %c0_32] : memref<1x9xf32, #tpu.memory_space<vmem>>, vector<1x9xf32>
    %112 = vector.broadcast %111 : vector<1x9xf32> to vector<64x9xf32>
    %113 = arith.addf %110, %112 : vector<64x9xf32>
    %cst_33 = arith.constant 5.000000e-01 : f32
    %114 = vector.broadcast %cst_33 : f32 to vector<64x9xf32>
    %115 = arith.mulf %114, %108 : vector<64x9xf32>
    %116 = math.tanh %115 : vector<64x9xf32>
    %cst_34 = arith.constant 1.000000e+00 : f32
    %117 = vector.broadcast %cst_34 : f32 to vector<64x9xf32>
    %118 = arith.mulf %117, %116 : vector<64x9xf32>
    %119 = math.exp %118 : vector<64x9xf32>
    %120 = arith.mulf %2, %119 : vector<64x9xf32>
    %121 = arith.addf %120, %113 : vector<64x9xf32>
    %122 = tpu.concatenate %66, %121 in 1 : vector<64x3xf32>, vector<64x9xf32> -> vector<64x12xf32>
    %c0_35 = arith.constant 0 : index
    %c0_36 = arith.constant 0 : index
    %123 = vector.load %arg8[%c0_35, %c0_36] : memref<64x12xf32, #tpu.memory_space<vmem>>, vector<64x12xf32>
    tpu.vector_store %arg8[%c0_35, %c0_36], %122 {strides = array<i32>} : memref<64x12xf32, #tpu.memory_space<vmem>>, vector<64x12xf32>,
    return
  }
  func.func @transform_0(%arg0: i32) -> (i32, i32) {
    %c0_i32 = arith.constant 0 : i32
    %c0_i32_0 = arith.constant 0 : i32
    return %arg0, %c0_i32 : i32, i32
  }
  func.func @transform_1(%arg0: i32) -> (i32, i32) {
    %c0_i32 = arith.constant 0 : i32
    %c0_i32_0 = arith.constant 0 : i32
    %c0_i32_1 = arith.constant 0 : i32
    return %c0_i32, %c0_i32_0 : i32, i32
  }
  func.func @transform_2(%arg0: i32) -> (i32, i32) {
    %c0_i32 = arith.constant 0 : i32
    %c0_i32_0 = arith.constant 0 : i32
    %c0_i32_1 = arith.constant 0 : i32
    return %c0_i32, %c0_i32_0 : i32, i32
  }
  func.func @transform_3(%arg0: i32) -> (i32, i32) {
    %c0_i32 = arith.constant 0 : i32
    %c0_i32_0 = arith.constant 0 : i32
    %c0_i32_1 = arith.constant 0 : i32
    return %c0_i32, %c0_i32_0 : i32, i32
  }
  func.func @transform_4(%arg0: i32) -> (i32, i32) {
    %c0_i32 = arith.constant 0 : i32
    %c0_i32_0 = arith.constant 0 : i32
    %c0_i32_1 = arith.constant 0 : i32
    return %c0_i32, %c0_i32_0 : i32, i32
  }
  func.func @transform_5(%arg0: i32) -> (i32, i32) {
    %c0_i32 = arith.constant 0 : i32
    %c0_i32_0 = arith.constant 0 : i32
    %c0_i32_1 = arith.constant 0 : i32
    return %c0_i32, %c0_i32_0 : i32, i32
  }
  func.func @transform_6(%arg0: i32) -> (i32, i32) {
    %c0_i32 = arith.constant 0 : i32
    %c0_i32_0 = arith.constant 0 : i32
    %c0_i32_1 = arith.constant 0 : i32
    return %c0_i32, %c0_i32_0 : i32, i32
  }
  func.func @transform_7(%arg0: i32) -> (i32, i32) {
    %c0_i32 = arith.constant 0 : i32
    %c0_i32_0 = arith.constant 0 : i32
    return %arg0, %c0_i32 : i32, i32
  }
}

module attributes {stable_mosaic.version = 11 : i64} {
  func.func @_haar_kernel(%arg0: i32, %arg1: memref<16x48xf32, #tpu.memory_space<vmem>>, %arg2: memref<48x48xf32, #tpu.memory_space<vmem>>, %arg3: memref<16x48xf32, #tpu.memory_space<vmem>>) attributes {dimension_semantics = [#tpu.dimension_semantics<parallel>], iteration_bounds = array<i64: 2>, scalar_prefetch = 0 : i64, scratch_operands = 0 : i64, tpu.core_type = #tpu.core_type<tc>, window_params = [{transform_indices = @transform_0, window_bounds = array<i64: 16, 48>}, {pipeline_mode = #tpu.pipeline_mode<synchronous>, transform_indices = @transform_1, window_bounds = array<i64: 48, 48>}, {transform_indices = @transform_2, window_bounds = array<i64: 16, 48>}]} {
    %c0 = arith.constant 0 : index
    %c0_0 = arith.constant 0 : index
    %0 = vector.load %arg1[%c0, %c0_0] : memref<16x48xf32, #tpu.memory_space<vmem>>, vector<16x48xf32>
    %c0_1 = arith.constant 0 : index
    %c0_2 = arith.constant 0 : index
    %1 = vector.load %arg2[%c0_1, %c0_2] : memref<48x48xf32, #tpu.memory_space<vmem>>, vector<48x48xf32>
    %cst = arith.constant dense<0.000000e+00> : vector<16x48xf32>
    %2 = tpu.matmul %0, %1, %cst {dimension_numbers = #tpu.dot_dimension_numbers<[1], [0], [0], [1], [0, 0, 1, 1], [], []>} : vector<16x48xf32>, vector<48x48xf32>, vector<16x48xf32> -> vector<16x48xf32>
    %c0_3 = arith.constant 0 : index
    %c0_4 = arith.constant 0 : index
    %3 = vector.load %arg3[%c0_3, %c0_4] : memref<16x48xf32, #tpu.memory_space<vmem>>, vector<16x48xf32>
    tpu.vector_store %arg3[%c0_3, %c0_4], %2 {strides = array<i32>} : memref<16x48xf32, #tpu.memory_space<vmem>>, vector<16x48xf32>,
    return
  }
  func.func @transform_0(%arg0: i32) -> (i32, i32) {
    %c0_i32 = arith.constant 0 : i32
    %c0_i32_0 = arith.constant 0 : i32
    return %arg0, %c0_i32 : i32, i32
  }
  func.func @transform_1(%arg0: i32) -> (i32, i32) {
    %c0_i32 = arith.constant 0 : i32
    %c0_i32_0 = arith.constant 0 : i32
    %c0_i32_1 = arith.constant 0 : i32
    return %c0_i32, %c0_i32_0 : i32, i32
  }
  func.func @transform_2(%arg0: i32) -> (i32, i32) {
    %c0_i32 = arith.constant 0 : i32
    %c0_i32_0 = arith.constant 0 : i32
    return %arg0, %c0_i32 : i32, i32
  }
}

module attributes {stable_mosaic.version = 11 : i64} {
  func.func @_invblock_kernel(%arg0: i32, %arg1: memref<16x48xf32, #tpu.memory_space<vmem>>, %arg2: memref<405x3xbf16, #tpu.memory_space<vmem>>, %arg3: memref<1x3xf32, #tpu.memory_space<vmem>>, %arg4: memref<27x45xbf16, #tpu.memory_space<vmem>>, %arg5: memref<1x45xf32, #tpu.memory_space<vmem>>, %arg6: memref<27x45xbf16, #tpu.memory_space<vmem>>, %arg7: memref<1x45xf32, #tpu.memory_space<vmem>>, %arg8: memref<16x48xf32, #tpu.memory_space<vmem>>) attributes {dimension_semantics = [#tpu.dimension_semantics<parallel>], iteration_bounds = array<i64: 2>, scalar_prefetch = 0 : i64, scratch_operands = 0 : i64, tpu.core_type = #tpu.core_type<tc>, window_params = [{transform_indices = @transform_0, window_bounds = array<i64: 16, 48>}, {pipeline_mode = #tpu.pipeline_mode<synchronous>, transform_indices = @transform_1, window_bounds = array<i64: 405, 3>}, {pipeline_mode = #tpu.pipeline_mode<synchronous>, transform_indices = @transform_2, window_bounds = array<i64: 1, 3>}, {pipeline_mode = #tpu.pipeline_mode<synchronous>, transform_indices = @transform_3, window_bounds = array<i64: 27, 45>}, {pipeline_mode = #tpu.pipeline_mode<synchronous>, transform_indices = @transform_4, window_bounds = array<i64: 1, 45>}, {pipeline_mode = #tpu.pipeline_mode<synchronous>, transform_indices = @transform_5, window_bounds = array<i64: 27, 45>}, {pipeline_mode = #tpu.pipeline_mode<synchronous>, transform_indices = @transform_6, window_bounds = array<i64: 1, 45>}, {transform_indices = @transform_7, window_bounds = array<i64: 16, 48>}]} {
    %c0 = arith.constant 0 : index
    %c0_0 = arith.constant 0 : index
    %0 = vector.load %arg1[%c0, %c0_0] : memref<16x48xf32, #tpu.memory_space<vmem>>, vector<16x48xf32>
    %1 = vector.extract_strided_slice %0 {offsets = [0, 0], sizes = [16, 3], strides = [1, 1]} : vector<16x48xf32> to vector<16x3xf32>
    %2 = vector.extract_strided_slice %0 {offsets = [0, 3], sizes = [16, 45], strides = [1, 1]} : vector<16x48xf32> to vector<16x45xf32>
    %3 = tpu.iota {dimensions = array<i32: 0>} : vector<16x1xi32>
    %c4_i32 = arith.constant 4 : i32
    %c0_i32 = arith.constant 0 : i32
    %4 = arith.cmpi eq, %c4_i32, %c0_i32 : i32
    %c1_i32 = arith.constant 1 : i32
    %5 = arith.select %4, %c1_i32, %c4_i32 : i32
    %6 = vector.broadcast %5 : i32 to vector<16x1xi32>
    %7 = arith.remsi %3, %6 : vector<16x1xi32>
    %c0_i32_1 = arith.constant 0 : i32
    %8 = vector.broadcast %c0_i32_1 : i32 to vector<16x1xi32>
    %9 = arith.cmpi ne, %7, %8 : vector<16x1xi32>
    %c0_i32_2 = arith.constant 0 : i32
    %10 = vector.broadcast %c0_i32_2 : i32 to vector<16x1xi32>
    %11 = arith.cmpi slt, %7, %10 : vector<16x1xi32>
    %c0_i32_3 = arith.constant 0 : i32
    %12 = arith.cmpi slt, %5, %c0_i32_3 : i32
    %13 = vector.broadcast %12 : i1 to vector<16x1xi1>
    %14 = vector.broadcast %13 : vector<16x1xi1> to vector<16x1xi1>
    %15 = arith.xori %11, %14 : vector<16x1xi1>
    %16 = arith.andi %15, %9 : vector<16x1xi1>
    %17 = vector.broadcast %5 : i32 to vector<16x1xi32>
    %18 = arith.addi %7, %17 : vector<16x1xi32>
    %19 = arith.select %16, %18, %7 : vector<16x1xi1>, vector<16x1xi32>
    %c0_i32_4 = arith.constant 0 : i32
    %20 = vector.broadcast %c0_i32_4 : i32 to vector<16x1xi32>
    %21 = arith.cmpi ne, %19, %20 : vector<16x1xi32>
    %c3_i32 = arith.constant 3 : i32
    %22 = vector.broadcast %c3_i32 : i32 to vector<16x1xi32>
    %23 = arith.cmpi ne, %19, %22 : vector<16x1xi32>
    %24 = arith.truncf %2 : vector<16x45xf32> to vector<16x45xbf16>
    %cst = arith.constant 0.000000e+00 : bf16
    %25 = vector.broadcast %cst : bf16 to vector<16x45xbf16>
    %26 = tpu.concatenate %25, %24, %25 in 0 : vector<16x45xbf16>, vector<16x45xbf16>, vector<16x45xbf16> -> vector<48x45xbf16>
    %27 = vector.extract_strided_slice %26 {offsets = [11, 0], sizes = [16, 45], strides = [1, 1]} : vector<48x45xbf16> to vector<16x45xbf16>
    %cst_5 = arith.constant 0.000000e+00 : bf16
    %28 = vector.shape_cast %21 : vector<16x1xi1> to vector<16x1xi1>
    %29 = vector.broadcast %28 : vector<16x1xi1> to vector<16x45xi1>
    %30 = vector.broadcast %cst_5 : bf16 to vector<16x45xbf16>
    %31 = arith.select %29, %27, %30 : vector<16x45xi1>, vector<16x45xbf16>
    %32 = vector.extract_strided_slice %26 {offsets = [12, 0], sizes = [16, 45], strides = [1, 1]} : vector<48x45xbf16> to vector<16x45xbf16>
    %33 = vector.extract_strided_slice %26 {offsets = [13, 0], sizes = [16, 45], strides = [1, 1]} : vector<48x45xbf16> to vector<16x45xbf16>
    %cst_6 = arith.constant 0.000000e+00 : bf16
    %34 = vector.shape_cast %23 : vector<16x1xi1> to vector<16x1xi1>
    %35 = vector.broadcast %34 : vector<16x1xi1> to vector<16x45xi1>
    %36 = vector.broadcast %cst_6 : bf16 to vector<16x45xbf16>
    %37 = arith.select %35, %33, %36 : vector<16x45xi1>, vector<16x45xbf16>
    %38 = vector.extract_strided_slice %26 {offsets = [15, 0], sizes = [16, 45], strides = [1, 1]} : vector<48x45xbf16> to vector<16x45xbf16>
    %cst_7 = arith.constant 0.000000e+00 : bf16
    %39 = vector.shape_cast %21 : vector<16x1xi1> to vector<16x1xi1>
    %40 = vector.broadcast %39 : vector<16x1xi1> to vector<16x45xi1>
    %41 = vector.broadcast %cst_7 : bf16 to vector<16x45xbf16>
    %42 = arith.select %40, %38, %41 : vector<16x45xi1>, vector<16x45xbf16>
    %43 = vector.extract_strided_slice %26 {offsets = [16, 0], sizes = [16, 45], strides = [1, 1]} : vector<48x45xbf16> to vector<16x45xbf16>
    %44 = vector.extract_strided_slice %26 {offsets = [17, 0], sizes = [16, 45], strides = [1, 1]} : vector<48x45xbf16> to vector<16x45xbf16>
    %cst_8 = arith.constant 0.000000e+00 : bf16
    %45 = vector.shape_cast %23 : vector<16x1xi1> to vector<16x1xi1>
    %46 = vector.broadcast %45 : vector<16x1xi1> to vector<16x45xi1>
    %47 = vector.broadcast %cst_8 : bf16 to vector<16x45xbf16>
    %48 = arith.select %46, %44, %47 : vector<16x45xi1>, vector<16x45xbf16>
    %49 = vector.extract_strided_slice %26 {offsets = [19, 0], sizes = [16, 45], strides = [1, 1]} : vector<48x45xbf16> to vector<16x45xbf16>
    %cst_9 = arith.constant 0.000000e+00 : bf16
    %50 = vector.shape_cast %21 : vector<16x1xi1> to vector<16x1xi1>
    %51 = vector.broadcast %50 : vector<16x1xi1> to vector<16x45xi1>
    %52 = vector.broadcast %cst_9 : bf16 to vector<16x45xbf16>
    %53 = arith.select %51, %49, %52 : vector<16x45xi1>, vector<16x45xbf16>
    %54 = vector.extract_strided_slice %26 {offsets = [20, 0], sizes = [16, 45], strides = [1, 1]} : vector<48x45xbf16> to vector<16x45xbf16>
    %55 = vector.extract_strided_slice %26 {offsets = [21, 0], sizes = [16, 45], strides = [1, 1]} : vector<48x45xbf16> to vector<16x45xbf16>
    %cst_10 = arith.constant 0.000000e+00 : bf16
    %56 = vector.shape_cast %23 : vector<16x1xi1> to vector<16x1xi1>
    %57 = vector.broadcast %56 : vector<16x1xi1> to vector<16x45xi1>
    %58 = vector.broadcast %cst_10 : bf16 to vector<16x45xbf16>
    %59 = arith.select %57, %55, %58 : vector<16x45xi1>, vector<16x45xbf16>
    %60 = tpu.concatenate %31, %32, %37, %42, %43, %48, %53, %54, %59 in 1 : vector<16x45xbf16>, vector<16x45xbf16>, vector<16x45xbf16>, vector<16x45xbf16>, vector<16x45xbf16>, vector<16x45xbf16>, vector<16x45xbf16>, vector<16x45xbf16>, vector<16x45xbf16> -> vector<16x405xbf16>
    %c0_11 = arith.constant 0 : index
    %c0_12 = arith.constant 0 : index
    %61 = vector.load %arg2[%c0_11, %c0_12] : memref<405x3xbf16, #tpu.memory_space<vmem>>, vector<405x3xbf16>
    %cst_13 = arith.constant dense<0.000000e+00> : vector<16x3xf32>
    %62 = tpu.matmul %60, %61, %cst_13 {dimension_numbers = #tpu.dot_dimension_numbers<[1], [0], [0], [1], [0, 0, 1, 1], [], []>} : vector<16x405xbf16>, vector<405x3xbf16>, vector<16x3xf32> -> vector<16x3xf32>
    %63 = arith.addf %1, %62 : vector<16x3xf32>
    %c0_14 = arith.constant 0 : index
    %c0_15 = arith.constant 0 : index
    %64 = vector.load %arg3[%c0_14, %c0_15] : memref<1x3xf32, #tpu.memory_space<vmem>>, vector<1x3xf32>
    %65 = vector.broadcast %64 : vector<1x3xf32> to vector<16x3xf32>
    %66 = arith.addf %63, %65 : vector<16x3xf32>
    %67 = arith.truncf %66 : vector<16x3xf32> to vector<16x3xbf16>
    %cst_16 = arith.constant 0.000000e+00 : bf16
    %68 = vector.broadcast %cst_16 : bf16 to vector<16x3xbf16>
    %69 = tpu.concatenate %68, %67, %68 in 0 : vector<16x3xbf16>, vector<16x3xbf16>, vector<16x3xbf16> -> vector<48x3xbf16>
    %70 = vector.extract_strided_slice %69 {offsets = [11, 0], sizes = [16, 3], strides = [1, 1]} : vector<48x3xbf16> to vector<16x3xbf16>
    %cst_17 = arith.constant 0.000000e+00 : bf16
    %71 = vector.shape_cast %21 : vector<16x1xi1> to vector<16x1xi1>
    %72 = vector.broadcast %71 : vector<16x1xi1> to vector<16x3xi1>
    %73 = vector.broadcast %cst_17 : bf16 to vector<16x3xbf16>
    %74 = arith.select %72, %70, %73 : vector<16x3xi1>, vector<16x3xbf16>
    %75 = vector.extract_strided_slice %69 {offsets = [12, 0], sizes = [16, 3], strides = [1, 1]} : vector<48x3xbf16> to vector<16x3xbf16>
    %76 = vector.extract_strided_slice %69 {offsets = [13, 0], sizes = [16, 3], strides = [1, 1]} : vector<48x3xbf16> to vector<16x3xbf16>
    %cst_18 = arith.constant 0.000000e+00 : bf16
    %77 = vector.shape_cast %23 : vector<16x1xi1> to vector<16x1xi1>
    %78 = vector.broadcast %77 : vector<16x1xi1> to vector<16x3xi1>
    %79 = vector.broadcast %cst_18 : bf16 to vector<16x3xbf16>
    %80 = arith.select %78, %76, %79 : vector<16x3xi1>, vector<16x3xbf16>
    %81 = vector.extract_strided_slice %69 {offsets = [15, 0], sizes = [16, 3], strides = [1, 1]} : vector<48x3xbf16> to vector<16x3xbf16>
    %cst_19 = arith.constant 0.000000e+00 : bf16
    %82 = vector.shape_cast %21 : vector<16x1xi1> to vector<16x1xi1>
    %83 = vector.broadcast %82 : vector<16x1xi1> to vector<16x3xi1>
    %84 = vector.broadcast %cst_19 : bf16 to vector<16x3xbf16>
    %85 = arith.select %83, %81, %84 : vector<16x3xi1>, vector<16x3xbf16>
    %86 = vector.extract_strided_slice %69 {offsets = [16, 0], sizes = [16, 3], strides = [1, 1]} : vector<48x3xbf16> to vector<16x3xbf16>
    %87 = vector.extract_strided_slice %69 {offsets = [17, 0], sizes = [16, 3], strides = [1, 1]} : vector<48x3xbf16> to vector<16x3xbf16>
    %cst_20 = arith.constant 0.000000e+00 : bf16
    %88 = vector.shape_cast %23 : vector<16x1xi1> to vector<16x1xi1>
    %89 = vector.broadcast %88 : vector<16x1xi1> to vector<16x3xi1>
    %90 = vector.broadcast %cst_20 : bf16 to vector<16x3xbf16>
    %91 = arith.select %89, %87, %90 : vector<16x3xi1>, vector<16x3xbf16>
    %92 = vector.extract_strided_slice %69 {offsets = [19, 0], sizes = [16, 3], strides = [1, 1]} : vector<48x3xbf16> to vector<16x3xbf16>
    %cst_21 = arith.constant 0.000000e+00 : bf16
    %93 = vector.shape_cast %21 : vector<16x1xi1> to vector<16x1xi1>
    %94 = vector.broadcast %93 : vector<16x1xi1> to vector<16x3xi1>
    %95 = vector.broadcast %cst_21 : bf16 to vector<16x3xbf16>
    %96 = arith.select %94, %92, %95 : vector<16x3xi1>, vector<16x3xbf16>
    %97 = vector.extract_strided_slice %69 {offsets = [20, 0], sizes = [16, 3], strides = [1, 1]} : vector<48x3xbf16> to vector<16x3xbf16>
    %98 = vector.extract_strided_slice %69 {offsets = [21, 0], sizes = [16, 3], strides = [1, 1]} : vector<48x3xbf16> to vector<16x3xbf16>
    %cst_22 = arith.constant 0.000000e+00 : bf16
    %99 = vector.shape_cast %23 : vector<16x1xi1> to vector<16x1xi1>
    %100 = vector.broadcast %99 : vector<16x1xi1> to vector<16x3xi1>
    %101 = vector.broadcast %cst_22 : bf16 to vector<16x3xbf16>
    %102 = arith.select %100, %98, %101 : vector<16x3xi1>, vector<16x3xbf16>
    %103 = tpu.concatenate %74, %75, %80, %85, %86, %91, %96, %97, %102 in 1 : vector<16x3xbf16>, vector<16x3xbf16>, vector<16x3xbf16>, vector<16x3xbf16>, vector<16x3xbf16>, vector<16x3xbf16>, vector<16x3xbf16>, vector<16x3xbf16>, vector<16x3xbf16> -> vector<16x27xbf16>
    %c0_23 = arith.constant 0 : index
    %c0_24 = arith.constant 0 : index
    %104 = vector.load %arg4[%c0_23, %c0_24] : memref<27x45xbf16, #tpu.memory_space<vmem>>, vector<27x45xbf16>
    %cst_25 = arith.constant dense<0.000000e+00> : vector<16x45xf32>
    %105 = tpu.matmul %103, %104, %cst_25 {dimension_numbers = #tpu.dot_dimension_numbers<[1], [0], [0], [1], [0, 0, 1, 1], [], []>} : vector<16x27xbf16>, vector<27x45xbf16>, vector<16x45xf32> -> vector<16x45xf32>
    %c0_26 = arith.constant 0 : index
    %c0_27 = arith.constant 0 : index
    %106 = vector.load %arg5[%c0_26, %c0_27] : memref<1x45xf32, #tpu.memory_space<vmem>>, vector<1x45xf32>
    %107 = vector.broadcast %106 : vector<1x45xf32> to vector<16x45xf32>
    %108 = arith.addf %105, %107 : vector<16x45xf32>
    %c0_28 = arith.constant 0 : index
    %c0_29 = arith.constant 0 : index
    %109 = vector.load %arg6[%c0_28, %c0_29] : memref<27x45xbf16, #tpu.memory_space<vmem>>, vector<27x45xbf16>
    %cst_30 = arith.constant dense<0.000000e+00> : vector<16x45xf32>
    %110 = tpu.matmul %103, %109, %cst_30 {dimension_numbers = #tpu.dot_dimension_numbers<[1], [0], [0], [1], [0, 0, 1, 1], [], []>} : vector<16x27xbf16>, vector<27x45xbf16>, vector<16x45xf32> -> vector<16x45xf32>
    %c0_31 = arith.constant 0 : index
    %c0_32 = arith.constant 0 : index
    %111 = vector.load %arg7[%c0_31, %c0_32] : memref<1x45xf32, #tpu.memory_space<vmem>>, vector<1x45xf32>
    %112 = vector.broadcast %111 : vector<1x45xf32> to vector<16x45xf32>
    %113 = arith.addf %110, %112 : vector<16x45xf32>
    %cst_33 = arith.constant 5.000000e-01 : f32
    %114 = vector.broadcast %cst_33 : f32 to vector<16x45xf32>
    %115 = arith.mulf %114, %108 : vector<16x45xf32>
    %116 = math.tanh %115 : vector<16x45xf32>
    %cst_34 = arith.constant 1.000000e+00 : f32
    %117 = vector.broadcast %cst_34 : f32 to vector<16x45xf32>
    %118 = arith.mulf %117, %116 : vector<16x45xf32>
    %119 = math.exp %118 : vector<16x45xf32>
    %120 = arith.mulf %2, %119 : vector<16x45xf32>
    %121 = arith.addf %120, %113 : vector<16x45xf32>
    %122 = tpu.concatenate %66, %121 in 1 : vector<16x3xf32>, vector<16x45xf32> -> vector<16x48xf32>
    %c0_35 = arith.constant 0 : index
    %c0_36 = arith.constant 0 : index
    %123 = vector.load %arg8[%c0_35, %c0_36] : memref<16x48xf32, #tpu.memory_space<vmem>>, vector<16x48xf32>
    tpu.vector_store %arg8[%c0_35, %c0_36], %122 {strides = array<i32>} : memref<16x48xf32, #tpu.memory_space<vmem>>, vector<16x48xf32>,
    return
  }
  func.func @transform_0(%arg0: i32) -> (i32, i32) {
    %c0_i32 = arith.constant 0 : i32
    %c0_i32_0 = arith.constant 0 : i32
    return %arg0, %c0_i32 : i32, i32
  }
  func.func @transform_1(%arg0: i32) -> (i32, i32) {
    %c0_i32 = arith.constant 0 : i32
    %c0_i32_0 = arith.constant 0 : i32
    %c0_i32_1 = arith.constant 0 : i32
    return %c0_i32, %c0_i32_0 : i32, i32
  }
  func.func @transform_2(%arg0: i32) -> (i32, i32) {
    %c0_i32 = arith.constant 0 : i32
    %c0_i32_0 = arith.constant 0 : i32
    %c0_i32_1 = arith.constant 0 : i32
    return %c0_i32, %c0_i32_0 : i32, i32
  }
  func.func @transform_3(%arg0: i32) -> (i32, i32) {
    %c0_i32 = arith.constant 0 : i32
    %c0_i32_0 = arith.constant 0 : i32
    %c0_i32_1 = arith.constant 0 : i32
    return %c0_i32, %c0_i32_0 : i32, i32
  }
  func.func @transform_4(%arg0: i32) -> (i32, i32) {
    %c0_i32 = arith.constant 0 : i32
    %c0_i32_0 = arith.constant 0 : i32
    %c0_i32_1 = arith.constant 0 : i32
    return %c0_i32, %c0_i32_0 : i32, i32
  }
  func.func @transform_5(%arg0: i32) -> (i32, i32) {
    %c0_i32 = arith.constant 0 : i32
    %c0_i32_0 = arith.constant 0 : i32
    %c0_i32_1 = arith.constant 0 : i32
    return %c0_i32, %c0_i32_0 : i32, i32
  }
  func.func @transform_6(%arg0: i32) -> (i32, i32) {
    %c0_i32 = arith.constant 0 : i32
    %c0_i32_0 = arith.constant 0 : i32
    %c0_i32_1 = arith.constant 0 : i32
    return %c0_i32, %c0_i32_0 : i32, i32
  }
  func.func @transform_7(%arg0: i32) -> (i32, i32) {
    %c0_i32 = arith.constant 0 : i32
    %c0_i32_0 = arith.constant 0 : i32
    return %arg0, %c0_i32 : i32, i32
  }
}

</mosaic_0001>

<bundles_post_ra>
// kernel: invnn_forward.4
= control target key start
LH: loop header
LB: loop body
LE: loop exit
PB: predicated region body
PF: predicated region fallthrough
CT: control target
= control target key end

     0   :  { %s436_s9 = smov 0   ;;  %s475_s0 = inlined_call_operand.vmem [shape: f32[128,12], index: 0, kind: input, shape index: {}]   ;;  %s476_s1 = inlined_call_operand.vmem [shape: f32[12,12], index: 1, kind: input, shape index: {}]   ;;  %s477_s2 = inlined_call_operand.vmem [shape: f32[128,12], index: 2, kind: output, shape index: {}]  }
   0x1 LB: > { %s355_s10 = sadd.s32 4294967295, %s419_s9   ;;  %p359_p0 = scmp.ge.s32.totalorder %s419_s9, 1  ;;  %s419_s9 = sphi %s436_s9, %s12_s9  }
   0x2   : > { %p113_p1 = scmp.lt.s32.totalorder %s419_s9, 3 }
   0x4   : > { %p114_p2 = pnand %p359_p0, %p113_p1 }
   0x5   : > { %s360_s15 = sshll.u32 (!%p114_p2), %s355_s10, 3 }
   0x6   : > { %117 = sbr.rel (%p114_p2) target bundleno = 217 (0xd9), region = 28  ;;  %p136_p3 = scmp.lt.s32.totalorder (!%p114_p2), %s360_s15, 15 }
   0xb   : > { %v156_v0 = vld [vmem:[%s476_s1 + $0x8] sm:$0xf]  ;;  %vm182_vm0 = vcmask 1043456   ;;  %v155_v1 = vld [vmem:[%s476_s1] sm:$0xff]  ;;  %s479_s15 = smov (!%p136_p3, %s360_s15), 15  ;;  %vm157_vm1 = vcmask 97280  }
   0xc   : > { %385 = vmatprep.subr.msk.mxu0 %vm182_vm0, %v156_v0  ;;  %401 = vmatprep.subr.msk.mxu1 %vm182_vm0, %v156_v0  ;;  %s361_s16 = sshll.u32 %s479_s15, 3 }
   0xd   : > { %386 = vmatpush3.msk.msra.mxu0 %vm182_vm0, %v156_v0  ;;  %403 = vmatpush3.msk.msra.mxu1 %vm182_vm0, %v156_v0  ;;  %s139_s19 = scalar_lea.vmem %s475_s0, %s361_s16  ;;  %s145_s22 = scalar_lea.vmem %s477_s2, %s361_s16 }
   0xe   : > { %387 = vmatprep.subr.mxu0 %v155_v1  ;;  %402 = vmatprep.subr.mxu1 %v155_v1  ;;  %v147_v2 = vld [vmem:[%s139_s19] sm:$0xff]  ;;  %v148_v4 = vld [vmem:[%s139_s19 + $0x8] sm:$0xff]  ;;  %v149_v6 = vld [vmem:[%s139_s19 + $0x10] sm:$0xff] }
   0xf   : > { %388 = vmatpush3.msra.mxu0 %v155_v1  ;;  %404 = vmatpush3.msra.mxu1 %v155_v1  ;;  %v151_v3 = vld [vmem:[%s139_s19 + $0x20] sm:$0xff]  ;;  %v152_v5 = vld [vmem:[%s139_s19 + $0x28] sm:$0xff]  ;;  %v153_v7 = vld [vmem:[%s139_s19 + $0x30] sm:$0xff] }
  0x10   : > { %389 = vmatprep.mubr.msk.f32.mxu0 %vm157_vm1, %v147_v2  ;;  %395 = vmatprep.mubr.msk.f32.mxu1 %vm157_vm1, %v151_v3  ;;  %v150_v8 = vld [vmem:[%s139_s19 + $0x18] sm:$0xff] }
  0x11   : > { %390 = vmatmul.mubr.msk.f32.vlgmr.msra.gmra.mxu0 %vm157_vm1, %v148_v4  ;;  %396 = vmatmul.mubr.msk.f32.vlgmr.msra.gmra.mxu1 %vm157_vm1, %v152_v5  ;;  %v154_v9 = vld [vmem:[%s139_s19 + $0x38] sm:$0xff] }
  0x12   : > { %392 = vmatprep.mubr.msk.f32.mxu0 %vm157_vm1, %v149_v6  ;;  %398 = vmatprep.mubr.msk.f32.mxu1 %vm157_vm1, %v153_v7 }
  0x15   : > { %393 = vmatmul.mubr.msk.f32.gmra.mxu0 %vm157_vm1, %v150_v8  ;;  %399 = vmatmul.mubr.msk.f32.gmra.mxu1 %vm157_vm1, %v154_v9 }
  0xd1   : > { %v391_v10 = vpop.f32.mrf.mxu0  ;;  %v397_v11 = vpop.f32.mrf.mxu1 }
  0xd2   : > { %292 = vst.msk [vmem:[%s145_s22 + $0x8] sm:$0xff] %vm157_vm1, %v391_v10  ;;  %296 = vst.msk [vmem:[%s145_s22 + $0x28] sm:$0xff] %vm157_vm1, %v397_v11 }
  0xd3   : > { %v252_v12 = vpop.f32.mrf.mxu0  ;;  %v272_v13 = vpop.f32.mrf.mxu1 }
  0xd4   : > { %291 = vst.msk [vmem:[%s145_s22] sm:$0xff] %vm157_vm1, %v252_v12  ;;  %295 = vst.msk [vmem:[%s145_s22 + $0x20] sm:$0xff] %vm157_vm1, %v272_v13 }
  0xd5   : > { %v394_v14 = vpop.f32.mrf.mxu0  ;;  %v400_v15 = vpop.f32.mrf.mxu1 }
  0xd6   : > { %294 = vst.msk [vmem:[%s145_s22 + $0x18] sm:$0xff] %vm157_vm1, %v394_v14  ;;  %298 = vst.msk [vmem:[%s145_s22 + $0x38] sm:$0xff] %vm157_vm1, %v400_v15 }
  0xd7   : > { %v262_v16 = vpop.f32.mrf.mxu0  ;;  %v282_v17 = vpop.f32.mrf.mxu1 }
  0xd8   : > { %293 = vst.msk [vmem:[%s145_s22 + $0x10] sm:$0xff] %vm157_vm1, %v262_v16  ;;  %297 = vst.msk [vmem:[%s145_s22 + $0x30] sm:$0xff] %vm157_vm1, %v282_v17 }
  0xd9 PF: > { %s12_s9 = sadd.s32 1, %s419_s9  }
  0xda   : > { %p9_p4 = scmp.ge.s32.totalorder %s12_s9, 4  }
  0xdc   :  { %11 = sbr.rel (!%p9_p4) target bundleno = 1 (0x1), region = 58 }

// kernel: invnn_forward.6
= control target key start
LH: loop header
LB: loop body
LE: loop exit
PB: predicated region body
PF: predicated region fallthrough
CT: control target
= control target key end

     0   :  { %s362_s9 = smov 0   ;;  %s401_s0 = inlined_call_operand.vmem [shape: f32[32,48], index: 0, kind: input, shape index: {}]   ;;  %s402_s1 = inlined_call_operand.vmem [shape: f32[48,48], index: 1, kind: input, shape index: {}]   ;;  %s403_s2 = inlined_call_operand.vmem [shape: f32[32,48], index: 2, kind: output, shape index: {}]  }
   0x1 LB: > { %s295_s10 = sadd.s32 4294967295, %s345_s9   ;;  %p299_p0 = scmp.ge.s32.totalorder %s345_s9, 1  ;;  %s345_s9 = sphi %s362_s9, %s12_s9  }
   0x2   : > { %p113_p1 = scmp.lt.s32.totalorder %s345_s9, 3 }
   0x4   : > { %p114_p2 = pnand %p299_p0, %p113_p1 }
   0x5   : > { %s300_s15 = sshll.u32 (!%p114_p2), %s295_s10, 1 }
   0x6   : > { %117 = sbr.rel (%p114_p2) target bundleno = 220 (0xdc), region = 28  ;;  %p136_p3 = scmp.lt.s32.totalorder (!%p114_p2), %s300_s15, 3 }
   0xb   : > { %v154_v0 = vld [vmem:[%s402_s1 + $0x28] sm:$0xff]  ;;  %v153_v1 = vld [vmem:[%s402_s1 + $0x20] sm:$0xff]  ;;  %v152_v2 = vld [vmem:[%s402_s1 + $0x18] sm:$0xff]  ;;  %s405_s15 = smov (!%p136_p3, %s300_s15), 3  ;;  %vm155_vm0 = vcmask 392192  }
   0xc   : > { %316 = vmatprep.subr.mxu0 %v154_v0  ;;  %v151_v3 = vld [vmem:[%s402_s1 + $0x10] sm:$0xff]  ;;  %s301_s20 = sshll.u32 %s405_s15, 3  ;;  %v150_v4 = vld [vmem:[%s402_s1 + $0x8] sm:$0xff]  ;;  %v149_v6 = vld [vmem:[%s402_s1] sm:$0xff] }
   0xd   : > { %317 = vmatpush3.msra.mxu0 %v154_v0  ;;  %s139_s25 = scalar_lea.vmem %s401_s0, %s301_s20  ;;  %s145_s30 = scalar_lea.vmem %s403_s2, %s301_s20 }
   0xe   : > { %318 = vmatprep.subr.mxu0 %v153_v1  ;;  %v147_v5 = vld [vmem:[%s139_s25] sm:$0xff]  ;;  %v148_v7 = vld [vmem:[%s139_s25 + $0x8] sm:$0xff] }
   0xf   : > { %319 = vmatpush3.msra.mxu0 %v153_v1  ;;  %328 = vmatprep.mubr.msk.f32.mxu0 %vm155_vm0, %v147_v5 }
  0x10   : > { %320 = vmatprep.subr.mxu0 %v152_v2 }
  0x11   : > { %321 = vmatpush3.msra.mxu0 %v152_v2 }
  0x12   : > { %322 = vmatprep.subr.mxu0 %v151_v3 }
  0x13   : > { %323 = vmatpush3.msra.mxu0 %v151_v3 }
  0x14   : > { %324 = vmatprep.subr.mxu0 %v150_v4 }
  0x15   : > { %325 = vmatpush3.msra.mxu0 %v150_v4 }
  0x16   : > { %326 = vmatprep.subr.mxu0 %v149_v6 }
  0x17   : > { %327 = vmatpush3.msra.mxu0 %v149_v6 }
  0x18   : > { %329 = vmatmul.mubr.msk.f32.vlgmr.msra.gmra.mxu0 %vm155_vm0, %v148_v7 }
  0xd8   : > { %v330_v8 = vpop.f32.mrf.mxu0 }
  0xd9   : > { %238 = vst.msk [vmem:[%s145_s30 + $0x8] sm:$0xff] %vm155_vm0, %v330_v8 }
  0xda   : > { %v228_v9 = vpop.f32.mrf.mxu0 }
  0xdb   : > { %237 = vst.msk [vmem:[%s145_s30] sm:$0xff] %vm155_vm0, %v228_v9 }
  0xdc PF: > { %s12_s9 = sadd.s32 1, %s345_s9  }
  0xdd   : > { %p9_p4 = scmp.ge.s32.totalorder %s12_s9, 4  }
  0xdf   :  { %11 = sbr.rel (!%p9_p4) target bundleno = 1 (0x1), region = 58 }

// kernel: invnn_forward.7
= control target key start
LH: loop header
LB: loop body
LE: loop exit
PB: predicated region body
PF: predicated region fallthrough
CT: control target
= control target key end

     0   :  { %12 = vsyncpa [#allocation3], 0  ;;  %s1965_s0 = inlined_call_operand.vmem [shape: f32[32,48], index: 0, kind: input, shape index: {}]   ;;  %s1966_s1 = inlined_call_operand.vmem [shape: bf16[405,3], index: 1, kind: input, shape index: {}]   ;;  %s1967_s2 = inlined_call_operand.vmem [shape: f32[1,3], index: 2, kind: input, shape index: {}]   ;;  %s1968_s3 = inlined_call_operand.vmem [shape: bf16[27,45], index: 3, kind: input, shape index: {}]   ;;  %s1969_s4 = inlined_call_operand.vmem [shape: f32[1,45], index: 4, kind: input, shape index: {}]   ;;  %s1970_s5 = inlined_call_operand.vmem [shape: bf16[27,45], index: 5, kind: input, shape index: {}]   ;;  %s1971_s6 = inlined_call_operand.vmem [shape: f32[1,45], index: 6, kind: input, shape index: {}]   ;;  %s1972_s7 = inlined_call_operand.hbm [shape: f32[32,48], index: 7, kind: output, shape index: {}]  }
   0x1   :  { %14 = vsyncpa [#allocation3 + $0x1], 0  ;;  %s1567_s24 = smov 0   ;;  %s1569_s25 = smov 0  }
   0x2   :  { %s1571_s26 = smov 0   ;;  %s1573_s27 = smov 0  }
   0x3 LB: > { %s1588_s28 = sadd.s32 4294967295, %s1501_s27   ;;  %s1246_s29 = sadd.s32 4294967294, %s1501_s27   ;;  %s1501_s27 = sphi %s1573_s27, %s1984_s27   ;;  %s1497_s26 = sphi %s1571_s26, %s1983_s26   ;;  %s1493_s25 = sphi %s1569_s25, %s1982_s25   ;;  %s1489_s24 = sphi %s1567_s24, %s1981_s24  }
   0x4   : > { %s1592_s30 = sadd.s32 1, %s1501_s27   ;;  %s179_s8 = sadd.s32 1, %s1497_s26 }
   0x5   : > { %s176_s9 = ssub.s32 %s1501_s27, %s1592_s30  ;;  %p189_p0 = scmp.ne.s32.totalorder %s1497_s26, %s1493_s25 }
   0x6   : > { %p177_p1 = scmp.eq.s32.totalorder %s176_s9, 0  ;;  %p190_p2 = scmp.eq.s32.totalorder %s1588_s28, 1 }
   0x7   : > { %p195_p3 = scmp.ne.s32.totalorder %s1493_s25, %s1489_s24  ;;  %p196_p4 = scmp.eq.s32.totalorder %s1246_s29, 1 }
   0x8   : > { %s1603_s10 = scalar_select %p177_p1, %s1497_s26, %s179_s8  }
   0x9   : > { %p1605_p5 = por %p190_p2, %p189_p0  ;;  %p1609_p6 = por %p196_p4, %p195_p3 }
   0xa   : > { %p1249_p7 = scmp.ge.s32.totalorder %s1501_s27, 1  ;;  %p241_p8 = scmp.lt.s32.totalorder %s1501_s27, 3 }
   0xc   : > { %p242_p9 = pnand %p1249_p7, %p241_p8 }
   0xd   : > { %s1251_s13 = sshll.u32 (!%p242_p9), %s1588_s28, 1  ;;  %s1504_s18 = smov (!%p242_p9), 125  }
   0xe   : > { %245 = sbr.rel (%p242_p9) target bundleno = 1021 (0x3fd), region = 48  ;;  %p274_p10 = scmp.lt.s32.totalorder (!%p242_p9), %s1251_s13, 3 }
   0xf   : > { %s1505_s21 = smov (!%p242_p9), 7   ;;  %s1506_s22 = smov (!%p242_p9), 90  }
  0x10   : > { %s1507_s23 = smov (!%p242_p9), 97   ;;  %s1508_s16 = smov (!%p242_p9), 14  }
  0x11   : > { %s1509_s15 = smov (!%p242_p9), 52   ;;  %s1512_s19 = smov (!%p242_p9), 59  }
  0x12   : > { %s1514_s8 = smov (!%p242_p9), 6   ;;  %s1515_s9 = smov (!%p242_p9), 9  }
  0x13   : > { %v285_v0 = vlaneseq  ;;  %v1503_v1 = vmov 0   ;;  %s1986_s13 = smov (!%p274_p10, %s1251_s13), 3  ;;  %v1403_v17 = vld [vmem:[%s1966_s1 + $0x78] sm:$0xff]   ;;  %v1406_v28 = vld [vmem:[%s1966_s1 + $0x70] sm:$0xff]   ;;  %v1409_v34 = vld [vmem:[%s1966_s1 + $0x68] sm:$0xff]   ;;  %vm412_vm11 = vcmask 1045504  }
  0x14   : > { %824 = vmatprep.subr.bf16.mxu1 %v1503_v1  ;;  %s1252_s14 = sshll.u32 %s1986_s13, 3  ;;  %v1404_v18 = vld [vmem:[%s1966_s1 + $0xb8] sm:$0xff]   ;;  %1297 = vmatprep.subr.bf16.mxu0 %v1403_v17  ;;  %v1407_v29 = vld [vmem:[%s1966_s1 + $0xb0] sm:$0xff]   ;;  %v1410_v35 = vld [vmem:[%s1966_s1 + $0xa8] sm:$0xff]   ;;  %v1703_v50 = vrot.slane %v1503_v1, 2  ;;  %v1723_v57 = vrot.slane %v1503_v1, 3 }
  0x15   : > { %v286_v2 = vshrl.u32 %v285_v0, 7  ;;  %s277_s17 = scalar_lea.vmem %s1965_s0, %s1252_s14  ;;  %v1405_v19 = vld [vmem:[%s1966_s1 + $0x38] sm:$0xff]   ;;  %825 = vmatpush1.bf16.msra.mxu1 %v1404_v18  ;;  %v1408_v30 = vld [vmem:[%s1966_s1 + $0x30] sm:$0xff]   ;;  %v1411_v36 = vld [vmem:[%s1966_s1 + $0x28] sm:$0xff]   ;;  %vm426_vm13 = vcmask 1044480   ;;  %vm435_vm14 = vcmask 1043456  }
  0x16   : > { %v1620_v6 = vld [vmem:[%s277_s17] sm:$0xff]  ;;  %v1622_v7 = vld [vmem:[%s277_s17 + $0x8] sm:$0xff]  ;;  %1298 = vmatpush3.bf16.msra.mxu0 %v1405_v19  ;;  %826 = vmatprep.subr.bf16.mxu1 %v1503_v1  ;;  %v1415_v51 = vld [vmem:[%s1966_s1 + $0x58] sm:$0xff]   ;;  %vm403_vm15 = vcmask 1046528   ;;  %s1516_s13 = smov 15   ;;  %s1517_s14 = smov 18  }
  0x17   : > { %v287_v3 = vadd.s32 8, %v286_v2  ;;  %v292_v4 = vand.u32 3, %v286_v2  ;;  %v316_v8 = vpack.c.bf16 %v1622_v7, %v1620_v6  ;;  %1299 = vmatprep.subr.bf16.mxu0 %v1406_v28  ;;  %v1412_v40 = vld [vmem:[%s1966_s1 + $0x60] sm:$0xff]   ;;  %v1416_v52 = vld [vmem:[%s1966_s1 + $0x98] sm:$0xff]   ;;  %v1418_v58 = vld [vmem:[%s1966_s1 + $0x50] sm:$0xff]   ;;  %v1739_v2 = vrot.slane %v1503_v1, 4 }
  0x18   : > { %v1413_v41 = vld [vmem:[%s1966_s1 + $0xa0] sm:$0xff]   ;;  %v1417_v53 = vld [vmem:[%s1966_s1 + $0x18] sm:$0xff]   ;;  %v1419_v59 = vld [vmem:[%s1966_s1 + $0x90] sm:$0xff]   ;;  %s1523_s20 = smov 24  }
  0x19   : > { %v299_v5 = vand.u32 3, %v287_v3  ;;  %vm312_vm0 = vcmp.ne.s32.totalorder %v292_v4, 0  ;;  %318 = vrot.lane.b32.xlu0 %v316_v8, %s1504_s18  ;;  %vm314_vm4 = vcmp.ne.s32.totalorder %v292_v4, 3  ;;  %827 = vmatpush1.bf16.msra.mxu1 %v1407_v29  ;;  %v1414_v42 = vld [vmem:[%s1966_s1 + $0x20] sm:$0xff]   ;;  %v1420_v63 = vld [vmem:[%s1966_s1 + $0x10] sm:$0xff]   ;;  %v1742_v3 = vrot.slane %v1503_v1, 1 }
  0x1a   : > { %vm325_vm1 = vmpackc.low %vm312_vm0, %vm312_vm0  ;;  %1300 = vmatpush3.bf16.msra.mxu0 %v1408_v30  ;;  %828 = vmatprep.subr.bf16.mxu1 %v1503_v1  ;;  %vm381_vm0 = vsmask.f32 7424  ;;  %v1423_v17 = vld [vmem:[%s1966_s1 + $0x8] sm:$0xff]   ;;  %s270_s18 = sand.u32 1, %s1493_s25  }
  0x1b   : > { %vm313_vm2 = vcmp.ne.s32.totalorder %v299_v5, 0  ;;  %v327_v9 = vsel %vm325_vm1, 65537, %v1503_v1  ;;  %vm315_vm5 = vcmp.ne.s32.totalorder %v299_v5, 3  ;;  %vm346_vm6 = vmpackc.low %vm314_vm4, %vm314_vm4  ;;  %1301 = vmatprep.subr.bf16.mxu0 %v1409_v34  ;;  %v1427_v28 = vld [vmem:[%s1966_s1 + $0xc8] ss:$0 sps:$4 sm:$0x77]  }
  0x1c   : > { %vm326_vm3 = vmpackc.low %vm313_vm2, %vm313_vm2  ;;  %v348_v20 = vsel %vm346_vm6, 65537, %v1503_v1  ;;  %vm776_vm2 = vcmask 1041408   ;;  %vm1973_vm4 = vsmask.f32 3328  ;;  %vm480_vm6 = vcmask 424960  }
  0x1d   : > { %v328_v10 = vsel %vm326_vm3, 65537, %v1503_v1  ;;  %vm347_vm7 = vmpackc.low %vm315_vm5, %vm315_vm5  ;;  %829 = vmatpush1.bf16.msra.mxu1 %v1410_v35  ;;  %vm1974_vm3 = vcmask 1042432   ;;  %vm475_vm5 = vcmask 56320  }
  0x1e   : > { %v1253_v11 = vcombine.low %v327_v9, %v328_v10  ;;  %v349_v21 = vsel %vm347_vm7, 65537, %v1503_v1  ;;  %1302 = vmatpush3.bf16.msra.mxu0 %v1411_v36  ;;  %830 = vmatprep.subr.bf16.mxu1 %v1503_v1  ;;  %vm464_vm7 = vcmask 367616  }
  0x1f   : > { %v1254_v22 = vcombine.low %v348_v20, %v349_v21  ;;  %1303 = vmatprep.subr.bf16.mxu0 %v1412_v40  ;;  %v1424_v21 = vld [vmem:[%s1966_s1 + $0x40] sm:$0xff]  }
  0x20   : > { %v333_v12 = vshrl.u32 %v1253_v11, 16  ;;  %v336_v13 = vshll.u32 %v1253_v11, 16  ;;  %v1428_v40 = vld [vmem:[%s1966_s1 + $0xc0] sm:$0xff]  }
  0x21   : > { %v1642_v23 = vshrl.u32 %v1254_v22, 16  ;;  %v1644_v24 = vshll.u32 %v1254_v22, 16  ;;  %831 = vmatpush1.bf16.msra.mxu1 %v1413_v41  ;;  %v1425_v22 = vld [vmem:[%s1966_s1 + $0x80] sm:$0xff]  }
  0x22   : > { %v335_v14 = vrot.slane %v333_v12, 2  ;;  %v338_v15 = vrot.slane %v336_v13, 3  ;;  %v363_v25 = vrot.slane %v336_v13, 1  ;;  %v371_v38 = vrot.slane %v333_v12, 6  ;;  %1304 = vmatpush3.bf16.msra.mxu0 %v1414_v42  ;;  %832 = vmatprep.subr.bf16.mxu1 %v1503_v1 }
  0x23   : > { %v356_v26 = vrot.slane %v1642_v23, 1  ;;  %v359_v27 = vrot.slane %v1644_v24, 2  ;;  %v367_v31 = vrot.slane %v1642_v23, 7  ;;  %v372_v39 = vrot.slane %v336_v13, 7  ;;  %1305 = vmatprep.subr.bf16.mxu0 %v1415_v51 }
  0x24   : > { %v1628_v16 = vor.u32 %v338_v15, %v335_v14  ;;  %v1658_v32 = vor.u32 %v363_v25, %v333_v12  ;;  %v376_v4 = vrot.slane %v1642_v23, 5  ;;  %v377_v5 = vrot.slane %v1644_v24, 6  ;;  %v1421_v14 = vld [vmem:[%s1966_s1 + $0x48] sm:$0xff]   ;;  %v1426_v25 = vld [vmem:[%s1966_s1] sm:$0xff]  }
  0x25   : > { %v1660_v33 = vor.u32 %v359_v27, %v356_v26  ;;  %v1673_v37 = vor.u32 %v367_v31, %v1644_v24  ;;  %v1690_v44 = vor.u32 %v372_v39, %v371_v38  ;;  %833 = vmatpush1.bf16.msra.mxu1 %v1416_v52  ;;  %v1422_v15 = vld [vmem:[%s1966_s1 + $0x88] sm:$0xff]   ;;  %v1772_v24 = vrot.slane %v1503_v1, 5 }
  0x26   : > { %vm365_vm8 = vcmp.ne.s16.totalorder %v1658_v32, 0  ;;  %1306 = vmatpush3.bf16.msra.mxu0 %v1417_v53  ;;  %834 = vmatprep.subr.bf16.mxu1 %v1503_v1  ;;  %v1752_v13 = vor.u32 %v377_v5, %v376_v4  ;;  %v1511_v31 = vmov 65535  }
  0x27   : > { %vm361_vm9 = vcmp.ne.s16.totalorder %v1660_v33, 0  ;;  %vm369_vm10 = vcmp.ne.s16.totalorder %v1673_v37, 0  ;;  %vm374_vm12 = vcmp.ne.s16.totalorder %v1690_v44, 0  ;;  %1307 = vmatprep.subr.bf16.mxu0 %v1418_v58  ;;  %v1784_v29 = vor.u32 %v1772_v24, %v1739_v2 }
  0x28   : > { %vm1975_vm1 = vcmp.ne.s16.totalorder %v1752_v13, 0  ;;  %v778_v34 = vsel %vm776_vm2, 4294967295, %v1511_v31  ;;  %vm484_vm2 = vcmask 793600  }
  0x29   : > { %835 = vmatpush1.bf16.msra.mxu1 %v1419_v59  ;;  %v779_v35 = vsel %vm1974_vm3, %v778_v34, 0 }
  0x2a   : > { %1308 = vmatpush3.bf16.msra.mxu0 %v1420_v63  ;;  %836 = vmatprep.subr.bf16.mxu1 %v1503_v1  ;;  %v781_v36 = vand.u32 %v1427_v28, %v779_v35 }
  0x2b   : > { %1309 = vmatprep.subr.bf16.mxu0 %v1421_v14 }
  0x2d   : > { %837 = vmatpush1.bf16.msra.mxu1 %v1422_v15 }
  0x2e   : > { %1310 = vmatpush3.bf16.msra.mxu0 %v1423_v17  ;;  %838 = vmatprep.subr.bf16.mxu1 %v1503_v1 }
  0x2f   : > { %1311 = vmatprep.subr.bf16.mxu0 %v1424_v21 }
  0x31   : > { %839 = vmatpush1.bf16.msra.mxu1 %v1425_v22 }
  0x32   : > { %1312 = vmatpush3.bf16.msra.mxu0 %v1426_v25  ;;  %852 = vmatprep.subr.bf16.mxu1 %v1503_v1 }
  0x35   : > { %853 = vmatpush2.bf16.msra.mxu1 %v781_v36 }
  0x36   : > { %854 = vmatprep.subr.bf16.mxu1 %v1503_v1 }
  0x39   : > { %855 = vmatpush2.bf16.msra.mxu1 %v1428_v40 }
  0x8b   : > { %v1687_v43 = vpop.permute.xlu0 %318 }
  0x8c   : > { %v366_v45 = vsel %vm365_vm8, %v1687_v43, 0  ;;  %v362_v46 = vsel %vm361_vm9, %v1687_v43, 0  ;;  %v370_v49 = vsel %vm369_vm10, %v1687_v43, 0  ;;  %v375_v56 = vsel %vm374_vm12, %v1687_v43, 0 }
  0x8d   : > { %v414_v47 = vrot.slane %v366_v45, 2  ;;  %v405_v48 = vrot.slane %v362_v46, 1  ;;  %v427_v54 = vrot.slane %v370_v49, 3  ;;  %v436_v60 = vrot.slane %v375_v56, 4 }
  0x8e   : > { %v390_v61 = vshll.u32 %v1687_v43, 16  ;;  %v394_v62 = vshrl.u32 %v1687_v43, 16  ;;  %v380_v30 = vsel %vm1975_vm1, %v1687_v43, 0  ;;  %vm489_vm1 = vcmask 113664  }
  0x8f   : > { %418 = vrot.lane.b32.xlu0 %v414_v47, %s1505_s21  ;;  %409 = vrot.lane.b32.xlu1 %v405_v48, %s1506_s22  ;;  %v415_v55 = vsel %vm412_vm11, %v1703_v50, %v414_v47  ;;  %v429_v0 = vsel %vm426_vm13, %v427_v54, %v1723_v57  ;;  %v438_v10 = vsel %vm435_vm14, %v436_v60, %v1739_v2  ;;  %v457_v38 = vrot.slane %v380_v30, 5 }
  0x90   : > { %v420_v8 = vrot.slane %v394_v62, 2  ;;  %v421_v9 = vrot.slane %v390_v61, 3  ;;  %v406_v11 = vsel %vm403_vm15, %v1742_v3, %v405_v48  ;;  %v392_v12 = vrot.slane %v390_v61, 1 }
  0x91   : > { %v444_v19 = vrot.slane %v394_v62, 4  ;;  %v445_v20 = vrot.slane %v390_v61, 5  ;;  %v459_v41 = vsel %vm1974_vm3, %v457_v38, %v1772_v24  ;;  %vm340_vm3 = vcmp.ne.s16.totalorder %v1628_v16, 0 }
  0x92   : > { %v422_v18 = vor.u32 %v421_v9, %v420_v8  ;;  %v393_v23 = vsel %vm381_vm0, %v1742_v3, %v392_v12  ;;  %v396_v26 = vor.u32 %v394_v62, %v392_v12 }
  0x93   : > { %430 = vrot.lane.b32.xlu0 %v427_v54, %s1507_s23  ;;  %416 = vrot.lane.b32.xlu1 %v415_v55, %s1505_s21  ;;  %v446_v27 = vor.u32 %v445_v20, %v444_v19 }
  0x95   : > { %v450_v39 = vsel %vm1973_vm4, %v446_v27, %v1784_v29  ;;  %vm470_vm4 = vcmask 736256  }
  0x97   : > { %439 = vrot.lane.b32.xlu0 %v436_v60, %s1508_s16  ;;  %432 = vrot.lane.b32.xlu1 %v429_v0, %s1507_s23  ;;  %s1513_s23 = smov 104  }
  0x9b   : > { %441 = vrot.lane.b32.xlu1 %v438_v10, %s1508_s16  ;;  %407 = vrot.lane.b32.xlu0 %v406_v11, %s1506_s22  ;;  %s1510_s16 = smov 45   ;;  %v341_v11 = vsel %vm340_vm3, %v1687_v43, 0 }
  0x9f   : > { %423 = vrot.lane.b32.xlu1 %v422_v18, %s1509_s15  ;;  %397 = vrot.lane.b32.xlu0 %v393_v23, %s1510_s16  ;;  %s1518_s15 = smov 3  }
  0xa3   : > { %399 = vrot.lane.b32.xlu1 %v396_v26, %s1510_s16  ;;  %451 = vrot.lane.b32.xlu0 %v446_v27, %s1512_s19  ;;  %s1520_s16 = smov 21  }
  0xa7   : > { %453 = vrot.lane.b32.xlu1 %v450_v39, %s1512_s19  ;;  %460 = vrot.lane.b32.xlu0 %v457_v38, %s1513_s23  ;;  %s1521_s19 = smov 12  }
  0xab   : > { %462 = vrot.lane.b32.xlu1 %v459_v41, %s1513_s23  ;;  %s1296_s23 = sshll.u32 %s1588_s28, 8  ;;  %s1925_s28 = scalar_lea.sflag [#allocation3], %s270_s18 }
  0xac   : > { %s1919_s29 = scalar_lea.hbm %s1972_s7, %s1296_s23 }
 0x101   : > { %v419_v42 = vpop.permute.xlu0 %418  ;;  %v410_v45 = vpop.permute.xlu1 %409 }
 0x102   : > { %v479_v53 = vsel %vm475_vm5, %v410_v45, %v419_v42 }
 0x105   : > { %v431_v46 = vpop.permute.xlu0 %430  ;;  %v417_v47 = vpop.permute.xlu1 %416 }
 0x109   : > { %v440_v48 = vpop.permute.xlu0 %439  ;;  %v433_v49 = vpop.permute.xlu1 %432 }
 0x10a   : > { %v491_v19 = vsel %vm489_vm1, %v431_v46, %v440_v48 }
 0x10d   : > { %v442_v51 = vpop.permute.xlu1 %441  ;;  %v408_v52 = vpop.permute.xlu0 %407 }
 0x10e   : > { %v477_v1 = vsel %vm475_vm5, %v408_v52, %v417_v47  ;;  %vm494_vm5 = vcmask 482304  }
 0x111   : > { %v424_v54 = vpop.permute.xlu1 %423  ;;  %v398_v55 = vpop.permute.xlu0 %397 }
 0x112   : > { %v482_v56 = vsel %vm480_vm6, %v477_v1, %v424_v54  ;;  %v483_v58 = vsel %vm480_vm6, %v479_v53, %v424_v54  ;;  %v466_v59 = vsel %vm464_vm7, 0, %v398_v55  ;;  %vm499_vm6 = vcmask 850944  }
 0x113   : > { %v486_v60 = vsel %vm484_vm2, %v482_v56, %v431_v46  ;;  %v488_v61 = vsel %vm484_vm2, %v483_v58, %v433_v49  ;;  %v472_v62 = vsel %vm470_vm4, %v466_v59, %v408_v52  ;;  %vm555_vm2 = vsmask.f32 2304 }
 0x114   : > { %v571_v63 = vshrl.u32 %v486_v60, 16  ;;  %v574_v0 = vshll.u32 %v486_v60, 16  ;;  %v578_v4 = vshrl.u32 %v488_v61, 16  ;;  %v581_v5 = vshll.u32 %v488_v61, 16 }
 0x115   : > { %v556_v8 = vshrl.u32 %v472_v62, 16  ;;  %v559_v9 = vshll.u32 %v472_v62, 16  ;;  %v400_v10 = vpop.permute.xlu1 %399  ;;  %v452_v12 = vpop.permute.xlu0 %451  ;;  %v493_v46 = vsel %vm489_vm1, %v433_v49, %v442_v51  ;;  %vm772_vm1 = vcmask 171008  }
 0x116   : > { %v573_v14 = vrot.slane %v571_v63, 5  ;;  %v576_v15 = vrot.slane %v574_v0, 6  ;;  %v580_v17 = vrot.slane %v578_v4, 5  ;;  %v583_v18 = vrot.slane %v581_v5, 6 }
 0x117   : > { %v558_v20 = vrot.slane %v556_v8, 5  ;;  %v469_v21 = vsel %vm464_vm7, %v341_v11, %v400_v10  ;;  %v561_v22 = vrot.slane %v559_v9, 6  ;;  %v496_v43 = vsel %vm494_vm5, %v491_v19, %v452_v12 }
 0x118   : > { %v474_v23 = vsel %vm470_vm4, %v469_v21, %v410_v45  ;;  %v577_v25 = vor.u32 %v576_v15, %v573_v14  ;;  %v584_v26 = vor.u32 %v583_v18, %v580_v17  ;;  %vm968_vm4 = vcmask 146432  }
 0x119   : > { %v563_v27 = vshrl.u32 %v474_v23, 16  ;;  %v566_v28 = vshll.u32 %v474_v23, 16  ;;  %v454_v30 = vpop.permute.xlu1 %453  ;;  %v461_v34 = vpop.permute.xlu0 %460  ;;  %v562_v47 = vor.u32 %v561_v22, %v558_v20  ;;  %vm1019_vm7 = vcmask 220160  }
 0x11a   : > { %v501_v35 = vsel %vm499_vm6, %v496_v43, %v461_v34  ;;  %v601_v36 = vshrl.u32 %v461_v34, 16  ;;  %v604_v38 = vshll.u32 %v461_v34, 16  ;;  %v585_v45 = vsel %vm555_vm2, %v577_v25, %v584_v26 }
 0x11b   : > { %v565_v39 = vrot.slane %v563_v27, 5  ;;  %v568_v40 = vrot.slane %v566_v28, 6  ;;  %v586_v41 = vshrl.u32 %v501_v35, 16  ;;  %v589_v42 = vshll.u32 %v501_v35, 16  ;;  %815 = vmatprep.mubr.bf16.mxu0 %v585_v45  ;;  %v1282_v28 = vld [vmem:[%s1967_s2] ss:$0 sm:$0xff] }
 0x11c   : > { %v498_v48 = vsel %vm494_vm5, %v493_v46, %v454_v30  ;;  %v603_v52 = vrot.slane %v601_v36, 5  ;;  %v606_v53 = vrot.slane %v604_v38, 6  ;;  %vm1167_vm5 = vcmask 392192  }
 0x11d   : > { %v463_v1 = vpop.permute.xlu1 %462  ;;  %v569_v54 = vor.u32 %v568_v40, %v565_v39  ;;  %v588_v55 = vrot.slane %v586_v41, 5  ;;  %v591_v60 = vrot.slane %v589_v42, 6 }
 0x11e   : > { %v503_v56 = vsel %vm499_vm6, %v498_v48, %v463_v1  ;;  %v608_v58 = vshrl.u32 %v463_v1, 16  ;;  %v611_v59 = vshll.u32 %v463_v1, 16  ;;  %v607_v5 = vor.u32 %v606_v53, %v603_v52 }
 0x11f   : > { %v593_v61 = vshrl.u32 %v503_v56, 16  ;;  %v596_v62 = vshll.u32 %v503_v56, 16  ;;  %v570_v49 = vsel %vm555_vm2, %v562_v47, %v569_v54  ;;  %v592_v9 = vor.u32 %v591_v60, %v588_v55 }
 0x120   : > { %v610_v51 = vrot.slane %v608_v58, 5  ;;  %v613_v63 = vrot.slane %v611_v59, 6  ;;  %816 = vmatmul.mubr.bf16.vlgmr.msra.gmra.mxu0 %v570_v49  ;;  %v1025_v58 = vsel %vm426_vm13, 4294967295, %v1511_v31  ;;  %v1519_v60 = vmov 0.0  }
 0x121   : > { %v595_v0 = vrot.slane %v593_v61, 5  ;;  %v598_v4 = vrot.slane %v596_v62, 6  ;;  %1325 = vmatprep.subr.bf16.mxu0 %v1519_v60 }
 0x122   : > { %v614_v8 = vor.u32 %v613_v63, %v610_v51  ;;  %v1430_v51 = vld [vmem:[%s1968_s3] sm:$0xff]  }
 0x123   : > { %v599_v10 = vor.u32 %v598_v4, %v595_v0 }
 0x124   : > { %v615_v11 = vsel %vm555_vm2, %v607_v5, %v614_v8 }
 0x125   : > { %1281 = vmatprep.mubr.msk.bf16.mxu1 %vm772_vm1, %v615_v11  ;;  %v600_v12 = vsel %vm555_vm2, %v592_v9, %v599_v10 }
 0x126   : > { %857 = vmatmul.mubr.bf16.vlgmr.msra.gmra.mxu1 %v600_v12 }
 0x1e0   : > { %v1313_v14 = vpop.f32.mrf.mxu0 }
 0x1e2   : > { %v1314_v15 = vpop.f32.mrf.mxu0 }
 0x1e3   : > { %v1315_v18 = vadd.f32 %v1314_v15, %v1313_v14 }
 0x1e4   : > { %v1316_v17 = vpop.f32.mrf.mxu0 }
 0x1e6   : > { %v1317_v19 = vpop.f32.mrf.mxu0  ;;  %v858_v20 = vpop.f32.mrf.mxu1 }
 0x1e7   : > { %v859_v21 = vadd.f32 %v1315_v18, %v858_v20  ;;  %v1318_v23 = vadd.f32 %v1317_v19, %v1316_v17 }
 0x1e8   : > { %v860_v22 = vpop.f32.mrf.mxu1 }
 0x1e9   : > { %v865_v26 = vadd.f32 %v859_v21, %v1620_v6 }
 0x1ea   : > { %v861_v25 = vpop.f32.mrf.mxu1 }
 0x1eb   : > { %v862_v27 = vadd.f32 %v1318_v23, %v861_v25  ;;  %v1824_v34 = vadd.f32 %v1282_v28, %v865_v26 }
 0x1ec   : > { %v863_v43 = vpop.f32.mrf.mxu1 }
 0x1ed   : > { %v866_v30 = vadd.f32 %v862_v27, %v1622_v7 }
 0x1ef   : > { %v1826_v35 = vadd.f32 %v1282_v28, %v866_v30 }
 0x1f1   : > { %v1830_v36 = vpack.c.bf16 %v1826_v35, %v1824_v34 }
 0x1f3   : > { %v878_v38 = vsel %vm361_vm9, %v1830_v36, 0  ;;  %v879_v39 = vsel %vm365_vm8, %v1830_v36, 0  ;;  %v880_v46 = vsel %vm369_vm10, %v1830_v36, 0  ;;  %v881_v32 = vsel %vm374_vm12, %v1830_v36, 0 }
 0x1f4   : > { %v896_v40 = vrot.slane %v878_v38, 1  ;;  %v903_v42 = vrot.slane %v879_v39, 2  ;;  %v915_v45 = vrot.slane %v880_v46, 3  ;;  %v884_v47 = vshll.u32 %v1830_v36, 16 }
 0x1f5   : > { %v922_v37 = vrot.slane %v881_v32, 4  ;;  %v888_v53 = vshrl.u32 %v1830_v36, 16  ;;  %vm1978_vm8 = vcmp.ne.s16.totalorder %v1752_v13, 0  ;;  %vm1522_vm9 = vmmov 0  }
 0x1f6   : > { %900 = vrot.lane.b32.xlu1 %v896_v40, %s1514_s8  ;;  %v897_v41 = vsel %vm403_vm15, %v1742_v3, %v896_v40  ;;  %v904_v33 = vsel %vm412_vm11, %v1703_v50, %v903_v42  ;;  %v916_v48 = vsel %vm426_vm13, %v915_v45, %v1723_v57  ;;  %v886_v52 = vrot.slane %v884_v47, 1  ;;  %1329 = vmatprep.mubr.msk.bf16.mxu0 %vm1522_vm9, %v1519_v60 }
 0x1f7   : > { %898 = vrot.lane.b32.xlu0 %v897_v41, %s1514_s8  ;;  %v923_v50 = vsel %vm435_vm14, %v922_v37, %v1739_v2  ;;  %v928_v1 = vrot.slane %v888_v53, 4  ;;  %v929_v54 = vrot.slane %v884_v47, 5  ;;  %v909_v55 = vrot.slane %v888_v53, 2 }
 0x1f8   : > { %v890_v44 = vor.u32 %v888_v53, %v886_v52  ;;  %v910_v56 = vrot.slane %v884_v47, 3  ;;  %v887_v57 = vsel %vm381_vm0, %v1742_v3, %v886_v52  ;;  %v1862_v2 = vsel %vm412_vm11, %v1025_v58, 0  ;;  %v1429_v3 = vld [vmem:[%s1968_s3 + $0x8] sm:$0x3f]  }
 0x1f9   : > { %v930_v59 = vor.u32 %v929_v54, %v928_v1  ;;  %v882_v31 = vsel %vm1978_vm8, %v1830_v36, 0  ;;  %v1028_v49 = vand.u32 %v1429_v3, %v1862_v2  ;;  %vm1979_vm10 = vsmask.f32 3328 }
 0x1fa   : > { %907 = vrot.lane.b32.xlu1 %v903_v42, %s1515_s9  ;;  %v911_v61 = vor.u32 %v910_v56, %v909_v55  ;;  %v937_v62 = vrot.slane %v882_v31, 5  ;;  %vm1980_vm11 = vcmask 1042432   ;;  %vm943_vm12 = vcmask 23552   ;;  %v1432_v55 = vld [vmem:[%s1970_s5] sm:$0xff]  }
 0x1fb   : > { %905 = vrot.lane.b32.xlu0 %v904_v33, %s1515_s9  ;;  %v931_v13 = vsel %vm1979_vm10, %v930_v59, %v1784_v29  ;;  %1326 = vmatpush3.bf16.msra.mxu0 %v1028_v49  ;;  %vm949_vm13 = vcmask 48128   ;;  %v877_v14 = vsel %vm340_vm3, %v1830_v36, 0  ;;  %vm954_vm14 = vcmask 72704   ;;  %v1283_v56 = vld [vmem:[%s1969_s4] ss:$0 sm:$0xff]  ;;  %s1524_s9 = smov [#allocation2]  }
 0x1fc   : > { %1327 = vmatprep.subr.bf16.mxu0 %v1519_v60  ;;  %v938_v63 = vsel %vm1980_vm11, %v937_v62, %v1772_v24  ;;  %vm959_vm15 = vcmask 97280   ;;  %vm963_vm0 = vcmask 121856   ;;  %vm977_vm3 = vcmask 195584  }
 0x1fe   : > { %917 = vrot.lane.b32.xlu1 %v915_v45, %s1516_s13 }
 0x1ff   : > { %919 = vrot.lane.b32.xlu0 %v916_v48, %s1516_s13  ;;  %1328 = vmatpush3.bf16.msra.mxu0 %v1430_v51  ;;  %s1445_s13 = sshll.u32 %s1524_s9, 4  ;;  %s1446_s13 = int_to_ptr.vmem [resolvable:$false] %s1445_s13 }
 0x200   : > { %1333 = vmatprep.subr.bf16.mxu0 %v1519_v60 }
 0x202   : > { %924 = vrot.lane.b32.xlu1 %v922_v37, %s1517_s14  ;;  %v1431_v37 = vld [vmem:[%s1970_s5 + $0x8] sm:$0x3f]  }
 0x203   : > { %926 = vrot.lane.b32.xlu0 %v923_v50, %s1517_s14  ;;  %v1094_v1 = vand.u32 %v1431_v37, %v1862_v2  ;;  %s1447_s14 = scalar_lea.vmem %s1446_s13, 512 }
 0x206   : > { %893 = vrot.lane.b32.xlu1 %v890_v44, %s1518_s15 }
 0x207   : > { %891 = vrot.lane.b32.xlu0 %v887_v57, %s1518_s15 }
 0x20a   : > { %932 = vrot.lane.b32.xlu1 %v930_v59, %s1520_s16 }
 0x20b   : > { %912 = vrot.lane.b32.xlu0 %v911_v61, %s1521_s19  ;;  %s1250_s19 = sshll.u32 %s270_s18, 4 }
 0x20e   : > { %939 = vrot.lane.b32.xlu1 %v937_v62, %s1523_s20 }
 0x20f   : > { %934 = vrot.lane.b32.xlu0 %v931_v13, %s1520_s16 }
 0x213   : > { %941 = vrot.lane.b32.xlu0 %v938_v63, %s1523_s20  ;;  %s272_s20 = scalar_lea.vmem [#allocation2], %s1250_s19 }
 0x214   : > { %s1184_s21 = sshll.u32 %s272_s20, 4  ;;  %s1921_s21 = int_to_ptr.vmem [resolvable:$true] %s1184_s21 }
 0x215   : > { %s1441_s8 = scalar_lea.vmem %s1921_s21, 256  ;;  %p1448_p0 = scmp.lt.s32.totalorder %s1921_s21, %s1446_s13 }
 0x216   : > { %p1442_p11 = scmp.ne.s32.totalorder %s1921_s21, %s1441_s8  ;;  %p1449_p1 = scmp.lt.s32.totalorder %s1447_s14, %s1441_s8 }
 0x218   : > { %p1443_p12 = pnand %p1442_p11, %p1605_p5  ;;  %p1450_p2 = por %p1449_p1, %p1448_p0 }
 0x21a   : > { %p1444_p13 = pneg %p1443_p12 }
 0x21c   : > { %p1451_p3 = pnand %p1450_p2, %p1444_p13 }
 0x268   : > { %v901_v0 = vpop.permute.xlu1 %900 }
 0x269   : > { %v899_v4 = vpop.permute.xlu0 %898 }
 0x26c   : > { %v908_v5 = vpop.permute.xlu1 %907 }
 0x26d   : > { %v906_v8 = vpop.permute.xlu0 %905 }
 0x270   : > { %v918_v29 = vpop.permute.xlu1 %917 }
 0x271   : > { %v920_v9 = vpop.permute.xlu0 %919 }
 0x274   : > { %v925_v10 = vpop.permute.xlu1 %924 }
 0x275   : > { %v927_v11 = vpop.permute.xlu0 %926 }
 0x278   : > { %v894_v12 = vpop.permute.xlu1 %893 }
 0x279   : > { %v948_v24 = vsel %vm943_vm12, %v877_v14, %v894_v12  ;;  %v892_v15 = vpop.permute.xlu0 %891 }
 0x27a   : > { %v953_v17 = vsel %vm949_vm13, %v948_v24, %v901_v0  ;;  %v945_v18 = vsel %vm943_vm12, 0, %v892_v15 }
 0x27b   : > { %v951_v19 = vsel %vm949_vm13, %v945_v18, %v899_v4  ;;  %v958_v23 = vsel %vm954_vm14, %v953_v17, %v908_v5 }
 0x27c   : > { %v933_v20 = vpop.permute.xlu1 %932  ;;  %v956_v21 = vsel %vm954_vm14, %v951_v19, %v906_v8 }
 0x27d   : > { %v913_v22 = vpop.permute.xlu0 %912 }
 0x27e   : > { %v961_v25 = vsel %vm959_vm15, %v956_v21, %v913_v22  ;;  %v962_v26 = vsel %vm959_vm15, %v958_v23, %v913_v22 }
 0x27f   : > { %v965_v27 = vsel %vm963_vm0, %v961_v25, %v918_v29  ;;  %v967_v16 = vsel %vm963_vm0, %v962_v26, %v920_v9  ;;  %v1287_v29 = vld [vmem:[%s1971_s6] ss:$0 sm:$0xff] }
 0x280   : > { %v940_v28 = vpop.permute.xlu1 %939  ;;  %v970_v43 = vsel %vm968_vm4, %v965_v27, %v925_v10  ;;  %v972_v39 = vsel %vm968_vm4, %v967_v16, %v927_v11 }
 0x281   : > { %v974_v30 = vsel %vm772_vm1, %v970_v43, %v933_v20  ;;  %v935_v36 = vpop.permute.xlu0 %934 }
 0x282   : > { %v979_v38 = vsel %vm977_vm3, %v974_v30, %v940_v28  ;;  %v976_v42 = vsel %vm772_vm1, %v972_v39, %v935_v36 }
 0x283   : > { %v993_v40 = vshrl.u32 %v979_v38, 16  ;;  %v996_v41 = vshll.u32 %v979_v38, 16 }
 0x285   : > { %v942_v46 = vpop.permute.xlu0 %941  ;;  %v995_v45 = vrot.slane %v993_v40, 5  ;;  %v998_v32 = vrot.slane %v996_v41, 6 }
 0x286   : > { %v981_v33 = vsel %vm977_vm3, %v976_v42, %v942_v46 }
 0x287   : > { %v1000_v47 = vshrl.u32 %v981_v33, 16  ;;  %v1003_v48 = vshll.u32 %v981_v33, 16  ;;  %v999_v50 = vor.u32 %v998_v32, %v995_v45 }
 0x289   : > { %v1002_v52 = vrot.slane %v1000_v47, 5  ;;  %v1005_v53 = vrot.slane %v1003_v48, 6 }
 0x28b   : > { %v1006_v44 = vor.u32 %v1005_v53, %v1002_v52 }
 0x28d   : > { %v1007_v54 = vsel %vm555_vm2, %v999_v50, %v1006_v44 }
 0x28e   : > { %1330 = vmatmul.mubr.msk.bf16.vlgmr.msra.gmra.mxu0 %vm1019_vm7, %v1007_v54 }
 0x28f   : > { %1334 = vmatpush3.bf16.msra.mxu0 %v1094_v1  ;;  %1337 = vmatprep.mubr.msk.bf16.mxu0 %vm1522_vm9, %v1519_v60 }
 0x290   : > { %1335 = vmatprep.subr.bf16.mxu0 %v1519_v60 }
 0x293   : > { %1336 = vmatpush3.bf16.msra.mxu0 %v1432_v55 }
 0x296   : > { %1338 = vmatmul.mubr.msk.bf16.vlgmr.msra.gmra.mxu0 %vm1019_vm7, %v1007_v54 }
 0x34e   : > { %v1064_v58 = vpop.f32.mrf.mxu0 }
 0x34f   : > { %v1065_v57 = vadd.f32 %v1283_v56, %v1064_v58 }
 0x350   : > { %v1331_v59 = vpop.f32.mrf.mxu0 }
 0x351   : > { %v1137_v2 = vmul.f32 0.5, %v1065_v57 }
 0x352   : > { %v1067_v61 = vpop.f32.mrf.mxu0 }
 0x353   : > { %1433 = vtanh.f32 %v1137_v2  ;;  %v1068_v31 = vadd.f32 %v1283_v56, %v1067_v61 }
 0x354   : > { %v1332_v3 = vpop.f32.mrf.mxu0 }
 0x355   : > { %v1138_v62 = vmul.f32 0.5, %v1068_v31 }
 0x356   : > { %v1130_v49 = vpop.f32.mrf.mxu0 }
 0x357   : > { %1435 = vtanh.f32 %v1138_v62  ;;  %v1131_v9 = vadd.f32 %v1287_v29, %v1130_v49 }
 0x358   : > { %v1339_v13 = vpop.f32.mrf.mxu0 }
 0x35a   : > { %v1133_v51 = vpop.f32.mrf.mxu0 }
 0x35b   : > { %v1134_v11 = vadd.f32 %v1287_v29, %v1133_v51 }
 0x35c   : > { %v1340_v60 = vpop.f32.mrf.mxu0 }
 0x360   : > { %v1434_v63 = vpop.eup %1433 }
 0x361   : > { %v1141_v0 = vmul.f32 1.442695, %v1434_v63 }
 0x363   : > { %1437 = vpow2.f32 %v1141_v0 }
 0x364   : > { %v1436_v4 = vpop.eup %1435 }
 0x365   : > { %v1143_v5 = vmul.f32 1.442695, %v1436_v4 }
 0x367   : > { %1439 = vpow2.f32 %v1143_v5 }
 0x370   : > { %v1438_v8 = vpop.eup %1437 }
 0x371   : > { %1147 = vrot.lane.b32.xlu1 %v1438_v8, %s1518_s15 }
 0x374   : > { %v1440_v10 = vpop.eup %1439 }
 0x375   : > { %1149 = vrot.lane.b32.xlu0 %v1440_v10, %s1518_s15  ;;  %1157 = vrot.lane.b32.xlu1 %v1131_v9, %s1518_s15 }
 0x379   : > { %1159 = vrot.lane.b32.xlu0 %v1134_v11, %s1518_s15 }
 0x3e3   : > { %v1148_v12 = vpop.permute.xlu1 %1147 }
 0x3e4   : > { %v1153_v14 = vmul.f32 %v1148_v12, %v1620_v6 }
 0x3e7   : > { %v1150_v24 = vpop.permute.xlu0 %1149  ;;  %v1158_v15 = vpop.permute.xlu1 %1157 }
 0x3e8   : > { %v1163_v17 = vadd.f32 %v1158_v15, %v1153_v14  ;;  %v1154_v18 = vmul.f32 %v1150_v24, %v1622_v7 }
 0x3ea   : > { %v1165_v19 = vsel %vm943_vm12, %v1824_v34, %v1163_v17 }
 0x3eb   : > { %1168 = vst.msk [vmem:[%s272_s20] sm:$0xff] %vm1167_vm5, %v1165_v19  ;;  %v1160_v20 = vpop.permute.xlu0 %1159 }
 0x3ec   : > { %v1164_v21 = vadd.f32 %v1160_v20, %v1154_v18 }
 0x3ee   : > { %v1166_v6 = vsel %vm943_vm12, %v1826_v35, %v1164_v21 }
 0x3ef   : > { %1169 = vst.msk [vmem:[%s272_s20 + $0x8] sm:$0xff] %vm1167_vm5, %v1166_v6 }
 0x3f0   : > { %1454 = shalt.err (!%p1451_p3)
}
 0x3f1   : > { %s1455_s16 = scalar_lea.hbm %s1919_s29, 256  ;;  %s1459_s19 = scalar_lea.hbm %s1972_s7, 512 }
 0x3f2   : > { %p1456_p4 = scmp.ne.s32.totalorder %s1919_s29, %s1455_s16  ;;  %p1460_p9 = scmp.lt.s32.totalorder %s1919_s29, %s1972_s7 }
 0x3f3   : > { %p1461_p10 = scmp.lt.s32.totalorder %s1459_s19, %s1455_s16 }
 0x3f4   : > { %p1457_p7 = pnand %p1456_p4, %p1605_p5 }
 0x3f5   : > { %p1462_p11 = por %p1461_p10, %p1460_p9 }
 0x3f6   : > { %p1458_p8 = pneg %p1457_p7 }
 0x3f8   : > { %p1463_p12 = pnand %p1462_p11, %p1458_p8 }
 0x3fa   : > { %1466 = shalt.err (!%p1463_p12)
}
 0x3fb   : > { %s1525_s15 = smov 128   ;;  %s1526_s22 = smov 8  }
 0x3fc   : > { %1341 = dma.vmem_to_hbm [thread:$0]  (%p1605_p5), %s1921_s21, 256, %s1919_s29, %s1925_s28, %s1525_s15, %s1525_s15, %s1526_s22  }
 0x3fd PF: > { %p1347_p13 = scmp.ge.s32.totalorder %s1501_s27, 2  ;;  %s1199_s8 = sand.u32 1, %s1489_s24  }
 0x3fe   : > { %s1200_s9 = scalar_lea.sflag [#allocation3], %s1199_s8 }
 0x3ff   : > { %p1344_p0 = pnand %p1347_p13, %p1609_p6 }
 0x401   : > { %p1345_p1 = pneg %p1344_p0 }
 0x403   : > { %1484 = dma.done.wait (%p1345_p1), %s1200_s9, 256  }
 0x404   : > { %1486 = vsyncadd (%p1345_p1), %s1200_s9, 4294967040  ;;  %p17_p2 = scmp.ge.s32.totalorder %s1592_s30, 4   ;;  %s1981_s24 = smov %s1493_s25 }
 0x405   : > { %s1982_s25 = smov %s1497_s26  ;;  %s1983_s26 = smov %s1603_s10 }
 0x406   : > { %s1984_s27 = smov %s1592_s30  ;;  %19 = sbr.rel (!%p17_p2) target bundleno = 3 (0x3), region = 83 }
 0x40b   :  { %1205 = vsyncpa [#allocation3], 1 }
 0x40c   :  { %1207 = vsyncpa [#allocation3 + $0x1], 1 }

// kernel: invnn_forward.5
= control target key start
LH: loop header
LB: loop body
LE: loop exit
PB: predicated region body
PF: predicated region fallthrough
CT: control target
= control target key end

     0   :  { %s2103_s24 = smov 0   ;;  %s3154_s0 = inlined_call_operand.vmem [shape: f32[128,12], index: 0, kind: input, shape index: {}]   ;;  %s3155_s1 = inlined_call_operand.vmem [shape: bf16[81,3], index: 1, kind: input, shape index: {}]   ;;  %s3156_s2 = inlined_call_operand.vmem [shape: f32[1,3], index: 2, kind: input, shape index: {}]   ;;  %s3157_s3 = inlined_call_operand.vmem [shape: bf16[27,9], index: 3, kind: input, shape index: {}]   ;;  %s3158_s4 = inlined_call_operand.vmem [shape: f32[1,9], index: 4, kind: input, shape index: {}]   ;;  %s3159_s5 = inlined_call_operand.vmem [shape: bf16[27,9], index: 5, kind: input, shape index: {}]   ;;  %s3160_s6 = inlined_call_operand.vmem [shape: f32[1,9], index: 6, kind: input, shape index: {}]   ;;  %s3161_s7 = inlined_call_operand.vmem [shape: f32[128,12], index: 7, kind: output, shape index: {}]  }
   0x1 LB: > { %s1853_s25 = sadd.s32 4294967295, %s2044_s24   ;;  %p1857_p0 = scmp.ge.s32.totalorder %s2044_s24, 1  ;;  %s2044_s24 = sphi %s2103_s24, %s17_s24  }
   0x2   : > { %p238_p1 = scmp.lt.s32.totalorder %s2044_s24, 3 }
   0x4   : > { %p239_p2 = pnand %p1857_p0, %p238_p1 }
   0x6   : > { %242 = sbr.rel (%p239_p2) target bundleno = 1091 (0x443), region = 48 }
   0xb   : > { %s1858_s26 = sshll.u32 %s1853_s25, 3  ;;  %v2046_v0 = vmov 0   ;;  %s2047_s27 = smov 54   ;;  %v293_v13 = vlaneseq }
   0xc   : > { %819 = vrot.lane.b32.xlu1 %v2046_v0, %s2047_s27  ;;  %p271_p3 = scmp.lt.s32.totalorder %s1858_s26, 15  ;;  %s2048_s9 = smov 125  }
   0xd   : > { %v294_v14 = vshrl.u32 %v293_v13, 7  ;;  %s2049_s10 = smov 18   ;;  %s2050_s11 = smov 27  }
   0xe   : > { %s3260_s26 = smov (!%p271_p3, %s1858_s26), 15  ;;  %s2051_s12 = smov 45  }
   0xf   : > { %s1859_s28 = sshll.u32 %s3260_s26, 3  ;;  %v295_v15 = vadd.s32 8, %v294_v14  ;;  %v296_v16 = vadd.s32 16, %v294_v14  ;;  %v297_v17 = vadd.s32 24, %v294_v14  ;;  %v306_v18 = vand.u32 7, %v294_v14  ;;  %s2052_s13 = smov 72  }
  0x10   : > { %s2121_s8 = scalar_lea.vmem %s3154_s0, %s1859_s28  ;;  %v298_v19 = vadd.s32 32, %v294_v14  ;;  %v299_v21 = vadd.s32 40, %v294_v14  ;;  %v300_v29 = vadd.s32 48, %v294_v14  ;;  %v301_v31 = vadd.s32 56, %v294_v14  ;;  %s2053_s14 = smov 36  }
  0x11   : > { %v289_v1 = vld [vmem:[%s2121_s8 + $0x20] sm:$0xff]  ;;  %v290_v2 = vld [vmem:[%s2121_s8 + $0x28] sm:$0xff]  ;;  %v291_v6 = vld [vmem:[%s2121_s8 + $0x30] sm:$0xff]  ;;  %v313_v20 = vand.u32 7, %v295_v15  ;;  %v320_v22 = vand.u32 7, %v296_v16  ;;  %v327_v23 = vand.u32 7, %v297_v17 }
  0x12   : > { %v2126_v3 = vld [vmem:[%s2121_s8] sm:$0xff]  ;;  %v416_v4 = vpack.c.bf16 %v290_v2, %v289_v1  ;;  %v2129_v5 = vld [vmem:[%s2121_s8 + $0x8] sm:$0xff]  ;;  %v292_v7 = vld [vmem:[%s2121_s8 + $0x38] sm:$0xff]  ;;  %vm2143_vm0 = vcmp.ne.s32.totalorder %v306_v18, 0  ;;  %v334_v25 = vand.u32 7, %v298_v19  ;;  %v341_v27 = vand.u32 7, %v299_v21 }
  0x13   : > { %v414_v8 = vpack.c.bf16 %v2129_v5, %v2126_v3  ;;  %v2136_v9 = vld [vmem:[%s2121_s8 + $0x10] sm:$0xff]  ;;  %v2139_v10 = vld [vmem:[%s2121_s8 + $0x18] sm:$0xff]  ;;  %v417_v11 = vpack.c.bf16 %v292_v7, %v291_v6  ;;  %vm2147_vm1 = vcmp.ne.s32.totalorder %v313_v20, 0  ;;  %vm2151_vm2 = vcmp.ne.s32.totalorder %v320_v22, 0  ;;  %vm450_vm3 = vmpackc.low %vm2143_vm0, %vm2143_vm0  ;;  %s2054_s17 = smov 9   ;;  %s2055_s25 = smov 63  }
  0x14   : > { %426 = vrot.lane.b32.xlu1 %v416_v4, %s2048_s9  ;;  %v415_v12 = vpack.c.bf16 %v2139_v10, %v2136_v9  ;;  %vm2158_vm4 = vcmp.ne.s32.totalorder %v327_v23, 0  ;;  %vm451_vm5 = vmpackc.low %vm2147_vm1, %vm2147_vm1  ;;  %vm2165_vm6 = vcmp.ne.s32.totalorder %v334_v25, 0  ;;  %vm2169_vm7 = vcmp.ne.s32.totalorder %v341_v27, 0  ;;  %s2058_s15 = smov 3   ;;  %s2059_s16 = smov 24  }
  0x15   : > { %422 = vrot.lane.b32.xlu0 %v414_v8, %s2048_s9  ;;  %vm2176_vm9 = vcmp.ne.s32.totalorder %v320_v22, 7  ;;  %v348_v35 = vand.u32 7, %v300_v29  ;;  %vm2183_vm11 = vcmp.ne.s32.totalorder %v327_v23, 7  ;;  %vm454_vm12 = vmpackc.low %vm2165_vm6, %vm2165_vm6  ;;  %v355_v37 = vand.u32 7, %v301_v31  ;;  %s2060_s18 = smov 12   ;;  %s2061_s19 = smov 21  }
  0x16   : > { %vm2190_vm13 = vcmp.ne.s32.totalorder %v334_v25, 7  ;;  %vm455_vm14 = vmpackc.low %vm2169_vm7, %vm2169_vm7  ;;  %vm2197_vm15 = vcmp.ne.s32.totalorder %v341_v27, 7  ;;  %v458_v41 = vsel %vm450_vm3, 65537, %v2046_v0  ;;  %v459_v42 = vsel %vm451_vm5, 65537, %v2046_v0 }
  0x17   : > { %vm2207_vm8 = vcmp.ne.s32.totalorder %v348_v35, 7  ;;  %vm2226_vm6 = vcmp.ne.s32.totalorder %v355_v37, 7  ;;  %vm2233_vm3 = vcmp.ne.s32.totalorder %v348_v35, 0  ;;  %v462_v45 = vsel %vm454_vm12, 65537, %v2046_v0  ;;  %vm3213_vm12 = vmpackc.low %vm2151_vm2, %vm2151_vm2 }
  0x18   : > { %428 = vrot.lane.b32.xlu1 %v417_v11, %s2048_s9  ;;  %v463_v46 = vsel %vm455_vm14, 65537, %v2046_v0  ;;  %vm544_vm1 = vmpackc.low %vm2207_vm8, %vm2207_vm8  ;;  %vm2242_vm5 = vcmp.ne.s32.totalorder %v355_v37, 0  ;;  %v2246_v48 = vcombine.low %v458_v41, %v459_v42  ;;  %vm2251_vm7 = vcmp.ne.s32.totalorder %v306_v18, 7 }
  0x19   : > { %424 = vrot.lane.b32.xlu0 %v415_v12, %s2048_s9  ;;  %vm545_vm0 = vmpackc.low %vm2226_vm6, %vm2226_vm6  ;;  %v460_v50 = vsel %vm3213_vm12, 65537, %v2046_v0  ;;  %vm2270_vm10 = vcmp.ne.s32.totalorder %v313_v20, 7  ;;  %v2274_v53 = vcombine.low %v462_v45, %v463_v46  ;;  %v552_v57 = vsel %vm544_vm1, 65537, %v2046_v0 }
  0x1a   : > { %vm3214_vm14 = vmpackc.low %vm2158_vm4, %vm2158_vm4  ;;  %v480_v54 = vshrl.u32 %v2246_v48, 16  ;;  %v483_v55 = vshll.u32 %v2246_v48, 16  ;;  %v553_v58 = vsel %vm545_vm0, 65537, %v2046_v0  ;;  %vm3174_vm1 = vsmask.f32 7424 }
  0x1b   : > { %v461_v51 = vsel %vm3214_vm14, 65537, %v2046_v0  ;;  %vm456_vm6 = vmpackc.low %vm2233_vm3, %vm2233_vm3  ;;  %v497_v61 = vshrl.u32 %v2274_v53, 16  ;;  %v500_v62 = vshll.u32 %v2274_v53, 16  ;;  %v2328_v12 = vcombine.low %v552_v57, %v553_v58 }
  0x1c   : > { %vm457_vm2 = vmpackc.low %vm2242_vm5, %vm2242_vm5  ;;  %v2284_v56 = vcombine.low %v460_v50, %v461_v51  ;;  %v464_v63 = vsel %vm456_vm6, 65537, %v2046_v0  ;;  %v482_v17 = vrot.slane %v480_v54, 4  ;;  %v485_v18 = vrot.slane %v483_v55, 5 }
  0x1d   : > { %vm538_vm12 = vmpackc.low %vm2251_vm7, %vm2251_vm7  ;;  %v465_v1 = vsel %vm457_vm2, 65537, %v2046_v0  ;;  %v499_v19 = vrot.slane %v497_v61, 4  ;;  %v502_v20 = vrot.slane %v500_v62, 5  ;;  %v594_v23 = vshrl.u32 %v2328_v12, 16 }
  0x1e   : > { %vm539_vm4 = vmpackc.low %vm2270_vm10, %vm2270_vm10  ;;  %v546_v2 = vsel %vm538_vm12, 65537, %v2046_v0  ;;  %v488_v8 = vshrl.u32 %v2284_v56, 16  ;;  %v491_v11 = vshll.u32 %v2284_v56, 16  ;;  %v1865_v13 = vcombine.low %v464_v63, %v465_v1 }
  0x1f   : > { %vm3217_vm7 = vmpackc.low %vm2176_vm9, %vm2176_vm9  ;;  %v547_v4 = vsel %vm539_vm4, 65537, %v2046_v0  ;;  %v597_v24 = vshll.u32 %v2328_v12, 16  ;;  %v503_v34 = vor.u32 %v502_v20, %v499_v19  ;;  %v2350_v35 = vor.u32 %v485_v18, %v482_v17 }
  0x20   : > { %v548_v59 = vsel %vm3217_vm7, 65537, %v2046_v0  ;;  %vm3218_vm10 = vmpackc.low %vm2183_vm11, %vm2183_vm11  ;;  %v1866_v15 = vcombine.low %v546_v2, %v547_v4  ;;  %v490_v21 = vrot.slane %v488_v8, 4  ;;  %v493_v22 = vrot.slane %v491_v11, 5 }
  0x21   : > { %v549_v60 = vsel %vm3218_vm10, 65537, %v2046_v0  ;;  %vm3219_vm8 = vmpackc.low %vm2190_vm13, %vm2190_vm13  ;;  %v506_v25 = vshrl.u32 %v1865_v13, 16  ;;  %v509_v26 = vshll.u32 %v1865_v13, 16  ;;  %vm3172_vm11 = vsmask.f32 3328 }
  0x22   : > { %v550_v6 = vsel %vm3219_vm8, 65537, %v2046_v0  ;;  %vm3220_vm9 = vmpackc.low %vm2197_vm15, %vm2197_vm15  ;;  %v2330_v14 = vcombine.low %v548_v59, %v549_v60  ;;  %v568_v29 = vshrl.u32 %v1866_v15, 16  ;;  %v571_v30 = vshll.u32 %v1866_v15, 16 }
  0x23   : > { %v551_v7 = vsel %vm3220_vm9, 65537, %v2046_v0  ;;  %v494_v36 = vor.u32 %v493_v22, %v490_v21  ;;  %v596_v37 = vrot.slane %v594_v23, 3  ;;  %v599_v38 = vrot.slane %v597_v24, 4 }
  0x24   : > { %v2332_v16 = vcombine.low %v550_v6, %v551_v7  ;;  %v576_v27 = vshrl.u32 %v2330_v14, 16  ;;  %v579_v28 = vshll.u32 %v2330_v14, 16  ;;  %v508_v39 = vrot.slane %v506_v25, 4 }
  0x25   : > { %v511_v40 = vrot.slane %v509_v26, 5  ;;  %v570_v43 = vrot.slane %v568_v29, 3  ;;  %v573_v44 = vrot.slane %v571_v30, 4  ;;  %v611_v47 = vrot.slane %v483_v55, 1 }
  0x26   : > { %v585_v31 = vshrl.u32 %v2332_v16, 16  ;;  %v588_v32 = vshll.u32 %v2332_v16, 16  ;;  %v578_v41 = vrot.slane %v576_v27, 3  ;;  %v581_v42 = vrot.slane %v579_v28, 4 }
  0x27   : > { %v2365_v49 = vsel %vm3172_vm11, %v494_v36, %v503_v34  ;;  %vm3166_vm13 = vcmp.ne.s16.totalorder %v2350_v35, 0  ;;  %v2368_v50 = vor.u32 %v599_v38, %v596_v37  ;;  %v619_v51 = vrot.slane %v509_v26, 1 }
  0x28   : > { %v587_v45 = vrot.slane %v585_v31, 3  ;;  %v590_v46 = vrot.slane %v588_v32, 4  ;;  %v2370_v52 = vrot.slane %v568_v29, 7  ;;  %v2374_v58 = vor.u32 %v511_v40, %v508_v39 }
  0x29   : > { %vm566_vm15 = vsmask.f32 4352  ;;  %vm3180_vm0 = vcmp.ne.s16.totalorder %v2365_v49, 0  ;;  %v2379_v55 = vor.u32 %v573_v44, %v570_v43  ;;  %v582_v60 = vor.u32 %v581_v42, %v578_v41 }
  0x2a   : > { %3221 = vst [vmem:[#allocation2_spill] sm:$0xff] %v2374_v58  ;;  %v591_v63 = vor.u32 %v590_v46, %v587_v45  ;;  %v612_v1 = vor.u32 %v611_v47, %v480_v54  ;;  %v2388_v4 = vsel %vm3172_vm11, %v2350_v35, %v494_v36  ;;  %v613_v6 = vrot.slane %v491_v11, 1 }
  0x2b   : > { %vm3163_vm3 = vcmp.ne.s16.totalorder %v2368_v50, 0  ;;  %v2392_v7 = vor.u32 %v619_v51, %v506_v25  ;;  %v2395_v13 = vor.u32 %v2370_v52, %v571_v30  ;;  %v2404_v15 = vsel %vm3172_vm11, %v503_v34, %v2374_v58 }
  0x2c   : > { %vm514_vm5 = vcmp.ne.s16.totalorder %v2388_v4, 0  ;;  %v2411_v17 = vsel %vm566_vm15, %v2379_v55, %v582_v60  ;;  %v2414_v18 = vsel %vm566_vm15, %v582_v60, %v591_v63  ;;  %v616_v19 = vrot.slane %v500_v62, 1 }
  0x2d   : > { %v2427_v22 = vsel %vm3174_vm1, %v612_v1, %v613_v6  ;;  %vm516_vm14 = vcmp.ne.s16.totalorder %v2404_v15, 0  ;;  %vm3162_vm6 = vcmp.ne.s16.totalorder %v2392_v7, 0  ;;  %vm3165_vm2 = vcmp.ne.s16.totalorder %v2395_v13, 0 }
  0x2e   : > { %v615_v62 = vor.u32 %v613_v6, %v488_v8  ;;  %vm602_vm12 = vcmp.ne.s16.totalorder %v2411_v17, 0  ;;  %vm603_vm4 = vcmp.ne.s16.totalorder %v2414_v18, 0  ;;  %v633_v26 = vrot.slane %v576_v27, 7 }
  0x2f   : > { %v2446_v30 = vsel %vm566_vm15, %v591_v63, %v2368_v50  ;;  %v618_v56 = vor.u32 %v616_v19, %v497_v61  ;;  %v636_v8 = vrot.slane %v585_v31, 7  ;;  %vm3164_vm10 = vcmp.ne.s16.totalorder %v2427_v22, 0 }
  0x30   : > { %3222 = vst [vmem:[#allocation3_spill] sm:$0xff] %v2446_v30  ;;  %vm3169_vm7 = vcmp.ne.s16.totalorder %v2446_v30, 0  ;;  %v2475_v31 = vsel %vm3174_vm1, %v615_v62, %v616_v19  ;;  %v634_v36 = vor.u32 %v633_v26, %v579_v28  ;;  %v2487_v41 = vrot.slane %v2046_v0, 1 }
  0x31   : > { %v2482_v39 = vsel %vm3174_vm1, %v618_v56, %v619_v51  ;;  %v637_v40 = vor.u32 %v636_v8, %v588_v32  ;;  %vm630_vm8 = vsmask.f32 256  ;;  %vm714_vm9 = vcmask 1046528   ;;  %v3252_v4 = vld [vmem:[#allocation2_spill] sm:$0xff] }
  0x32   : > { %v639_v28 = vrot.slane %v594_v23, 7  ;;  %v2506_v32 = vrot.slane %v2046_v0, 4  ;;  %v2510_v44 = vsel %vm630_vm8, %v2370_v52, %v634_v36 }
  0x33   : > { %v2513_v45 = vsel %vm630_vm8, %v633_v26, %v637_v40 }
  0x34   : > { %v640_v63 = vor.u32 %v639_v28, %v597_v24 }
  0x36   : > { %v2549_v24 = vsel %vm630_vm8, %v636_v8, %v640_v63 }
  0x37   : > { %vm3170_vm8 = vcmp.ne.s16.totalorder %v2549_v24, 0 }
  0x7e   : > { %v2348_v33 = vpop.permute.xlu1 %819 }
  0x86   : > { %v2372_v57 = vpop.permute.xlu1 %426 }
  0x87   : > { %v2376_v59 = vpop.permute.xlu0 %422  ;;  %v653_v54 = vsel %vm3180_vm0, %v2372_v57, 0  ;;  %v2496_v14 = vsel %vm3169_vm7, %v2372_v57, 0  ;;  %v658_v8 = vsel %vm603_vm4, %v2372_v57, 0 }
  0x88   : > { %v651_v2 = vsel %vm3166_vm13, %v2376_v59, 0  ;;  %v2460_v27 = vsel %vm3165_vm2, %v2376_v59, 0  ;;  %v606_v53 = vsel %vm602_vm12, %v2376_v59, 0  ;;  %v626_v16 = vsel %vm3164_vm10, %v2376_v59, 0 }
  0x89   : > { %811 = vrot.lane.b32.xlu1 %v651_v2, %s2047_s27  ;;  %v788_v38 = vrot.slane %v2460_v27, 5  ;;  %v716_v42 = vrot.slane %v606_v53, 1  ;;  %v720_v51 = vrot.slane %v2496_v14, 1  ;;  %v740_v60 = vrot.slane %v626_v16, 4 }
  0x8a   : > { %v2397_v48 = vpop.permute.xlu1 %428  ;;  %vm738_vm10 = vcmask 1043456   ;;  %vm3168_vm2 = vcmp.ne.s16.totalorder %v2510_v44, 0  ;;  %vm3171_vm13 = vcmp.ne.s16.totalorder %v2513_v45, 0  ;;  %v839_v40 = vrot.slane %v658_v8, 1 }
  0x8b   : > { %v2406_v11 = vpop.permute.xlu0 %424  ;;  %v2424_v21 = vsel %vm3163_vm3, %v2397_v48, 0  ;;  %v654_v25 = vsel %vm516_vm14, %v2397_v48, 0  ;;  %v2455_v34 = vsel %vm3162_vm6, %v2397_v48, 0  ;;  %vm623_vm6 = vcmp.ne.s16.totalorder %v2475_v31, 0 }
  0x8c   : > { %v652_v20 = vsel %vm514_vm5, %v2406_v11, 0  ;;  %v722_v29 = vrot.slane %v2424_v21, 1  ;;  %v607_v61 = vsel %vm603_vm4, %v2406_v11, 0  ;;  %v746_v37 = vrot.slane %v2455_v34, 4  ;;  %v1989_v34 = vld [vmem:[%s3155_s1 + $0x20] sm:$0xff]  }
  0x8d   : > { %815 = vrot.lane.b32.xlu1 %v653_v54, %s2047_s27  ;;  %813 = vrot.lane.b32.xlu0 %v652_v20, %s2047_s27  ;;  %v718_v43 = vrot.slane %v607_v61, 1  ;;  %vm3167_vm3 = vcmp.ne.s16.totalorder %v2482_v39, 0  ;;  %v717_v46 = vsel %vm714_vm9, %v2487_v41, %v716_v42  ;;  %v627_v23 = vsel %vm623_vm6, %v2406_v11, 0 }
  0x8e   : > { %v2527_v52 = vsel %vm3167_vm3, %v2372_v57, 0  ;;  %v741_v2 = vsel %vm738_vm10, %v2506_v32, %v740_v60  ;;  %v742_v6 = vrot.slane %v627_v23, 4  ;;  %v647_v19 = vsel %vm3168_vm2, %v2406_v11, 0 }
  0x8f   : > { %v719_v47 = vsel %vm714_vm9, %v716_v42, %v718_v43  ;;  %v721_v1 = vsel %vm714_vm9, %v718_v43, %v720_v51  ;;  %v744_v54 = vrot.slane %v2527_v52, 4  ;;  %v2545_v12 = vsel %vm3171_vm13, %v2372_v57, 0 }
  0x90   : > { %vm3181_vm3 = vcmp.ne.s16.totalorder %v2379_v55, 0  ;;  %v743_v20 = vsel %vm738_vm10, %v740_v60, %v742_v6  ;;  %v791_v26 = vrot.slane %v2545_v12, 5  ;;  %vm3177_vm2 = vcmask 1042432  }
  0x91   : > { %732 = vrot.lane.b32.xlu1 %v722_v29, %s2049_s10  ;;  %817 = vrot.lane.b32.xlu0 %v654_v25, %s2047_s27  ;;  %v745_v62 = vsel %vm738_vm10, %v742_v6, %v744_v54  ;;  %v789_v25 = vrot.slane %v647_v19, 5  ;;  %v657_v56 = vsel %vm602_vm12, %v2406_v11, 0  ;;  %v656_v27 = vsel %vm3181_vm3, %v2376_v59, 0 }
  0x92   : > { %v837_v36 = vrot.slane %v657_v56, 1  ;;  %v2573_v42 = vsel %vm3169_vm7, %v2397_v48, 0  ;;  %v836_v43 = vrot.slane %v656_v27, 1  ;;  %v649_v14 = vsel %vm3170_vm8, %v2397_v48, 0 }
  0x93   : > { %v790_v53 = vsel %vm3177_vm2, %v788_v38, %v789_v25  ;;  %v792_v61 = vsel %vm3177_vm2, %v789_v25, %v791_v26  ;;  %v672_v16 = vshrl.u32 %v2376_v59, 16  ;;  %v841_v60 = vrot.slane %v2573_v42, 1 }
  0x94   : > { %v838_v28 = vsel %vm714_vm9, %v836_v43, %v837_v36  ;;  %v793_v23 = vrot.slane %v649_v14, 5  ;;  %v692_v6 = vshll.u32 %v2397_v48, 16  ;;  %v696_v19 = vshrl.u32 %v2397_v48, 16 }
  0x95   : > { %756 = vrot.lane.b32.xlu1 %v746_v37, %s2050_s11  ;;  %797 = vrot.lane.b32.xlu0 %v788_v38, %s2051_s12  ;;  %v668_v38 = vshll.u32 %v2376_v59, 16  ;;  %v758_v52 = vrot.slane %v672_v16, 4  ;;  %v676_v27 = vshll.u32 %v2406_v11, 16  ;;  %vm1042_vm7 = vcmask 1040384  }
  0x96   : > { %v769_v25 = vrot.slane %v696_v19, 4  ;;  %v770_v8 = vrot.slane %v692_v6, 5  ;;  %v747_v21 = vsel %vm738_vm10, %v744_v54, %v746_v37  ;;  %v684_v43 = vshll.u32 %v2372_v57, 16 }
  0x97   : > { %v759_v63 = vrot.slane %v668_v38, 5  ;;  %v794_v54 = vsel %vm3177_vm2, %v791_v26, %v793_v23  ;;  %v678_v14 = vrot.slane %v676_v27, 1  ;;  %vm3182_vm8 = vcmask 146432  }
  0x98   : > { %v771_v37 = vor.u32 %v770_v8, %v769_v25  ;;  %v1991_v8 = vld [vmem:[%s3155_s1 + $0x10] sm:$0xff]   ;;  %vm3179_vm13 = vcmp.ne.s16.totalorder %v2374_v58, 0  ;;  %vm935_vm3 = vcmask 588800  }
  0x99   : > { %724 = vrot.lane.b32.xlu1 %v717_v46, %s2049_s10  ;;  %726 = vrot.lane.b32.xlu0 %v719_v47, %s2049_s10  ;;  %v840_v46 = vsel %vm714_vm9, %v837_v36, %v839_v40  ;;  %v2583_v47 = vrot.slane %v2046_v0, 5  ;;  %v760_v12 = vor.u32 %v759_v63, %v758_v52  ;;  %v766_v63 = vrot.slane %v684_v43, 5 }
  0x9b   : > { %3223 = vst [vmem:[#allocation4_spill] sm:$0xff] %v2583_v47 }
  0x9d   : > { %728 = vrot.lane.b32.xlu1 %v721_v1, %s2049_s10  ;;  %748 = vrot.lane.b32.xlu0 %v741_v2, %s2050_s11  ;;  %v796_v1 = vsel %vm3177_vm2, %v793_v23, %v2583_v47  ;;  %v842_v2 = vsel %vm714_vm9, %v839_v40, %v841_v60  ;;  %v670_v40 = vrot.slane %v668_v38, 1  ;;  %v519_v47 = vsel %vm3180_vm0, %v2406_v11, 0 }
  0x9e   : > { %vm902_vm2 = vcmask 367616   ;;  %vm913_vm0 = vcmask 441344  }
  0x9f   : > { %v674_v38 = vor.u32 %v672_v16, %v670_v40  ;;  %v671_v26 = vsel %vm3174_vm1, %v2487_v41, %v670_v40 }
  0xa1   : > { %750 = vrot.lane.b32.xlu1 %v743_v20, %s2050_s11  ;;  %752 = vrot.lane.b32.xlu0 %v745_v62, %s2050_s11  ;;  %v723_v20 = vsel %vm714_vm9, %v720_v51, %v722_v29  ;;  %v694_v62 = vrot.slane %v692_v6, 1  ;;  %v680_v29 = vshrl.u32 %v2406_v11, 16  ;;  %v688_v51 = vshrl.u32 %v2372_v57, 16 }
  0xa2   : > { %v679_v23 = vsel %vm3174_vm1, %v674_v38, %v678_v14 }
  0xa3   : > { %v2602_v56 = vor.u32 %v696_v19, %v694_v62  ;;  %v765_v52 = vrot.slane %v688_v51, 4  ;;  %v682_v19 = vor.u32 %v680_v29, %v678_v14 }
  0xa5   : > { %799 = vrot.lane.b32.xlu1 %v790_v53, %s2051_s12  ;;  %801 = vrot.lane.b32.xlu0 %v792_v61, %s2051_s12  ;;  %v1988_v53 = vld [vmem:[%s3155_s1 + $0x28] ss:$0 sps:$4 sm:$0x11]   ;;  %v1044_v61 = vsel %vm1042_vm7, 65535, %v2046_v0  ;;  %v767_v6 = vor.u32 %v766_v63, %v765_v52  ;;  %vm854_vm7 = vcmask 72704  }
  0xa6   : > { %v1046_v36 = vand.u32 %v1988_v53, %v1044_v61  ;;  %v843_v61 = vsel %vm714_vm9, %v841_v60, %v2487_v41 }
  0xa8   : > { %1919 = vmatprep.subr.bf16.mxu0 %v1046_v36 }
  0xa9   : > { %844 = vrot.lane.b32.xlu1 %v838_v28, %s2052_s13  ;;  %846 = vrot.lane.b32.xlu0 %v840_v46, %s2052_s13  ;;  %v761_v28 = vrot.slane %v680_v29, 4  ;;  %v762_v46 = vrot.slane %v676_v27, 5 }
  0xaa   : > { %1920 = vmatpush3.bf16.msra.mxu0 %v1046_v36 }
  0xab   : > { %1921 = vmatprep.subr.bf16.mxu0 %v1989_v34 }
  0xad   : > { %805 = vrot.lane.b32.xlu1 %v796_v1, %s2051_s12  ;;  %848 = vrot.lane.b32.xlu0 %v842_v2, %s2052_s13  ;;  %v1990_v1 = vld [vmem:[%s3155_s1 + $0x18] sm:$0xff]   ;;  %v763_v2 = vor.u32 %v762_v46, %v761_v28 }
  0xae   : > { %1922 = vmatpush3.bf16.msra.mxu0 %v1989_v34 }
  0xaf   : > { %1923 = vmatprep.subr.bf16.mxu0 %v1990_v1  ;;  %v768_v16 = vsel %vm3172_vm11, %v763_v2, %v767_v6  ;;  %v764_v27 = vsel %vm3172_vm11, %v760_v12, %v763_v2 }
  0xb1   : > { %773 = vrot.lane.b32.xlu1 %v760_v12, %s2053_s14  ;;  %730 = vrot.lane.b32.xlu0 %v723_v20, %s2049_s10  ;;  %v686_v20 = vrot.slane %v684_v43, 1  ;;  %v1993_v12 = vld [vmem:[%s3155_s1] sm:$0xff]  }
  0xb2   : > { %1924 = vmatpush3.bf16.msra.mxu0 %v1990_v1 }
  0xb3   : > { %v687_v25 = vsel %vm3174_vm1, %v682_v19, %v686_v20  ;;  %1925 = vmatprep.subr.bf16.mxu0 %v1991_v8  ;;  %v690_v53 = vor.u32 %v688_v51, %v686_v20  ;;  %v772_v51 = vsel %vm3172_vm11, %v767_v6, %v771_v37  ;;  %vm880_vm11 = vcmask 220160  }
  0xb5   : > { %707 = vrot.lane.b32.xlu1 %v2602_v56, %s2054_s17  ;;  %754 = vrot.lane.b32.xlu0 %v747_v21, %s2050_s11  ;;  %v1992_v21 = vld [vmem:[%s3155_s1 + $0x8] sm:$0xff]   ;;  %v695_v29 = vsel %vm3174_vm1, %v690_v53, %v694_v62  ;;  %v821_v62 = vsel %vm3174_vm1, %v2602_v56, %v2487_v41  ;;  %v518_v53 = vsel %vm514_vm5, %v2376_v59, 0  ;;  %v521_v59 = vsel %vm3179_vm13, %v2397_v48, 0 }
  0xb6   : > { %1926 = vmatpush3.bf16.msra.mxu0 %v1991_v8  ;;  %vm891_vm1 = vcmask 293888   ;;  %vm924_vm13 = vcmask 515072  }
  0xb7   : > { %1927 = vmatprep.subr.bf16.mxu0 %v1992_v21 }
  0xb9   : > { %781 = vrot.lane.b32.xlu1 %v771_v37, %s2053_s14  ;;  %803 = vrot.lane.b32.xlu0 %v794_v54, %s2051_s12 }
  0xba   : > { %1928 = vmatpush3.bf16.msra.mxu0 %v1992_v21 }
  0xbb   : > { %1929 = vmatprep.subr.bf16.mxu0 %v1993_v12 }
  0xbd   : > { %701 = vrot.lane.b32.xlu1 %v679_v23, %s2054_s17  ;;  %699 = vrot.lane.b32.xlu0 %v671_v26, %s2054_s17 }
  0xbe   : > { %1930 = vmatpush3.bf16.msra.mxu0 %v1993_v12 }
  0xc1   : > { %777 = vrot.lane.b32.xlu1 %v768_v16, %s2053_s14  ;;  %703 = vrot.lane.b32.xlu0 %v687_v25, %s2054_s17 }
  0xc5   : > { %824 = vrot.lane.b32.xlu1 %v687_v25, %s2055_s25  ;;  %775 = vrot.lane.b32.xlu0 %v764_v27, %s2053_s14 }
  0xc9   : > { %705 = vrot.lane.b32.xlu1 %v695_v29, %s2054_s17  ;;  %822 = vrot.lane.b32.xlu0 %v679_v23, %s2055_s25 }
  0xcd   : > { %830 = vrot.lane.b32.xlu1 %v2487_v41, %s2055_s25  ;;  %826 = vrot.lane.b32.xlu0 %v695_v29, %s2055_s25 }
  0xd1   : > { %852 = vrot.lane.b32.xlu1 %v2487_v41, %s2052_s13  ;;  %779 = vrot.lane.b32.xlu0 %v772_v51, %s2053_s14  ;;  %s2057_s14 = smov 6  }
  0xd5   : > { %828 = vrot.lane.b32.xlu0 %v821_v62, %s2055_s25  ;;  %1309 = vrot.lane.b32.xlu1 %v2046_v0, %s2049_s10 }
  0xd9   : > { %850 = vrot.lane.b32.xlu0 %v843_v61, %s2052_s13  ;;  %s2056_s13 = smov 15  }
  0xfb   : > { %v2664_v36 = vpop.permute.xlu1 %811 }
  0xff   : > { %v2666_v40 = vpop.permute.xlu1 %815  ;;  %v814_v43 = vpop.permute.xlu0 %813 }
 0x103   : > { %v733_v34 = vpop.permute.xlu1 %732  ;;  %v2668_v37 = vpop.permute.xlu0 %817 }
 0x107   : > { %v757_v56 = vpop.permute.xlu1 %756  ;;  %v798_v54 = vpop.permute.xlu0 %797 }
 0x10b   : > { %v725_v14 = vpop.permute.xlu1 %724  ;;  %v727_v28 = vpop.permute.xlu0 %726 }
 0x10f   : > { %v729_v0 = vpop.permute.xlu1 %728  ;;  %v749_v46 = vpop.permute.xlu0 %748 }
 0x113   : > { %v751_v52 = vpop.permute.xlu1 %750  ;;  %v753_v42 = vpop.permute.xlu0 %752 }
 0x117   : > { %v800_v63 = vpop.permute.xlu1 %799  ;;  %v802_v60 = vpop.permute.xlu0 %801 }
 0x11b   : > { %v845_v38 = vpop.permute.xlu1 %844  ;;  %v847_v1 = vpop.permute.xlu0 %846 }
 0x11f   : > { %v2670_v26 = vpop.permute.xlu1 %805  ;;  %v2672_v23 = vpop.permute.xlu0 %848 }
 0x123   : > { %v774_v2 = vpop.permute.xlu1 %773  ;;  %v731_v6 = vpop.permute.xlu0 %730 }
 0x127   : > { %v708_v19 = vpop.permute.xlu1 %707  ;;  %v2674_v20 = vpop.permute.xlu0 %754 }
 0x12b   : > { %v782_v16 = vpop.permute.xlu1 %781  ;;  %v2676_v25 = vpop.permute.xlu0 %803 }
 0x12f   : > { %v702_v8 = vpop.permute.xlu1 %701  ;;  %v700_v27 = vpop.permute.xlu0 %699 }
 0x130   : > { %v856_v21 = vsel %vm854_vm7, 0, %v700_v27  ;;  %v859_v29 = vsel %vm854_vm7, %v518_v53, %v702_v8  ;;  %v868_v8 = vsel %vm854_vm7, %v521_v59, %v708_v19 }
 0x131   : > { %v871_v12 = vsel %vm3182_vm8, %v856_v21, %v725_v14  ;;  %v873_v27 = vsel %vm3182_vm8, %v859_v29, %v727_v28  ;;  %v879_v48 = vsel %vm3182_vm8, %v868_v8, %v733_v34 }
 0x132   : > { %v882_v51 = vsel %vm880_vm11, %v871_v12, %v749_v46  ;;  %v884_v11 = vsel %vm880_vm11, %v873_v27, %v751_v52 }
 0x133   : > { %v778_v62 = vpop.permute.xlu1 %777  ;;  %v704_v61 = vpop.permute.xlu0 %703  ;;  %v893_v14 = vsel %vm891_vm1, %v882_v51, %v774_v2 }
 0x134   : > { %v862_v30 = vsel %vm854_vm7, %v519_v47, %v704_v61  ;;  %v904_v28 = vsel %vm902_vm2, %v893_v14, %v798_v54  ;;  %v520_v54 = vsel %vm516_vm14, %v2372_v57, 0 }
 0x135   : > { %v875_v46 = vsel %vm3182_vm8, %v862_v30, %v729_v0  ;;  %v915_v52 = vsel %vm913_vm0, %v904_v28, %v2664_v36 }
 0x136   : > { %v886_v53 = vsel %vm880_vm11, %v875_v46, %v753_v42  ;;  %v890_v42 = vsel %vm880_vm11, %v879_v48, %v757_v56 }
 0x137   : > { %v825_v21 = vpop.permute.xlu1 %824  ;;  %v776_v12 = vpop.permute.xlu0 %775  ;;  %v897_v30 = vsel %vm891_vm1, %v886_v53, %v778_v62  ;;  %v901_v36 = vsel %vm891_vm1, %v890_v42, %v782_v16 }
 0x138   : > { %v895_v58 = vsel %vm891_vm1, %v884_v11, %v776_v12 }
 0x139   : > { %v906_v47 = vsel %vm902_vm2, %v895_v58, %v800_v63  ;;  %v908_v63 = vsel %vm902_vm2, %v897_v30, %v802_v60 }
 0x13a   : > { %v917_v0 = vsel %vm913_vm0, %v906_v47, %v814_v43  ;;  %v919_v57 = vsel %vm913_vm0, %v908_v63, %v2666_v40 }
 0x13b   : > { %v706_v2 = vpop.permute.xlu1 %705  ;;  %v823_v34 = vpop.permute.xlu0 %822  ;;  %v928_v19 = vsel %vm924_vm13, %v917_v0, %v825_v21 }
 0x13c   : > { %v926_v58 = vsel %vm924_vm13, %v915_v52, %v823_v34  ;;  %v939_v29 = vsel %vm935_vm3, %v928_v19, %v847_v1  ;;  %v865_v43 = vsel %vm854_vm7, %v520_v54, %v706_v2 }
 0x13d   : > { %v937_v56 = vsel %vm935_vm3, %v926_v58, %v845_v38  ;;  %v964_v51 = vshrl.u32 %v939_v29, 16  ;;  %v967_v62 = vshll.u32 %v939_v29, 16  ;;  %v877_v60 = vsel %vm3182_vm8, %v865_v43, %v731_v6 }
 0x13e   : > { %v957_v61 = vshrl.u32 %v937_v56, 16  ;;  %v960_v59 = vshll.u32 %v937_v56, 16  ;;  %v912_v38 = vsel %vm902_vm2, %v901_v36, %v2670_v26  ;;  %v888_v40 = vsel %vm880_vm11, %v877_v60, %v2674_v20 }
 0x13f   : > { %v831_v27 = vpop.permute.xlu1 %830  ;;  %v827_v8 = vpop.permute.xlu0 %826  ;;  %v966_v14 = vrot.slane %v964_v51, 3  ;;  %v969_v46 = vrot.slane %v967_v62, 4  ;;  %vm1029_vm8 = vcmask 662528   ;;  %v923_v6 = vsel %vm913_vm0, %v912_v38, %v2348_v33 }
 0x140   : > { %v959_v1 = vrot.slane %v957_v61, 3  ;;  %v962_v53 = vrot.slane %v960_v59, 4  ;;  %v930_v21 = vsel %vm924_vm13, %v919_v57, %v827_v8  ;;  %v934_v2 = vsel %vm924_vm13, %v923_v6, %v831_v27 }
 0x141   : > { %v941_v16 = vsel %vm935_vm3, %v930_v21, %v2672_v23  ;;  %v970_v11 = vor.u32 %v969_v46, %v966_v14 }
 0x142   : > { %v972_v12 = vshrl.u32 %v941_v16, 16  ;;  %v975_v48 = vshll.u32 %v941_v16, 16  ;;  %v963_v28 = vor.u32 %v962_v53, %v959_v1  ;;  %v2751_v1 = vld [vmem:[%s3156_s2] ss:$0 sm:$0xff] }
 0x143   : > { %v853_v47 = vpop.permute.xlu1 %852  ;;  %v780_v30 = vpop.permute.xlu0 %779 }
 0x144   : > { %v974_v0 = vrot.slane %v972_v12, 3  ;;  %v977_v42 = vrot.slane %v975_v48, 4  ;;  %v899_v26 = vsel %vm891_vm1, %v888_v40, %v780_v30  ;;  %v971_v52 = vsel %vm566_vm15, %v963_v28, %v970_v11 }
 0x145   : > { %v910_v23 = vsel %vm902_vm2, %v899_v26, %v2676_v25  ;;  %v945_v19 = vsel %vm935_vm3, %v934_v2, %v853_v47  ;;  %1931 = vmatprep.mubr.msk.bf16.mxu0 %vm1029_vm8, %v971_v52  ;;  %vm3227_vm1 = vcmp.ne.s16.totalorder %v2510_v44, 0  ;;  %vm3229_vm2 = vcmask 1042432  }
 0x146   : > { %v978_v34 = vor.u32 %v977_v42, %v974_v0  ;;  %v921_v20 = vsel %vm913_vm0, %v910_v23, %v2668_v37  ;;  %v988_v58 = vshrl.u32 %v945_v19, 16  ;;  %v991_v63 = vshll.u32 %v945_v19, 16 }
 0x147   : > { %v829_v33 = vpop.permute.xlu0 %828  ;;  %vm3225_vm0 = vcmp.ne.s16.totalorder %v2395_v13, 0 }
 0x148   : > { %v979_v54 = vsel %vm566_vm15, %v970_v11, %v978_v34  ;;  %v932_v29 = vsel %vm924_vm13, %v921_v20, %v829_v33  ;;  %v990_v56 = vrot.slane %v988_v58, 3  ;;  %v993_v51 = vrot.slane %v991_v63, 4 }
 0x149   : > { %1932 = vmatmul.mubr.msk.bf16.vlgmr.msra.gmra.mxu0 %vm1029_vm8, %v979_v54  ;;  %vm3224_vm13 = vcmp.ne.s16.totalorder %v2350_v35, 0 }
 0x14a   : > { %v994_v27 = vor.u32 %v993_v51, %v990_v56 }
 0x14b   : > { %v851_v25 = vpop.permute.xlu0 %850 }
 0x14c   : > { %v943_v43 = vsel %vm935_vm3, %v932_v29, %v851_v25  ;;  %vm3226_vm3 = vcmp.ne.s16.totalorder %v2427_v22, 0 }
 0x14d   : > { %v980_v62 = vshrl.u32 %v943_v43, 16  ;;  %v983_v36 = vshll.u32 %v943_v43, 16 }
 0x14f   : > { %v982_v61 = vrot.slane %v980_v62, 3  ;;  %v985_v59 = vrot.slane %v983_v36, 4 }
 0x151   : > { %v986_v37 = vor.u32 %v985_v59, %v982_v61  ;;  %v2833_v61 = vld [vmem:[%s2121_s8 + $0x28] sm:$0xff] }
 0x153   : > { %v987_v8 = vsel %vm566_vm15, %v978_v34, %v986_v37  ;;  %v995_v57 = vsel %vm566_vm15, %v986_v37, %v994_v27 }
 0x154   : > { %1935 = vmatprep.mubr.msk.bf16.mxu0 %vm1029_vm8, %v987_v8 }
 0x155   : > { %1936 = vmatmul.mubr.msk.bf16.gmra.mxu0 %vm1029_vm8, %v995_v57  ;;  %v2848_v57 = vld [vmem:[%s2121_s8 + $0x20] sm:$0xff]  ;;  %vm3231_vm8 = vsmask.f32 3328 }
 0x209   : > { %v1933_v14 = vpop.f32.mrf.mxu0 }
 0x20a   : > { %v1115_v60 = vadd.f32 %v1933_v14, %v2136_v9 }
 0x20b   : > { %v1082_v46 = vpop.f32.mrf.mxu0 }
 0x20c   : > { %v1113_v21 = vadd.f32 %v1082_v46, %v2126_v3  ;;  %v2756_v11 = vadd.f32 %v2751_v1, %v1115_v60  ;;  %v2853_v46 = vld [vmem:[%s2121_s8 + $0x38] sm:$0xff] }
 0x20d   : > { %v1934_v53 = vpop.f32.mrf.mxu0 }
 0x20e   : > { %v1116_v38 = vadd.f32 %v1934_v53, %v2139_v10  ;;  %v2763_v9 = vadd.f32 %v2751_v1, %v1113_v21 }
 0x20f   : > { %v1085_v16 = vpop.f32.mrf.mxu0 }
 0x210   : > { %v2759_v12 = vadd.f32 %v2751_v1, %v1116_v38  ;;  %v1114_v48 = vadd.f32 %v1085_v16, %v2129_v5  ;;  %v2864_v16 = vld [vmem:[%s2121_s8 + $0x30] sm:$0xff] }
 0x212   : > { %v2767_v28 = vpack.c.bf16 %v2759_v12, %v2756_v11  ;;  %v2770_v3 = vadd.f32 %v2751_v1, %v1114_v48 }
 0x214   : > { %v2774_v10 = vpack.c.bf16 %v2770_v3, %v2763_v9  ;;  %v1157_v47 = vsel %vm514_vm5, %v2767_v28, 0  ;;  %v2793_v2 = vsel %vm603_vm4, %v2767_v28, 0  ;;  %v2801_v13 = vsel %vm623_vm6, %v2767_v28, 0 }
 0x215   : > { %1303 = vrot.lane.b32.xlu0 %v1157_v47, %s2049_s10  ;;  %v1937_v5 = vpop.f32.mrf.mxu0  ;;  %v1212_v34 = vrot.slane %v2793_v2, 1  ;;  %v1234_v22 = vrot.slane %v2801_v13, 4  ;;  %v2815_v20 = vsel %vm3227_vm1, %v2767_v28, 0  ;;  %v1173_v29 = vshll.u32 %v2767_v28, 16 }
 0x216   : > { %v1156_v40 = vsel %vm3224_vm13, %v2774_v10, 0  ;;  %v1152_v30 = vsel %vm3225_vm0, %v2774_v10, 0  ;;  %v1144_v6 = vsel %vm602_vm12, %v2774_v10, 0  ;;  %v1148_v35 = vsel %vm3226_vm3, %v2774_v10, 0 }
 0x217   : > { %1301 = vrot.lane.b32.xlu1 %v1156_v40, %s2049_s10  ;;  %v1098_v0 = vpop.f32.mrf.mxu0  ;;  %v1279_v42 = vrot.slane %v1152_v30, 5  ;;  %v1210_v26 = vrot.slane %v1144_v6, 1  ;;  %v1232_v19 = vrot.slane %v1148_v35, 4  ;;  %v1165_v33 = vshll.u32 %v2774_v10, 16 }
 0x218   : > { %v1169_v54 = vshrl.u32 %v2774_v10, 16  ;;  %v1177_v25 = vshrl.u32 %v2767_v28, 16  ;;  %v1280_v44 = vrot.slane %v2815_v20, 5  ;;  %vm3228_vm6 = vcmp.ne.s16.totalorder %v2379_v55, 0 }
 0x219   : > { %1287 = vrot.lane.b32.xlu0 %v1279_v42, %s2056_s13  ;;  %v1211_v23 = vsel %vm714_vm9, %v2487_v41, %v1210_v26  ;;  %v1938_v52 = vpop.f32.mrf.mxu0  ;;  %v1213_v31 = vsel %vm714_vm9, %v1210_v26, %v1212_v34  ;;  %v1235_v63 = vsel %vm738_vm10, %v1232_v19, %v1234_v22  ;;  %v1160_v43 = vsel %vm3228_vm6, %v2774_v10, 0 }
 0x21a   : > { %v1233_v56 = vsel %vm738_vm10, %v2506_v32, %v1232_v19  ;;  %v1167_v51 = vrot.slane %v1165_v33, 1  ;;  %v1250_v62 = vrot.slane %v1169_v54, 4  ;;  %v1251_v36 = vrot.slane %v1165_v33, 5 }
 0x21b   : > { %1218 = vrot.lane.b32.xlu1 %v1211_v23, %s2057_s14  ;;  %v1101_v58 = vpop.f32.mrf.mxu0  ;;  %v2840_v27 = vsel %vm602_vm12, %v2767_v28, 0  ;;  %v1281_v55 = vsel %vm3229_vm2, %v1279_v42, %v1280_v44  ;;  %v1326_v32 = vrot.slane %v1160_v43, 1  ;;  %v1253_v37 = vrot.slane %v1177_v25, 4 }
 0x21c   : > { %v1118_v59 = vadd.f32 %v2833_v61, %v1101_v58  ;;  %v1254_v8 = vrot.slane %v1173_v29, 5  ;;  %v1117_v14 = vadd.f32 %v2848_v57, %v1098_v0  ;;  %v1120_v17 = vadd.f32 %v2853_v46, %v1938_v52 }
 0x21d   : > { %1220 = vrot.lane.b32.xlu0 %v1213_v31, %s2057_s14  ;;  %vm3230_vm12 = vsmask.f32 7424  ;;  %v1327_v53 = vrot.slane %v2840_v27, 1  ;;  %v1252_v21 = vor.u32 %v1251_v36, %v1250_v62  ;;  %v1119_v48 = vadd.f32 %v2864_v16, %v1937_v5  ;;  %v3243_v62 = vld [vmem:[#allocation4_spill] sm:$0xff] }
 0x21e   : > { %v1168_v60 = vsel %vm3230_vm12, %v2487_v41, %v1167_v51  ;;  %v2860_v38 = vadd.f32 %v2751_v1, %v1118_v59  ;;  %v2868_v40 = vor.u32 %v1254_v8, %v1253_v37  ;;  %v2871_v30 = vadd.f32 %v2751_v1, %v1117_v14  ;;  %vm3232_vm13 = vmmov %vm3230_vm12 }
 0x21f   : > { %1242 = vrot.lane.b32.xlu1 %v1235_v63, %s2054_s17  ;;  %v1328_v47 = vsel %vm714_vm9, %v1326_v32, %v1327_v53  ;;  %v2875_v6 = vadd.f32 %v2751_v1, %v1120_v17  ;;  %v1171_v42 = vor.u32 %v1169_v54, %v1167_v51  ;;  %v2885_v26 = vadd.f32 %v2751_v1, %v1119_v48 }
 0x220   : > { %v1256_v0 = vsel %vm3231_vm8, %v1252_v21, %v2868_v40  ;;  %v2881_v5 = vpack.c.bf16 %v2860_v38, %v2871_v30  ;;  %v1175_v35 = vrot.slane %v1173_v29, 1  ;;  %vm3233_vm0 = vcmp.ne.s16.totalorder %v2482_v39, 0 }
 0x221   : > { %1240 = vrot.lane.b32.xlu0 %v1233_v56, %s2054_s17  ;;  %v2890_v23 = vpack.c.bf16 %v2875_v6, %v2885_v26  ;;  %vm3234_vm3 = vcmp.ne.s16.totalorder %v2513_v45, 0  ;;  %vm3235_vm1 = vcmp.ne.s16.totalorder %v2365_v49, 0  ;;  %vm3236_vm6 = vcmp.ne.s16.totalorder %v2368_v50, 0 }
 0x222   : > { %v1176_v52 = vsel %vm3232_vm13, %v1171_v42, %v1175_v35  ;;  %v1150_v19 = vsel %vm3233_vm0, %v2881_v5, 0  ;;  %v1154_v33 = vsel %vm3234_vm3, %v2881_v5, 0  ;;  %v1158_v54 = vsel %vm3235_vm1, %v2881_v5, 0 }
 0x223   : > { %1289 = vrot.lane.b32.xlu1 %v1281_v55, %s2056_s13  ;;  %v1159_v1 = vsel %vm516_vm14, %v2890_v23, 0  ;;  %v1236_v31 = vrot.slane %v1150_v19, 4  ;;  %v1147_v39 = vsel %vm3236_vm6, %v2890_v23, 0  ;;  %v1282_v63 = vrot.slane %v1154_v33, 5 }
 0x224   : > { %v1216_v29 = vrot.slane %v1147_v39, 1  ;;  %v1162_v45 = vsel %vm603_vm4, %v2881_v5, 0  ;;  %vm3237_vm2 = vcmp.ne.s16.totalorder %v2392_v7, 0  ;;  %vm3238_vm12 = vcmp.ne.s16.totalorder %v2549_v24, 0  ;;  %v3240_v7 = vld [vmem:[#allocation3_spill] sm:$0xff] }
 0x225   : > { %1196 = vrot.lane.b32.xlu0 %v1168_v60, %s2058_s15  ;;  %v1237_v58 = vsel %vm738_vm10, %v1234_v22, %v1236_v31  ;;  %v1151_v43 = vsel %vm3237_vm2, %v2890_v23, 0  ;;  %v1155_v50 = vsel %vm3238_vm12, %v2890_v23, 0  ;;  %vm3239_vm8 = vcmask 1042432   ;;  %v1994_v39 = vld [vmem:[%s3157_s3 + $0x8] sm:$0x3f]  }
 0x226   : > { %v1283_v13 = vsel %vm3239_vm8, %v1280_v44, %v1282_v63  ;;  %v1329_v22 = vrot.slane %v1162_v45, 1  ;;  %v1238_v56 = vrot.slane %v1151_v43, 4  ;;  %v1284_v18 = vrot.slane %v1155_v50, 5  ;;  %vm3244_vm0 = vmmov %vm3239_vm8  ;;  %v1996_v45 = vld [vmem:[%s3157_s3] sm:$0xff]  }
 0x227   : > { %1334 = vrot.lane.b32.xlu1 %v1328_v47, %s2059_s16  ;;  %vm3241_vm4 = vcmp.ne.s16.totalorder %v3240_v7, 0  ;;  %v1189_v44 = vshll.u32 %v2890_v23, 16  ;;  %v1193_v37 = vshrl.u32 %v2890_v23, 16  ;;  %v1185_v48 = vshrl.u32 %v2881_v5, 16  ;;  %vm3245_vm3 = vmmov %vm3244_vm0 }
 0x228   : > { %v2934_v51 = vsel %vm3241_vm4, %v2890_v23, 0  ;;  %vm3242_vm13 = vmmov %vm3241_vm4  ;;  %v1330_v20 = vsel %vm714_vm9, %v1327_v53, %v1329_v22  ;;  %v1286_v36 = vsel %vm3244_vm0, %v1284_v18, %v3243_v62  ;;  %v1239_v47 = vsel %vm738_vm10, %v1236_v31, %v1238_v56 }
 0x229   : > { %1267 = vrot.lane.b32.xlu0 %v1256_v0, %s2060_s18  ;;  %v1146_v24 = vsel %vm3242_vm13, %v2881_v5, 0  ;;  %v1331_v59 = vrot.slane %v2934_v51, 1  ;;  %v1191_v32 = vrot.slane %v1189_v44, 1  ;;  %v1261_v60 = vrot.slane %v1193_v37, 4 }
 0x22a   : > { %v1214_v27 = vrot.slane %v1146_v24, 1  ;;  %v1262_v53 = vrot.slane %v1189_v44, 5  ;;  %v1257_v0 = vrot.slane %v1185_v48, 4  ;;  %v1179_v19 = vor.u32 %v1177_v25, %v1175_v35 }
 0x22b   : > { %1265 = vrot.lane.b32.xlu1 %v1252_v21, %s2060_s18  ;;  %v1332_v55 = vsel %vm714_vm9, %v1329_v22, %v1331_v59  ;;  %v1195_v17 = vor.u32 %v1193_v37, %v1191_v32  ;;  %v1181_v21 = vshll.u32 %v2881_v5, 16  ;;  %vm3246_vm1 = vsmask.f32 7424 }
 0x22c   : > { %v1215_v8 = vsel %vm714_vm9, %v1212_v34, %v1214_v27  ;;  %v1217_v14 = vsel %vm714_vm9, %v1214_v27, %v1216_v29  ;;  %v1263_v2 = vor.u32 %v1262_v53, %v1261_v60  ;;  %vm3247_vm10 = vsmask.f32 3328  ;;  %vm3248_vm12 = vmmov %vm3246_vm1 }
 0x22d   : > { %1312 = vrot.lane.b32.xlu0 %v1176_v52, %s2061_s19  ;;  %v1183_v34 = vrot.slane %v1181_v21, 1  ;;  %v1258_v42 = vrot.slane %v1181_v21, 5  ;;  %vm1507_vm6 = vcmask 1044480   ;;  %vm1508_vm2 = vcmask 1045504   ;;  %vm3249_vm8 = vmmov %vm3246_vm1 }
 0x22e   : > { %v2062_v25 = vmov 65535   ;;  %vm3250_vm4 = vmmov %vm3247_vm10  ;;  %v1333_v22 = vsel %vm714_vm9, %v1331_v59, %v2487_v41  ;;  %vm1344_vm9 = vcmask 23552   ;;  %vm1359_vm13 = vcmask 48128  }
 0x22f   : > { %1198 = vrot.lane.b32.xlu1 %v1176_v52, %s2058_s15  ;;  %v1285_v52 = vsel %vm3245_vm3, %v1282_v63, %v1284_v18  ;;  %v1259_v33 = vor.u32 %v1258_v42, %v1257_v0  ;;  %v1187_v31 = vor.u32 %v1185_v48, %v1183_v34  ;;  %v1509_v35 = vsel %vm1507_vm6, 4294967295, %v2062_v25 }
 0x230   : > { %v1510_v63 = vsel %vm1508_vm2, %v1509_v35, 0  ;;  %vm1380_vm0 = vcmask 97280   ;;  %vm1391_vm3 = vcmask 121856   ;;  %v1140_v42 = vsel %vm514_vm5, %v2774_v10, 0 }
 0x231   : > { %1307 = vrot.lane.b32.xlu0 %v1159_v1, %s2049_s10  ;;  %v1184_v1 = vsel %vm3246_vm1, %v1179_v19, %v1183_v34  ;;  %v1192_v43 = vsel %vm3249_vm8, %v1187_v31, %v1191_v32  ;;  %vm1412_vm1 = vcmask 171008   ;;  %vm1423_vm6 = vcmask 195584  }
 0x232   : > { %vm3253_vm5 = vcmp.ne.s16.totalorder %v3252_v4, 0  ;;  %vm3256_vm8 = vcmp.ne.s16.totalorder %v2365_v49, 0 }
 0x233   : > { %1305 = vrot.lane.b32.xlu1 %v1158_v54, %s2049_s10  ;;  %v1260_v54 = vsel %vm3247_vm10, %v2868_v40, %v1259_v33  ;;  %v1995_v40 = vld [vmem:[%s3159_s5 + $0x8] sm:$0x3f]   ;;  %vm3251_vm10 = vcmask 146432   ;;  %v1143_v10 = vsel %vm3253_vm5, %v2890_v23, 0 }
 0x234   : > { %v2986_v50 = vand.u32 %v1995_v40, %v1510_v63  ;;  %vm3254_vm2 = vmmov %vm3251_vm10 }
 0x235   : > { %1244 = vrot.lane.b32.xlu0 %v1237_v58, %s2054_s17  ;;  %v1311_v58 = vsel %vm3248_vm12, %v1195_v17, %v2487_v41  ;;  %vm3255_vm12 = vmmov %vm3254_vm2 }
 0x237   : > { %1226 = vrot.lane.b32.xlu1 %v1216_v29, %s2057_s14  ;;  %v1512_v29 = vand.u32 %v1994_v39, %v1510_v63 }
 0x239   : > { %1291 = vrot.lane.b32.xlu0 %v1283_v13, %s2056_s13  ;;  %1939 = vmatprep.subr.bf16.mxu1 %v1512_v29  ;;  %v1264_v13 = vsel %vm3250_vm4, %v1259_v33, %v1263_v2  ;;  %vm3257_vm4 = vmmov %vm3254_vm2 }
 0x23a   : > { %1940 = vmatpush3.bf16.msra.mxu1 %v1512_v29 }
 0x23b   : > { %1248 = vrot.lane.b32.xlu1 %v1238_v56, %s2054_s17  ;;  %1941 = vmatprep.subr.bf16.mxu1 %v1996_v45  ;;  %v1310_v56 = vpop.permute.xlu1 %1309 }
 0x23d   : > { %1336 = vrot.lane.b32.xlu0 %v1330_v20, %s2059_s16 }
 0x23e   : > { %1942 = vmatpush3.bf16.msra.mxu1 %v1996_v45 }
 0x23f   : > { %1295 = vrot.lane.b32.xlu1 %v1286_v36, %s2056_s13  ;;  %1951 = vmatprep.subr.bf16.mxu1 %v2986_v50 }
 0x241   : > { %1338 = vrot.lane.b32.xlu0 %v1332_v55, %s2059_s16 }
 0x243   : > { %1222 = vrot.lane.b32.xlu1 %v1215_v8, %s2057_s14 }
 0x245   : > { %1224 = vrot.lane.b32.xlu0 %v1217_v14, %s2057_s14  ;;  %s3110_s14 = scalar_lea.vmem %s3161_s7, %s1859_s28 }
 0x247   : > { %1204 = vrot.lane.b32.xlu1 %v1195_v17, %s2058_s15 }
 0x249   : > { %1246 = vrot.lane.b32.xlu0 %v1239_v47, %s2054_s17 }
 0x24b   : > { %1273 = vrot.lane.b32.xlu1 %v1263_v2, %s2060_s18 }
 0x24d   : > { %1293 = vrot.lane.b32.xlu0 %v1285_v52, %s2056_s13 }
 0x24f   : > { %1314 = vrot.lane.b32.xlu1 %v1184_v1, %s2061_s19 }
 0x251   : > { %1200 = vrot.lane.b32.xlu0 %v1184_v1, %s2058_s15 }
 0x253   : > { %1269 = vrot.lane.b32.xlu1 %v1260_v54, %s2060_s18 }
 0x255   : > { %1318 = vrot.lane.b32.xlu0 %v1311_v58, %s2061_s19 }
 0x257   : > { %1202 = vrot.lane.b32.xlu1 %v1192_v43, %s2058_s15 }
 0x259   : > { %1316 = vrot.lane.b32.xlu0 %v1192_v43, %s2061_s19 }
 0x25b   : > { %1320 = vrot.lane.b32.xlu1 %v2487_v41, %s2061_s19 }
 0x25d   : > { %1271 = vrot.lane.b32.xlu0 %v1264_v13, %s2060_s18 }
 0x25f   : > { %1342 = vrot.lane.b32.xlu1 %v2487_v41, %s2059_s16 }
 0x261   : > { %1340 = vrot.lane.b32.xlu0 %v1333_v22, %s2059_s16 }
 0x287   : > { %v1304_v18 = vpop.permute.xlu0 %1303 }
 0x289   : > { %v1302_v7 = vpop.permute.xlu1 %1301 }
 0x28b   : > { %v1288_v51 = vpop.permute.xlu0 %1287 }
 0x28d   : > { %v1219_v24 = vpop.permute.xlu1 %1218 }
 0x28f   : > { %v1221_v20 = vpop.permute.xlu0 %1220 }
 0x291   : > { %v1243_v44 = vpop.permute.xlu1 %1242 }
 0x293   : > { %v1241_v62 = vpop.permute.xlu0 %1240 }
 0x295   : > { %v1290_v36 = vpop.permute.xlu1 %1289 }
 0x297   : > { %v1197_v27 = vpop.permute.xlu0 %1196 }
 0x298   : > { %v1346_v60 = vsel %vm1344_vm9, 0, %v1197_v27 }
 0x299   : > { %v1335_v55 = vpop.permute.xlu1 %1334  ;;  %v1361_v48 = vsel %vm1359_vm13, %v1346_v60, %v1219_v24  ;;  %v1141_v60 = vsel %vm3256_vm8, %v2767_v28, 0 }
 0x29a   : > { %v1371_v2 = vsel %vm854_vm7, %v1361_v48, %v1241_v62 }
 0x29b   : > { %v1268_v32 = vpop.permute.xlu0 %1267 }
 0x29d   : > { %v1266_v37 = vpop.permute.xlu1 %1265 }
 0x29e   : > { %v1382_v0 = vsel %vm1380_vm0, %v1371_v2, %v1266_v37 }
 0x29f   : > { %v1313_v8 = vpop.permute.xlu0 %1312  ;;  %v1393_v1 = vsel %vm1391_vm3, %v1382_v0, %v1288_v51 }
 0x2a0   : > { %v1403_v39 = vsel %vm3251_vm10, %v1393_v1, %v1302_v7 }
 0x2a1   : > { %v1199_v14 = vpop.permute.xlu1 %1198  ;;  %v1414_v58 = vsel %vm1412_vm1, %v1403_v39, %v1313_v8  ;;  %v1142_v39 = vsel %vm516_vm14, %v2881_v5, 0  ;;  %vm3258_vm14 = vmmov %vm3254_vm2 }
 0x2a2   : > { %v1349_v19 = vsel %vm1344_vm9, %v1140_v42, %v1199_v14  ;;  %v1425_v13 = vsel %vm1423_vm6, %v1414_v58, %v1335_v55 }
 0x2a3   : > { %v2998_v17 = vpop.permute.xlu0 %1307  ;;  %v1363_v31 = vsel %vm1359_vm13, %v1349_v19, %v1221_v20  ;;  %v1445_v20 = vshrl.u32 %v1425_v13, 16  ;;  %v1448_v62 = vshll.u32 %v1425_v13, 16 }
 0x2a4   : > { %v1373_v35 = vsel %vm854_vm7, %v1363_v31, %v1243_v44 }
 0x2a5   : > { %v3000_v41 = vpop.permute.xlu1 %1305  ;;  %v1384_v43 = vsel %vm1380_vm0, %v1373_v35, %v1268_v32  ;;  %v1447_v55 = vrot.slane %v1445_v20, 3 }
 0x2a6   : > { %v1395_v24 = vsel %vm1391_vm3, %v1384_v43, %v1290_v36 }
 0x2a7   : > { %v1245_v59 = vpop.permute.xlu0 %1244  ;;  %v1405_v37 = vsel %vm3255_vm12, %v1395_v24, %v1304_v18 }
 0x2a9   : > { %v1227_v53 = vpop.permute.xlu1 %1226 }
 0x2ab   : > { %v1292_v21 = vpop.permute.xlu0 %1291 }
 0x2ad   : > { %v1249_v47 = vpop.permute.xlu1 %1248 }
 0x2af   : > { %v1337_v34 = vpop.permute.xlu0 %1336 }
 0x2b1   : > { %v1296_v52 = vpop.permute.xlu1 %1295 }
 0x2b3   : > { %v1339_v33 = vpop.permute.xlu0 %1338 }
 0x2b5   : > { %v1223_v54 = vpop.permute.xlu1 %1222 }
 0x2b7   : > { %v1225_v25 = vpop.permute.xlu0 %1224 }
 0x2b9   : > { %v1205_v63 = vpop.permute.xlu1 %1204 }
 0x2ba   : > { %v1358_v29 = vsel %vm1344_vm9, %v1143_v10, %v1205_v63 }
 0x2bb   : > { %v1369_v40 = vsel %vm1359_vm13, %v1358_v29, %v1227_v53  ;;  %v1247_v45 = vpop.permute.xlu0 %1246  ;;  %v1450_v53 = vrot.slane %v1448_v62, 4 }
 0x2bc   : > { %v1379_v22 = vsel %vm854_vm7, %v1369_v40, %v1249_v47 }
 0x2bd   : > { %v1274_v7 = vpop.permute.xlu1 %1273  ;;  %v1451_v49 = vor.u32 %v1450_v53, %v1447_v55 }
 0x2be   : > { %v1390_v51 = vsel %vm1380_vm0, %v1379_v22, %v1274_v7 }
 0x2bf   : > { %v1401_v23 = vsel %vm1391_vm3, %v1390_v51, %v1296_v52  ;;  %v1294_v44 = vpop.permute.xlu0 %1293 }
 0x2c0   : > { %v1411_v27 = vsel %vm3254_vm2, %v1401_v23, %v1310_v56 }
 0x2c1   : > { %v1315_v8 = vpop.permute.xlu1 %1314 }
 0x2c2   : > { %v1416_v32 = vsel %vm1412_vm1, %v1405_v37, %v1315_v8  ;;  %v1997_v37 = vld [vmem:[%s3159_s5] sm:$0xff]  }
 0x2c3   : > { %v1427_v14 = vsel %vm1423_vm6, %v1416_v32, %v1337_v34  ;;  %v1201_v36 = vpop.permute.xlu0 %1200 }
 0x2c4   : > { %v1452_v48 = vshrl.u32 %v1427_v14, 16  ;;  %v1455_v47 = vshll.u32 %v1427_v14, 16  ;;  %v1352_v2 = vsel %vm1344_vm9, %v1141_v60, %v1201_v36 }
 0x2c5   : > { %v1365_v56 = vsel %vm1359_vm13, %v1352_v2, %v1223_v54  ;;  %v1270_v0 = vpop.permute.xlu1 %1269 }
 0x2c6   : > { %v1454_v18 = vrot.slane %v1452_v48, 3  ;;  %v1457_v42 = vrot.slane %v1455_v47, 4  ;;  %v1375_v52 = vsel %vm854_vm7, %v1365_v56, %v1245_v59 }
 0x2c7   : > { %v1386_v19 = vsel %vm1380_vm0, %v1375_v52, %v1270_v0  ;;  %v1319_v34 = vpop.permute.xlu0 %1318 }
 0x2c8   : > { %v1397_v1 = vsel %vm1391_vm3, %v1386_v19, %v1292_v21  ;;  %v1458_v28 = vor.u32 %v1457_v42, %v1454_v18 }
 0x2c9   : > { %v1203_v31 = vpop.permute.xlu1 %1202  ;;  %v1407_v59 = vsel %vm3257_vm4, %v1397_v1, %v3000_v41 }
 0x2ca   : > { %v1355_v35 = vsel %vm1344_vm9, %v1142_v39, %v1203_v31  ;;  %v1459_v54 = vsel %vm566_vm15, %v1451_v49, %v1458_v28 }
 0x2cb   : > { %v1317_v58 = vpop.permute.xlu0 %1316  ;;  %1943 = vmatprep.mubr.msk.bf16.mxu1 %vm880_vm11, %v1459_v54  ;;  %v1367_v4 = vsel %vm1359_vm13, %v1355_v35, %v1225_v25 }
 0x2cc   : > { %v1418_v21 = vsel %vm1412_vm1, %v1407_v59, %v1317_v58  ;;  %v1377_v40 = vsel %vm854_vm7, %v1367_v4, %v1247_v45 }
 0x2cd   : > { %v1429_v10 = vsel %vm1423_vm6, %v1418_v21, %v1339_v33  ;;  %v1321_v63 = vpop.permute.xlu1 %1320 }
 0x2ce   : > { %v1460_v29 = vshrl.u32 %v1429_v10, 16  ;;  %v1463_v15 = vshll.u32 %v1429_v10, 16  ;;  %v1422_v41 = vsel %vm1412_vm1, %v1411_v27, %v1321_v63 }
 0x2cf   : > { %v1272_v5 = vpop.permute.xlu0 %1271 }
 0x2d0   : > { %v1462_v43 = vrot.slane %v1460_v29, 3  ;;  %v1465_v13 = vrot.slane %v1463_v15, 4  ;;  %v1388_v22 = vsel %vm1380_vm0, %v1377_v40, %v1272_v5  ;;  %v3078_v29 = vld [vmem:[%s3160_s6] ss:$0 sm:$0xff] }
 0x2d1   : > { %v1399_v7 = vsel %vm1391_vm3, %v1388_v22, %v1294_v44  ;;  %v1343_v51 = vpop.permute.xlu1 %1342 }
 0x2d2   : > { %v1466_v25 = vor.u32 %v1465_v13, %v1462_v43  ;;  %v1433_v24 = vsel %vm1423_vm6, %v1422_v41, %v1343_v51  ;;  %v1409_v33 = vsel %vm3258_vm14, %v1399_v7, %v2998_v17 }
 0x2d3   : > { %v1476_v20 = vshrl.u32 %v1433_v24, 16  ;;  %v1479_v23 = vshll.u32 %v1433_v24, 16  ;;  %v1341_v62 = vpop.permute.xlu0 %1340  ;;  %v1420_v45 = vsel %vm1412_vm1, %v1409_v33, %v1319_v34 }
 0x2d4   : > { %v1431_v27 = vsel %vm1423_vm6, %v1420_v45, %v1341_v62  ;;  %v1467_v44 = vsel %vm566_vm15, %v1458_v28, %v1466_v25 }
 0x2d5   : > { %v1478_v8 = vrot.slane %v1476_v20, 3  ;;  %v1481_v32 = vrot.slane %v1479_v23, 4  ;;  %v1468_v55 = vshrl.u32 %v1431_v27, 16  ;;  %v1471_v14 = vshll.u32 %v1431_v27, 16  ;;  %1944 = vmatmul.mubr.msk.bf16.vlgmr.msra.gmra.mxu1 %vm880_vm11, %v1467_v44 }
 0x2d6   : > { %1952 = vmatpush3.bf16.msra.mxu1 %v2986_v50  ;;  %v1881_v50 = vld [vmem:[%s3158_s4] ss:$0 sm:$0xff] }
 0x2d7   : > { %v1470_v17 = vrot.slane %v1468_v55, 3  ;;  %v1473_v60 = vrot.slane %v1471_v14, 4  ;;  %1953 = vmatprep.subr.bf16.mxu1 %v1997_v37  ;;  %v1482_v36 = vor.u32 %v1481_v32, %v1478_v8 }
 0x2d9   : > { %v1474_v53 = vor.u32 %v1473_v60, %v1470_v17 }
 0x2da   : > { %1954 = vmatpush3.bf16.msra.mxu1 %v1997_v37 }
 0x2db   : > { %v1475_v48 = vsel %vm566_vm15, %v1466_v25, %v1474_v53  ;;  %v1483_v47 = vsel %vm566_vm15, %v1474_v53, %v1482_v36 }
 0x2dc   : > { %1947 = vmatprep.mubr.msk.bf16.mxu1 %vm880_vm11, %v1475_v48 }
 0x2dd   : > { %1948 = vmatmul.mubr.msk.bf16.gmra.mxu1 %vm880_vm11, %v1483_v47 }
 0x2de   : > { %1955 = vmatprep.mubr.msk.bf16.mxu1 %vm880_vm11, %v1459_v54 }
 0x2e5   : > { %1956 = vmatmul.mubr.msk.bf16.vlgmr.msra.gmra.mxu1 %vm880_vm11, %v1467_v44 }
 0x2e6   : > { %1959 = vmatprep.mubr.msk.bf16.mxu1 %vm880_vm11, %v1475_v48 }
 0x2ed   : > { %1960 = vmatmul.mubr.msk.bf16.gmra.mxu1 %vm880_vm11, %v1483_v47 }
 0x395   : > { %v1945_v2 = vpop.f32.mrf.mxu1 }
 0x396   : > { %v1557_v56 = vadd.f32 %v1945_v2, %v1881_v50 }
 0x397   : > { %v1548_v0 = vpop.f32.mrf.mxu1 }
 0x398   : > { %v1671_v18 = vmul.f32 0.5, %v1557_v56  ;;  %v1549_v42 = vadd.f32 %v1881_v50, %v1548_v0 }
 0x399   : > { %v1946_v52 = vpop.f32.mrf.mxu1 }
 0x39a   : > { %1998 = vtanh.f32 %v1671_v18  ;;  %v1669_v19 = vmul.f32 0.5, %v1549_v42  ;;  %v1560_v34 = vadd.f32 %v1946_v52, %v1881_v50 }
 0x39b   : > { %v1551_v1 = vpop.f32.mrf.mxu1 }
 0x39c   : > { %2000 = vtanh.f32 %v1669_v19  ;;  %v1672_v49 = vmul.f32 0.5, %v1560_v34  ;;  %v1552_v28 = vadd.f32 %v1881_v50, %v1551_v1 }
 0x39d   : > { %v1949_v31 = vpop.f32.mrf.mxu1 }
 0x39e   : > { %2002 = vtanh.f32 %v1672_v49  ;;  %v1670_v39 = vmul.f32 0.5, %v1552_v28  ;;  %v1573_v35 = vadd.f32 %v1949_v31, %v1881_v50 }
 0x39f   : > { %v1564_v54 = vpop.f32.mrf.mxu1 }
 0x3a0   : > { %2004 = vtanh.f32 %v1670_v39  ;;  %v1675_v58 = vmul.f32 0.5, %v1573_v35  ;;  %v1565_v59 = vadd.f32 %v1881_v50, %v1564_v54 }
 0x3a1   : > { %v1950_v4 = vpop.f32.mrf.mxu1 }
 0x3a2   : > { %2006 = vtanh.f32 %v1675_v58  ;;  %v1673_v21 = vmul.f32 0.5, %v1565_v59  ;;  %v1576_v10 = vadd.f32 %v1950_v4, %v1881_v50 }
 0x3a3   : > { %v1567_v63 = vpop.f32.mrf.mxu1 }
 0x3a4   : > { %2008 = vtanh.f32 %v1673_v21  ;;  %v1676_v15 = vmul.f32 0.5, %v1576_v10  ;;  %v1568_v5 = vadd.f32 %v1881_v50, %v1567_v63  ;;  %v2034_v63 = vld [vmem:[%s2121_s8 + $0x10] sm:$0xff] }
 0x3a5   : > { %v1957_v40 = vpop.f32.mrf.mxu1 }
 0x3a6   : > { %2010 = vtanh.f32 %v1676_v15  ;;  %v1674_v43 = vmul.f32 0.5, %v1568_v5  ;;  %v1647_v13 = vadd.f32 %v1957_v40, %v3078_v29 }
 0x3a7   : > { %v1999_v22 = vpop.eup %1998  ;;  %v1638_v41 = vpop.f32.mrf.mxu1 }
 0x3a8   : > { %v1689_v7 = vmul.f32 1.442695, %v1999_v22  ;;  %2012 = vtanh.f32 %v1674_v43  ;;  %1753 = vrot.lane.b32.xlu0 %v1647_v13, %s2058_s15  ;;  %v1639_v33 = vadd.f32 %v3078_v29, %v1638_v41  ;;  %v2035_v13 = vld [vmem:[%s2121_s8 + $0x18] sm:$0xff]  ;;  %v2036_v41 = vld [vmem:[%s2121_s8] sm:$0xff] }
 0x3a9   : > { %v2001_v51 = vpop.eup %2000  ;;  %v1958_v25 = vpop.f32.mrf.mxu1 }
 0x3aa   : > { %2014 = vpow2.f32 %v1689_v7  ;;  %v1685_v24 = vmul.f32 1.442695, %v2001_v51  ;;  %v1650_v20 = vadd.f32 %v1958_v25, %v3078_v29 }
 0x3ab   : > { %v2003_v23 = vpop.eup %2002  ;;  %v1641_v62 = vpop.f32.mrf.mxu1 }
 0x3ac   : > { %v1691_v45 = vmul.f32 1.442695, %v2003_v23  ;;  %1755 = vrot.lane.b32.xlu1 %v1650_v20, %s2058_s15  ;;  %1749 = vrot.lane.b32.xlu0 %v1639_v33, %s2058_s15  ;;  %2016 = vpow2.f32 %v1685_v24  ;;  %v1642_v8 = vadd.f32 %v3078_v29, %v1641_v62  ;;  %v2037_v62 = vld [vmem:[%s2121_s8 + $0x8] sm:$0xff] }
 0x3ad   : > { %v2005_v37 = vpop.eup %2004  ;;  %v1961_v27 = vpop.f32.mrf.mxu1 }
 0x3ae   : > { %2018 = vpow2.f32 %v1691_v45  ;;  %v1687_v44 = vmul.f32 1.442695, %v2005_v37  ;;  %v1663_v28 = vadd.f32 %v1961_v27, %v3078_v29 }
 0x3af   : > { %v2007_v32 = vpop.eup %2006  ;;  %v1654_v55 = vpop.f32.mrf.mxu1 }
 0x3b0   : > { %v1697_v14 = vmul.f32 1.442695, %v2007_v32  ;;  %v1655_v17 = vadd.f32 %v3078_v29, %v1654_v55  ;;  %1751 = vrot.lane.b32.xlu1 %v1642_v8, %s2058_s15  ;;  %2020 = vpow2.f32 %v1687_v44 }
 0x3b1   : > { %v2009_v60 = vpop.eup %2008  ;;  %v1962_v36 = vpop.f32.mrf.mxu1 }
 0x3b2   : > { %2022 = vpow2.f32 %v1697_v14  ;;  %v1693_v53 = vmul.f32 1.442695, %v2009_v60  ;;  %1757 = vrot.lane.b32.xlu0 %v1655_v17, %s2058_s15  ;;  %v1666_v39 = vadd.f32 %v1962_v36, %v3078_v29 }
 0x3b3   : > { %v2011_v48 = vpop.eup %2010  ;;  %v1657_v47 = vpop.f32.mrf.mxu1 }
 0x3b4   : > { %v1699_v50 = vmul.f32 1.442695, %v2011_v48  ;;  %v1658_v2 = vadd.f32 %v3078_v29, %v1657_v47  ;;  %2024 = vpow2.f32 %v1693_v53 }
 0x3b5   : > { %v2013_v56 = vpop.eup %2012 }
 0x3b6   : > { %2026 = vpow2.f32 %v1699_v50  ;;  %v1695_v0 = vmul.f32 1.442695, %v2013_v56  ;;  %1759 = vrot.lane.b32.xlu1 %v1658_v2, %s2058_s15 }
 0x3b7   : > { %v2015_v18 = vpop.eup %2014 }
 0x3b8   : > { %1713 = vrot.lane.b32.xlu0 %v2015_v18, %s2058_s15  ;;  %2028 = vpow2.f32 %v1695_v0 }
 0x3b9   : > { %v2017_v42 = vpop.eup %2016 }
 0x3bb   : > { %v2019_v52 = vpop.eup %2018 }
 0x3bc   : > { %1715 = vrot.lane.b32.xlu1 %v2019_v52, %s2058_s15  ;;  %1709 = vrot.lane.b32.xlu0 %v2017_v42, %s2058_s15 }
 0x3bd   : > { %v2021_v19 = vpop.eup %2020 }
 0x3bf   : > { %v2023_v34 = vpop.eup %2022 }
 0x3c0   : > { %1711 = vrot.lane.b32.xlu1 %v2021_v19, %s2058_s15  ;;  %1721 = vrot.lane.b32.xlu0 %v2023_v34, %s2058_s15 }
 0x3c1   : > { %v2025_v1 = vpop.eup %2024 }
 0x3c3   : > { %v2027_v49 = vpop.eup %2026 }
 0x3c4   : > { %1723 = vrot.lane.b32.xlu1 %v2027_v49, %s2058_s15  ;;  %1717 = vrot.lane.b32.xlu0 %v2025_v1, %s2058_s15 }
 0x3c5   : > { %v2029_v31 = vpop.eup %2028 }
 0x3c8   : > { %1719 = vrot.lane.b32.xlu1 %v2029_v31, %s2058_s15  ;;  %1761 = vrot.lane.b32.xlu0 %v1663_v28, %s2058_s15 }
 0x3cc   : > { %1763 = vrot.lane.b32.xlu1 %v1666_v39, %s2058_s15 }
 0x41a   : > { %v1754_v35 = vpop.permute.xlu0 %1753 }
 0x41e   : > { %v1756_v54 = vpop.permute.xlu1 %1755  ;;  %v1750_v58 = vpop.permute.xlu0 %1749 }
 0x422   : > { %v1752_v59 = vpop.permute.xlu1 %1751 }
 0x424   : > { %v1758_v4 = vpop.permute.xlu0 %1757 }
 0x428   : > { %v1760_v21 = vpop.permute.xlu1 %1759 }
 0x42a   : > { %v1714_v10 = vpop.permute.xlu0 %1713 }
 0x42b   : > { %v1735_v15 = vmul.f32 %v2034_v63, %v1714_v10 }
 0x42d   : > { %v1775_v29 = vadd.f32 %v1754_v35, %v1735_v15 }
 0x42e   : > { %v1716_v5 = vpop.permute.xlu1 %1715  ;;  %v1710_v40 = vpop.permute.xlu0 %1709 }
 0x42f   : > { %v1783_v43 = vsel %vm1344_vm9, %v2756_v11, %v1775_v29  ;;  %v1736_v22 = vmul.f32 %v2035_v13, %v1716_v5  ;;  %v1733_v7 = vmul.f32 %v2036_v41, %v1710_v40 }
 0x430   : > { %1791 = vst.msk [vmem:[%s3110_s14 + $0x10] sm:$0xff] %vm1380_vm0, %v1783_v43 }
 0x431   : > { %v1776_v51 = vadd.f32 %v1756_v54, %v1736_v22  ;;  %v1773_v25 = vadd.f32 %v1750_v58, %v1733_v7 }
 0x432   : > { %v1712_v24 = vpop.permute.xlu1 %1711  ;;  %v1722_v33 = vpop.permute.xlu0 %1721 }
 0x433   : > { %v1784_v20 = vsel %vm1344_vm9, %v2759_v12, %v1776_v51  ;;  %v1781_v23 = vsel %vm1344_vm9, %v2763_v9, %v1773_v25  ;;  %v1734_v45 = vmul.f32 %v2037_v62, %v1712_v24  ;;  %v1739_v12 = vmul.f32 %v2864_v16, %v1722_v33 }
 0x434   : > { %1792 = vst.msk [vmem:[%s3110_s14 + $0x18] sm:$0xff] %vm1380_vm0, %v1784_v20  ;;  %1789 = vst.msk [vmem:[%s3110_s14] sm:$0xff] %vm1380_vm0, %v1781_v23 }
 0x435   : > { %v1774_v11 = vadd.f32 %v1752_v59, %v1734_v45 }
 0x436   : > { %v1724_v37 = vpop.permute.xlu1 %1723  ;;  %v1718_v27 = vpop.permute.xlu0 %1717 }
 0x437   : > { %v1782_v44 = vsel %vm1344_vm9, %v2770_v3, %v1774_v11  ;;  %v1737_v8 = vmul.f32 %v2848_v57, %v1718_v27  ;;  %v1740_v3 = vmul.f32 %v2853_v46, %v1724_v37 }
 0x438   : > { %1790 = vst.msk [vmem:[%s3110_s14 + $0x8] sm:$0xff] %vm1380_vm0, %v1782_v44 }
 0x439   : > { %v1777_v9 = vadd.f32 %v1758_v4, %v1737_v8 }
 0x43a   : > { %v1720_v32 = vpop.permute.xlu1 %1719  ;;  %v1762_v55 = vpop.permute.xlu0 %1761 }
 0x43b   : > { %v1785_v14 = vsel %vm1344_vm9, %v2871_v30, %v1777_v9  ;;  %v1738_v17 = vmul.f32 %v2833_v61, %v1720_v32  ;;  %v1779_v60 = vadd.f32 %v1762_v55, %v1739_v12 }
 0x43c   : > { %1793 = vst.msk [vmem:[%s3110_s14 + $0x20] sm:$0xff] %vm1380_vm0, %v1785_v14 }
 0x43d   : > { %v1778_v57 = vadd.f32 %v1760_v21, %v1738_v17  ;;  %v1787_v36 = vsel %vm1344_vm9, %v2885_v26, %v1779_v60 }
 0x43e   : > { %1795 = vst.msk [vmem:[%s3110_s14 + $0x30] sm:$0xff] %vm1380_vm0, %v1787_v36  ;;  %v1764_v16 = vpop.permute.xlu1 %1763 }
 0x43f   : > { %v1786_v53 = vsel %vm1344_vm9, %v2860_v38, %v1778_v57  ;;  %v1780_v48 = vadd.f32 %v1764_v16, %v1740_v3 }
 0x440   : > { %1794 = vst.msk [vmem:[%s3110_s14 + $0x28] sm:$0xff] %vm1380_vm0, %v1786_v53 }
 0x441   : > { %v1788_v61 = vsel %vm1344_vm9, %v2875_v6, %v1780_v48 }
 0x442   : > { %1796 = vst.msk [vmem:[%s3110_s14 + $0x38] sm:$0xff] %vm1380_vm0, %v1788_v61 }
 0x443 PF: > { %s17_s24 = sadd.s32 1, %s2044_s24  }
 0x444   : > { %p14_p4 = scmp.ge.s32.totalorder %s17_s24, 4  }
 0x446   :  { %16 = sbr.rel (!%p14_p4) target bundleno = 1 (0x1), region = 78 }

</bundles_post_ra>
